<compile_context>
chip_gen: v6e
topology: v6e:2x2x1
jax: 0.10.0
libtpu: 0.0.40
codegen_flags: <defaults>
</compile_context>

<pallas_src>
import functools
import math

import jax
import jax.numpy as jnp
from jax import lax
from jax.experimental import pallas as pl
from jax.experimental.pallas import tpu as pltpu


# ----------------------------------------------------------------------------
# Pallas kernel: conv as per-tap MXU matmuls accumulated in f32 (+fused PReLU)
# ----------------------------------------------------------------------------
def _conv_tap_kernel(alpha_ref, x_ref, w_ref, o_ref, *, offsets, cin,
                     fuse_prelu):
    # x_ref: [Bb, Npix, Cp]  bf16 flattened padded activation (full per item)
    # w_ref: [ntaps*Cp, Ct]  bf16 tap-major weight tile
    # o_ref: [Bb, Mp, Ct]    bf16
    # alpha_ref: [1, 1] f32 PReLU slope in SMEM (ignored unless fuse_prelu)
    #
    # Tap (kh, kw) of the conv == the Mp-row window of the flattened map
    # starting at kh*Wp + kw: contiguous in-VMEM reads feeding the MXU
    # directly -- no materialized im2col buffer.
    Bb, Mp, _ = o_ref.shape
    for b in range(Bb):                      # static unroll (batch folded in)
        acc = None
        for k, off in enumerate(offsets):    # static unroll over taps
            xk = x_ref[b, pl.ds(off, Mp), :]
            wk = w_ref[pl.ds(k * cin, cin), :]
            part = jnp.dot(xk, wk, preferred_element_type=jnp.float32)
            acc = part if acc is None else acc + part
        if fuse_prelu:
            a = alpha_ref[0, 0]
            acc = jnp.where(acc >= 0, acc, a * acc)
        o_ref[b] = acc.astype(o_ref.dtype)


@functools.lru_cache(maxsize=None)
def _vmem_capacity_bytes():
    try:
        info = pltpu.get_tpu_info()
        for attr in ("vmem_capacity_bytes", "vmem_size_bytes", "vmem_bytes"):
            v = getattr(info, attr, None)
            if v:
                return int(v)
    except Exception:
        pass
    return 64 * 1024 * 1024   # conservative default: v7x physical VMEM / core


@functools.lru_cache(maxsize=None)
def _get_conv_call(B, Bb, Npix, Mp, Cp, Cout, Ct, offsets, fuse_prelu):
    ntaps = len(offsets)
    Gb = B // Bb
    J = Cout // Ct
    kernel = functools.partial(_conv_tap_kernel, offsets=offsets, cin=Cp,
                               fuse_prelu=fuse_prelu)

    # Grid order: put on the outer axis whichever operand would otherwise be
    # re-streamed from HBM the most (inner-axis revisits of an unchanged block
    # index are not re-fetched by the pipeline).
    x_total = B * Npix * Cp * 2
    w_total = ntaps * Cp * Cout * 2
    weight_outer_traffic = x_total * (J if Gb > 1 else 1) + w_total
    batch_outer_traffic = x_total + w_total * (Gb if J > 1 else 1)
    if weight_outer_traffic <= batch_outer_traffic:
        grid = (J, Gb)
        x_map = lambda j, b: (b, 0, 0)
        w_map = lambda j, b: (0, j)
        o_map = lambda j, b: (b, 0, j)
    else:
        grid = (Gb, J)
        x_map = lambda b, j: (b, 0, 0)
        w_map = lambda b, j: (0, j)
        o_map = lambda b, j: (b, 0, j)

    # Generation-aware VMEM budget from actual (double-buffered) block sizes
    # plus the in-kernel f32 accumulator and a compiler margin.
    x_blk = Bb * Npix * Cp * 2
    w_blk = ntaps * Cp * Ct * 2
    o_blk = Bb * Mp * Ct * 2
    need = 2 * (x_blk + w_blk + o_blk) + Mp * Ct * 4 + (8 << 20)
    cap = int(0.8 * _vmem_capacity_bytes())
    vmem_limit = int(min(max(need, 32 << 20), cap))

    return pl.pallas_call(
        kernel,
        out_shape=jax.ShapeDtypeStruct((B, Mp, Cout), jnp.bfloat16),
        grid=grid,
        in_specs=[
            pl.BlockSpec(memory_space=pltpu.MemorySpace.SMEM),   # alpha
            pl.BlockSpec((Bb, Npix, Cp), x_map),                 # activation
            pl.BlockSpec((ntaps * Cp, Ct), w_map),               # weight tile
        ],
        out_specs=pl.BlockSpec((Bb, Mp, Ct), o_map),
        compiler_params=pltpu.CompilerParams(
            dimension_semantics=("parallel", "parallel"),
            vmem_limit_bytes=vmem_limit),
    )


# ----------------------------------------------------------------------------
# weight packing (done ONCE at init) + conv2d dispatch
# ----------------------------------------------------------------------------
def _round_up(v, m):
    return -(-v // m) * m


def pack_conv(w, *, stride=1, padding=0):
    """w: [KH,KW,Cin,Cout] f32 (cross-correlation, bias-free like nn.Conv2d).
    Returns a packed layer dict; channel-dense convs go to the Pallas path."""
    KH, KW, Cin, Cout = w.shape
    if Cin < 128 or Cout < 128:
        # Degenerate-channel convs: negligible FLOPs and lane-sparse -> XLA.
        return {'kind': 'xla', 'w': w.astype(jnp.bfloat16),
                'stride': stride, 'pad': padding}
    if stride == 2:
        # Exact rewrite: stride-2 conv == stride-1 *valid* 2x2 conv over the
        # space-to-depth of the padded input; repack the weight accordingly:
        #   w2[dh,dw,(a,b,c)] = w[2dh+a, 2dw+b, c]  (zero out-of-range taps)
        KH2, KW2 = -(-KH // 2), -(-KW // 2)
        wp = jnp.pad(w, ((0, 2 * KH2 - KH), (0, 2 * KW2 - KW), (0, 0), (0, 0)))
        w = wp.reshape(KH2, 2, KW2, 2, Cin, Cout).transpose(0, 2, 1, 3, 4, 5)
        w = w.reshape(KH2, KW2, 4 * Cin, Cout)
        KH, KW, Cin = KH2, KW2, 4 * Cin
    Cp = _round_up(Cin, 128)
    if Cp != Cin:
        w = jnp.pad(w, ((0, 0), (0, 0), (0, Cp - Cin), (0, 0)))
    wf = w.astype(jnp.bfloat16).reshape(KH * KW * Cp, Cout)
    return {'kind': 'pallas', 'w': wf, 'kh': KH, 'kw': KW, 'cp': Cp,
            'cout': Cout, 'stride': stride, 'pad': padding}


def _conv2d_xla(x, layer, prelu_alpha):
    y = lax.conv_general_dilated(
        x.astype(jnp.bfloat16), layer['w'],
        window_strides=(layer['stride'], layer['stride']),
        padding=[(layer['pad'], layer['pad'])] * 2,
        dimension_numbers=('NHWC', 'HWIO', 'NHWC'),
        preferred_element_type=jnp.float32)
    if prelu_alpha is not None:
        y = jnp.where(y >= 0, y, jnp.asarray(prelu_alpha, jnp.float32) * y)
    return y.astype(jnp.bfloat16)


def _conv2d_pallas(x, layer, padding, prelu_alpha):
    B, H, W, Cin = x.shape
    KH, KW, Cp, Cout = layer['kh'], layer['kw'], layer['cp'], layer['cout']
    Hp = H + 2 * padding
    Wp = W + 2 * padding
    Ho = Hp - KH + 1
    Wo = Wp - KW + 1
    # One fused pad: spatial pad + channel pad + one slack bottom row so every
    # tap window of the flattened map stays in bounds (slack feeds only the
    # KW-1 junk columns which are dropped below).
    extra = 1 if KW > 1 else 0
    if padding or extra or Cp != Cin:
        x = jnp.pad(x, ((0, 0), (padding, padding + extra),
                        (padding, padding), (0, Cp - Cin)))
    Npix = (Hp + extra) * Wp
    Mp = Ho * Wp
    xf = x.reshape(B, Npix, Cp)
    if xf.dtype != jnp.bfloat16:
        xf = xf.astype(jnp.bfloat16)
    offsets = tuple(kh * Wp + kw for kh in range(KH) for kw in range(KW))

    fuse = prelu_alpha is not None
    alpha = jnp.reshape(
        jnp.asarray(prelu_alpha if fuse else 0.0, jnp.float32), (1, 1))
    Ct = 256 if Cout % 256 == 0 else 128
    # Fold batch into one block (kernel-internal loop) when the per-item
    # activation is small: fewer grid steps, weight tiles fetched once.
    Bb = B if B * Npix * Cp * 2 <= (2 << 20) else 1

    call = _get_conv_call(B, Bb, Npix, Mp, Cp, Cout, Ct, offsets, fuse)
    y = call(alpha, xf, layer['w'])                 # [B, Mp, Cout] bf16
    y = y.reshape(B, Ho, Wp, Cout)
    if Wo != Wp:
        y = y[:, :, :Wo, :]                         # drop wrap-around junk
    return y


def conv2d(x, layer, prelu_alpha=None):
    """x: [B,H,W,Cin] (bf16 or f32), layer: packed dict from pack_conv."""
    if layer['kind'] == 'xla':
        return _conv2d_xla(x, layer, prelu_alpha)
    pad = layer['pad']
    if layer['stride'] == 2:
        xp = x if pad == 0 else jnp.pad(
            x, ((0, 0), (pad, pad), (pad, pad), (0, 0)))
        B, Hp, Wp, C = xp.shape
        assert Hp % 2 == 0 and Wp % 2 == 0
        xs = xp.reshape(B, Hp // 2, 2, Wp // 2, 2, C)
        xs = xs.transpose(0, 1, 3, 2, 4, 5).reshape(B, Hp // 2, Wp // 2, 4 * C)
        return _conv2d_pallas(xs, layer, padding=0, prelu_alpha=prelu_alpha)
    return _conv2d_pallas(x, layer, padding=pad, prelu_alpha=prelu_alpha)


# ----------------------------------------------------------------------------
# small glue ops (plain JAX layout work)
# ----------------------------------------------------------------------------
def pixel_shuffle(x, r):
    # NCHW PixelShuffle semantics mapped onto the NHWC channel axis.
    B, H, W, C = x.shape
    co = C // (r * r)
    x = x.reshape(B, H, W, co, r, r)
    x = x.transpose(0, 1, 4, 2, 5, 3)
    return x.reshape(B, H * r, W * r, co)


def maxpool2(x):
    B, H, W, C = x.shape
    return jnp.max(x.reshape(B, H // 2, 2, W // 2, 2, C), axis=(2, 4))


def rgb_to_ycbcr(img):
    # TODO(synk): kornia RgbToYcbcr class source not provided; standard coeffs.
    r, g, b = img[..., 0], img[..., 1], img[..., 2]
    y = 0.299 * r + 0.587 * g + 0.114 * b
    cb = (b - y) * 0.564 + 0.5
    cr = (r - y) * 0.713 + 0.5
    return jnp.stack([y, cb, cr], axis=-1)


def ycbcr_to_rgb(img):
    # TODO(synk): kornia YcbcrToRgb class source not provided; standard coeffs.
    y, cb, cr = img[..., 0], img[..., 1], img[..., 2]
    cb = cb - 0.5
    cr = cr - 0.5
    r = y + 1.403 * cr
    g = y - 0.714 * cr - 0.344 * cb
    b = y + 1.773 * cb
    return jnp.stack([r, g, b], axis=-1)


# ----------------------------------------------------------------------------
# parameter init (deterministic, PyTorch-like kaiming-uniform fan-in bound)
# ----------------------------------------------------------------------------
PRELU_INIT = jnp.float32(0.25)  # nn.PReLU() default


class KeyGen:
    def __init__(self, seed):
        self.key = jax.random.PRNGKey(seed)

    def __call__(self):
        self.key, sub = jax.random.split(self.key)
        return sub


def make_conv(kg, kh, kw, cin, cout, *, stride=1, padding=0):
    bound = 1.0 / math.sqrt(kh * kw * cin)
    w = jax.random.uniform(kg(), (kh, kw, cin, cout), jnp.float32,
                           -bound, bound)
    return pack_conv(w, stride=stride, padding=padding)


def init_cbam(kg, C, ratio=16):
    # TODO(synk): CBAM class source not provided; standard CBAM (channel MLP
    # ratio 16 + 7x7 spatial attention, bias-free) is implemented.
    hid = C // ratio
    return {
        'fc1': jax.random.uniform(kg(), (C, hid), jnp.float32,
                                  -1.0 / math.sqrt(C), 1.0 / math.sqrt(C)),
        'fc2': jax.random.uniform(kg(), (hid, C), jnp.float32,
                                  -1.0 / math.sqrt(hid), 1.0 / math.sqrt(hid)),
        'spatial': make_conv(kg, 7, 7, 2, 1, padding=3),
    }


def init_residual_block(kg, input_dim=256):
    return {
        'conv1': make_conv(kg, 3, 3, input_dim, 256, padding=1), 'a2': PRELU_INIT,
        'conv3': make_conv(kg, 3, 3, 256, 256, padding=1), 'a4': PRELU_INIT,
        'conv5': make_conv(kg, 3, 3, 256, 512, stride=2, padding=1), 'a6': PRELU_INIT,
        'conv7': make_conv(kg, 3, 3, 512, 512, padding=1), 'a8': PRELU_INIT,
        'conv9': make_conv(kg, 3, 3, 512, 1024, stride=2, padding=1), 'a10': PRELU_INIT,
        'conv11': make_conv(kg, 3, 3, 1024, 1024, padding=1), 'a12': PRELU_INIT,
        'conv13': make_conv(kg, 1, 1, 1024, 2048),
        'conv15': make_conv(kg, 1, 1, 1024, 512),
        'conv16': make_conv(kg, 3, 3, 512, 512, padding=1), 'a17': PRELU_INIT,
        'conv18': make_conv(kg, 1, 1, 512, 1024),
        'conv20': make_conv(kg, 1, 1, 512, 256),
        'conv21': make_conv(kg, 3, 3, 256, 256, padding=1), 'a22': PRELU_INIT,
        'conv23': make_conv(kg, 3, 3, 256, 256, padding=1), 'a24': PRELU_INIT,
        'conv25': make_conv(kg, 3, 3, 256, 256, padding=1),
    }


def init_recon_block(kg):
    p = {}
    for i in range(1, 18, 2):
        p[f'conv{i}'] = make_conv(kg, 3, 3, 256, 256, padding=1)
    for i in range(2, 17, 2):
        p[f'a{i}'] = PRELU_INIT
    return p


def init_netg(kg):
    P = {
        'yconv1': make_conv(kg, 3, 3, 2, 128, padding=1), 'yconv_a': PRELU_INIT,
        'yconv2': make_conv(kg, 3, 3, 128, 128, stride=2, padding=1),
        'cconv1': make_conv(kg, 3, 3, 2, 128, padding=1), 'cconv_a': PRELU_INIT,
        'cconv2': make_conv(kg, 3, 3, 128, 128, stride=2, padding=1),
        'ybam': init_cbam(kg, 128),
        'cbam': init_cbam(kg, 128),
        'cdown': make_conv(kg, 3, 3, 257, 256, stride=2, padding=1),
        'yrecon': init_recon_block(kg),
        'crecon': init_recon_block(kg),
        'y_mid': make_conv(kg, 1, 1, 1024, 256), 'y_mid_a': PRELU_INIT,
        'y_mid2': make_conv(kg, 3, 3, 256, 256, padding=1), 'y_mid2_a': PRELU_INIT,
        'c_mid': make_conv(kg, 1, 1, 512, 256), 'c_mid_a': PRELU_INIT,
        'c_mid2': make_conv(kg, 3, 3, 256, 256, padding=1), 'c_mid2_a': PRELU_INIT,
        'yout': make_conv(kg, 3, 3, 64, 1, padding=1),
        'cout1': make_conv(kg, 3, 3, 64, 64, padding=1),
        'cout2': make_conv(kg, 3, 3, 16, 2, padding=1),
    }
    for name in ['A', 'B', 'C', 'D', 'E', 'F']:
        P[name] = init_residual_block(kg)
    return P


# ----------------------------------------------------------------------------
# module forward passes (NHWC, activations bf16 between layers)
# ----------------------------------------------------------------------------
def cbam_forward(p, x):
    xf = x.astype(jnp.float32)
    avg = jnp.mean(xf, axis=(1, 2))
    mx = jnp.max(xf, axis=(1, 2))

    def mlp(v):
        return jnp.maximum(v @ p['fc1'], 0.0) @ p['fc2']

    ca = jax.nn.sigmoid(mlp(avg) + mlp(mx)).astype(x.dtype)     # [B, C]
    x = x * ca[:, None, None, :]
    s = jnp.concatenate([jnp.mean(x, axis=-1, keepdims=True),
                         jnp.max(x, axis=-1, keepdims=True)], axis=-1)
    sa = jax.nn.sigmoid(conv2d(s, p['spatial']))
    return x * sa.astype(x.dtype)


def residual_block(p, x):
    res1 = x
    out = conv2d(x, p['conv1'], prelu_alpha=p['a2'])
    out = conv2d(out, p['conv3'], prelu_alpha=p['a4'])
    out = res1 + out
    cat1 = out
    out = conv2d(out, p['conv5'], prelu_alpha=p['a6'])
    res2 = out
    out = conv2d(out, p['conv7'], prelu_alpha=p['a8'])
    out = res2 + out
    cat2 = out
    out = conv2d(out, p['conv9'], prelu_alpha=p['a10'])
    res3 = out
    out = conv2d(out, p['conv11'], prelu_alpha=p['a12'])
    out = res3 + out
    out = pixel_shuffle(conv2d(out, p['conv13']), 2)
    out = jnp.concatenate([out, cat2], axis=-1)
    out = conv2d(out, p['conv15'])
    res4 = out
    out = conv2d(out, p['conv16'], prelu_alpha=p['a17'])
    out = res4 + out
    out = pixel_shuffle(conv2d(out, p['conv18']), 2)
    out = jnp.concatenate([out, cat1], axis=-1)
    out = conv2d(out, p['conv20'])
    res5 = out
    out = conv2d(out, p['conv21'], prelu_alpha=p['a22'])
    out = conv2d(out, p['conv23'], prelu_alpha=p['a24'])
    out = res5 + out
    out = conv2d(out, p['conv25'])
    return out + res1


def recon_block(p, x):
    res1 = x
    out = conv2d(x, p['conv1'], prelu_alpha=p['a2'])
    out = conv2d(out, p['conv3'], prelu_alpha=p['a4'])
    out = out + res1
    res2 = out
    out = conv2d(out, p['conv5'], prelu_alpha=p['a6'])
    out = conv2d(out, p['conv7'], prelu_alpha=p['a8'])
    out = out + res2
    res3 = out
    out = conv2d(out, p['conv9'], prelu_alpha=p['a10'])
    out = conv2d(out, p['conv11'], prelu_alpha=p['a12'])
    out = out + res3
    res4 = out
    out = conv2d(out, p['conv13'], prelu_alpha=p['a14'])
    out = conv2d(out, p['conv15'], prelu_alpha=p['a16'])
    out = out + res4
    out = conv2d(out, p['conv17'])
    return out + res1


def run_shared_recon(p, outs):
    """Run one parameter-shared Recon_Block on several inputs by stacking
    them along batch (weights stream from HBM once, larger matmul M), then
    re-emit the channel-concatenated result in original order."""
    n = len(outs)
    stacked = jnp.concatenate(outs, axis=0)          # [n*B, H, W, C]
    r = recon_block(p, stacked)
    nb, H, W, C = r.shape
    B = nb // n
    r = r.reshape(n, B, H, W, C).transpose(1, 2, 3, 0, 4)
    return r.reshape(B, H, W, n * C)                 # == cat([r1,..,rn], C)


def netg_forward(P, x):
    # x: [B, H, W, 4] = RGB + 1 jpeg-grid channel (NHWC, f32)
    rgb = x[..., :3]
    grid = x[..., 3:]
    yuv = rgb_to_ycbcr(rgb)
    residual = yuv

    y_out = conv2d(jnp.concatenate([yuv[..., :1], grid], axis=-1),
                   P['yconv1'], prelu_alpha=P['yconv_a'])
    y_out = conv2d(y_out, P['yconv2'])
    c_out = conv2d(yuv[..., 1:3], P['cconv1'], prelu_alpha=P['cconv_a'])
    c_out = conv2d(c_out, P['cconv2'])

    y_tmp = y_out
    y_out = jnp.concatenate([y_out, cbam_forward(P['cbam'], c_out)], axis=-1)
    c_out = jnp.concatenate([c_out, cbam_forward(P['ybam'], y_tmp),
                             maxpool2(grid).astype(y_out.dtype)], axis=-1)
    c_out = conv2d(c_out, P['cdown'])

    out1 = residual_block(P['A'], y_out)
    out2 = residual_block(P['B'], out1)
    out3 = residual_block(P['C'], out2)
    out4 = residual_block(P['D'], out3)
    out5 = residual_block(P['E'], c_out)
    out6 = residual_block(P['F'], out5)

    # parameter-shared recon blocks run once on batch-stacked inputs
    y_cat = run_shared_recon(P['yrecon'], [out1, out2, out3, out4])
    c_cat = run_shared_recon(P['crecon'], [out5, out6])

    y_out = conv2d(y_cat, P['y_mid'], prelu_alpha=P['y_mid_a'])
    y_res = y_out
    y_out = conv2d(y_out, P['y_mid2'], prelu_alpha=P['y_mid2_a'])
    y_out = y_out + y_res
    y_out = conv2d(pixel_shuffle(y_out, 2), P['yout'])
    y_out = y_out.astype(jnp.float32) + residual[..., :1]

    c_out = conv2d(c_cat, P['c_mid'], prelu_alpha=P['c_mid_a'])
    c_res = c_out
    c_out = conv2d(c_out, P['c_mid2'], prelu_alpha=P['c_mid2_a'])
    c_out = c_out + c_res
    c_up = conv2d(pixel_shuffle(c_out, 2), P['cout1'])
    c_out = conv2d(pixel_shuffle(c_up, 2), P['cout2'])
    c_out = c_out.astype(jnp.float32) + residual[..., 1:3]

    return ycbcr_to_rgb(jnp.concatenate([y_out, c_out], axis=-1))


# ----------------------------------------------------------------------------
if __name__ == "__main__":
    B, H, W = 2, 16, 16          # spatial must be a multiple of 16
    key = jax.random.PRNGKey(0)
    k_in, _ = jax.random.split(key)
    # PyTorch-style NCHW input: 3 RGB channels + 1 jpeg-grid channel
    x_nchw = jax.random.uniform(k_in, (B, 4, H, W), jnp.float32)
    x_nhwc = jnp.transpose(x_nchw, (0, 2, 3, 1))

    params = init_netg(KeyGen(0))

    out_nhwc = netg_forward(params, x_nhwc)
    out_nchw = jnp.transpose(out_nhwc, (0, 3, 1, 2))
    out_nchw = jax.block_until_ready(out_nchw)

    assert out_nchw.shape == (B, 3, H, W), out_nchw.shape
    assert out_nchw.dtype == jnp.float32
    assert bool(jnp.all(jnp.isfinite(out_nchw)))
    print("KERNEL_OK")
</pallas_src>

<mosaic_0001>
module attributes {stable_mosaic.version = 11 : i64} {
  func.func @_conv_tap_kernel(%arg0: i32, %arg1: i32, %arg2: memref<1x1xf32, #tpu.memory_space<smem>>, %arg3: memref<2x90x512xbf16, #tpu.memory_space<vmem>>, %arg4: memref<2048x128xbf16, #tpu.memory_space<vmem>>, %arg5: memref<2x72x128xbf16, #tpu.memory_space<vmem>>) attributes {dimension_semantics = [#tpu.dimension_semantics<parallel>, #tpu.dimension_semantics<parallel>], iteration_bounds = array<i64: 1, 1>, scalar_prefetch = 0 : i64, scratch_operands = 0 : i64, tpu.core_type = #tpu.core_type<tc>, window_params = [{transform_indices = @transform_0, window_bounds = array<i64: 1, 1>}, {transform_indices = @transform_1, window_bounds = array<i64: 2, 90, 512>}, {transform_indices = @transform_2, window_bounds = array<i64: 2048, 128>}, {transform_indices = @transform_3, window_bounds = array<i64: 2, 72, 128>}]} {
    %c0 = arith.constant 0 : index
    %c0_0 = arith.constant 0 : index
    %c0_1 = arith.constant 0 : index
    %0 = vector.load %arg3[%c0, %c0_0, %c0_1] : memref<2x90x512xbf16, #tpu.memory_space<vmem>>, vector<1x72x512xbf16>
    %1 = vector.shape_cast %0 : vector<1x72x512xbf16> to vector<72x512xbf16>
    %c0_2 = arith.constant 0 : index
    %c0_3 = arith.constant 0 : index
    %2 = vector.load %arg4[%c0_2, %c0_3] : memref<2048x128xbf16, #tpu.memory_space<vmem>>, vector<512x128xbf16>
    %cst = arith.constant dense<0.000000e+00> : vector<72x128xf32>
    %3 = tpu.matmul %1, %2, %cst {dimension_numbers = #tpu.dot_dimension_numbers<[1], [0], [0], [1], [0, 0, 1, 1], [], []>} : vector<72x512xbf16>, vector<512x128xbf16>, vector<72x128xf32> -> vector<72x128xf32>
    %c0_4 = arith.constant 0 : index
    %c1 = arith.constant 1 : index
    %c0_5 = arith.constant 0 : index
    %4 = vector.load %arg3[%c0_4, %c1, %c0_5] : memref<2x90x512xbf16, #tpu.memory_space<vmem>>, vector<1x72x512xbf16>
    %5 = vector.shape_cast %4 : vector<1x72x512xbf16> to vector<72x512xbf16>
    %c512 = arith.constant 512 : index
    %c0_6 = arith.constant 0 : index
    %6 = vector.load %arg4[%c512, %c0_6] : memref<2048x128xbf16, #tpu.memory_space<vmem>>, vector<512x128xbf16>
    %cst_7 = arith.constant dense<0.000000e+00> : vector<72x128xf32>
    %7 = tpu.matmul %5, %6, %cst_7 {dimension_numbers = #tpu.dot_dimension_numbers<[1], [0], [0], [1], [0, 0, 1, 1], [], []>} : vector<72x512xbf16>, vector<512x128xbf16>, vector<72x128xf32> -> vector<72x128xf32>
    %8 = arith.addf %3, %7 : vector<72x128xf32>
    %c0_8 = arith.constant 0 : index
    %c9 = arith.constant 9 : index
    %c0_9 = arith.constant 0 : index
    %9 = vector.load %arg3[%c0_8, %c9, %c0_9] : memref<2x90x512xbf16, #tpu.memory_space<vmem>>, vector<1x72x512xbf16>
    %10 = vector.shape_cast %9 : vector<1x72x512xbf16> to vector<72x512xbf16>
    %c1024 = arith.constant 1024 : index
    %c0_10 = arith.constant 0 : index
    %11 = vector.load %arg4[%c1024, %c0_10] : memref<2048x128xbf16, #tpu.memory_space<vmem>>, vector<512x128xbf16>
    %cst_11 = arith.constant dense<0.000000e+00> : vector<72x128xf32>
    %12 = tpu.matmul %10, %11, %cst_11 {dimension_numbers = #tpu.dot_dimension_numbers<[1], [0], [0], [1], [0, 0, 1, 1], [], []>} : vector<72x512xbf16>, vector<512x128xbf16>, vector<72x128xf32> -> vector<72x128xf32>
    %13 = arith.addf %8, %12 : vector<72x128xf32>
    %c0_12 = arith.constant 0 : index
    %c10 = arith.constant 10 : index
    %c0_13 = arith.constant 0 : index
    %14 = vector.load %arg3[%c0_12, %c10, %c0_13] : memref<2x90x512xbf16, #tpu.memory_space<vmem>>, vector<1x72x512xbf16>
    %15 = vector.shape_cast %14 : vector<1x72x512xbf16> to vector<72x512xbf16>
    %c1536 = arith.constant 1536 : index
    %c0_14 = arith.constant 0 : index
    %16 = vector.load %arg4[%c1536, %c0_14] : memref<2048x128xbf16, #tpu.memory_space<vmem>>, vector<512x128xbf16>
    %cst_15 = arith.constant dense<0.000000e+00> : vector<72x128xf32>
    %17 = tpu.matmul %15, %16, %cst_15 {dimension_numbers = #tpu.dot_dimension_numbers<[1], [0], [0], [1], [0, 0, 1, 1], [], []>} : vector<72x512xbf16>, vector<512x128xbf16>, vector<72x128xf32> -> vector<72x128xf32>
    %18 = arith.addf %13, %17 : vector<72x128xf32>
    %19 = arith.truncf %18 : vector<72x128xf32> to vector<72x128xbf16>
    %c0_16 = arith.constant 0 : index
    %c0_17 = arith.constant 0 : index
    %c0_18 = arith.constant 0 : index
    %20 = vector.load %arg5[%c0_16, %c0_17, %c0_18] : memref<2x72x128xbf16, #tpu.memory_space<vmem>>, vector<1x72x128xbf16>
    %21 = vector.shape_cast %20 : vector<1x72x128xbf16> to vector<72x128xbf16>
    %22 = vector.shape_cast %19 : vector<72x128xbf16> to vector<1x72x128xbf16>
    tpu.vector_store %arg5[%c0_16, %c0_17, %c0_18], %22 {strides = array<i32>} : memref<2x72x128xbf16, #tpu.memory_space<vmem>>, vector<1x72x128xbf16>,
    %c1_19 = arith.constant 1 : index
    %c0_20 = arith.constant 0 : index
    %c0_21 = arith.constant 0 : index
    %23 = vector.load %arg3[%c1_19, %c0_20, %c0_21] : memref<2x90x512xbf16, #tpu.memory_space<vmem>>, vector<1x72x512xbf16>
    %24 = vector.shape_cast %23 : vector<1x72x512xbf16> to vector<72x512xbf16>
    %c0_22 = arith.constant 0 : index
    %c0_23 = arith.constant 0 : index
    %25 = vector.load %arg4[%c0_22, %c0_23] : memref<2048x128xbf16, #tpu.memory_space<vmem>>, vector<512x128xbf16>
    %cst_24 = arith.constant dense<0.000000e+00> : vector<72x128xf32>
    %26 = tpu.matmul %24, %25, %cst_24 {dimension_numbers = #tpu.dot_dimension_numbers<[1], [0], [0], [1], [0, 0, 1, 1], [], []>} : vector<72x512xbf16>, vector<512x128xbf16>, vector<72x128xf32> -> vector<72x128xf32>
    %c1_25 = arith.constant 1 : index
    %c1_26 = arith.constant 1 : index
    %c0_27 = arith.constant 0 : index
    %27 = vector.load %arg3[%c1_25, %c1_26, %c0_27] : memref<2x90x512xbf16, #tpu.memory_space<vmem>>, vector<1x72x512xbf16>
    %28 = vector.shape_cast %27 : vector<1x72x512xbf16> to vector<72x512xbf16>
    %c512_28 = arith.constant 512 : index
    %c0_29 = arith.constant 0 : index
    %29 = vector.load %arg4[%c512_28, %c0_29] : memref<2048x128xbf16, #tpu.memory_space<vmem>>, vector<512x128xbf16>
    %cst_30 = arith.constant dense<0.000000e+00> : vector<72x128xf32>
    %30 = tpu.matmul %28, %29, %cst_30 {dimension_numbers = #tpu.dot_dimension_numbers<[1], [0], [0], [1], [0, 0, 1, 1], [], []>} : vector<72x512xbf16>, vector<512x128xbf16>, vector<72x128xf32> -> vector<72x128xf32>
    %31 = arith.addf %26, %30 : vector<72x128xf32>
    %c1_31 = arith.constant 1 : index
    %c9_32 = arith.constant 9 : index
    %c0_33 = arith.constant 0 : index
    %32 = vector.load %arg3[%c1_31, %c9_32, %c0_33] : memref<2x90x512xbf16, #tpu.memory_space<vmem>>, vector<1x72x512xbf16>
    %33 = vector.shape_cast %32 : vector<1x72x512xbf16> to vector<72x512xbf16>
    %c1024_34 = arith.constant 1024 : index
    %c0_35 = arith.constant 0 : index
    %34 = vector.load %arg4[%c1024_34, %c0_35] : memref<2048x128xbf16, #tpu.memory_space<vmem>>, vector<512x128xbf16>
    %cst_36 = arith.constant dense<0.000000e+00> : vector<72x128xf32>
    %35 = tpu.matmul %33, %34, %cst_36 {dimension_numbers = #tpu.dot_dimension_numbers<[1], [0], [0], [1], [0, 0, 1, 1], [], []>} : vector<72x512xbf16>, vector<512x128xbf16>, vector<72x128xf32> -> vector<72x128xf32>
    %36 = arith.addf %31, %35 : vector<72x128xf32>
    %c1_37 = arith.constant 1 : index
    %c10_38 = arith.constant 10 : index
    %c0_39 = arith.constant 0 : index
    %37 = vector.load %arg3[%c1_37, %c10_38, %c0_39] : memref<2x90x512xbf16, #tpu.memory_space<vmem>>, vector<1x72x512xbf16>
    %38 = vector.shape_cast %37 : vector<1x72x512xbf16> to vector<72x512xbf16>
    %c1536_40 = arith.constant 1536 : index
    %c0_41 = arith.constant 0 : index
    %39 = vector.load %arg4[%c1536_40, %c0_41] : memref<2048x128xbf16, #tpu.memory_space<vmem>>, vector<512x128xbf16>
    %cst_42 = arith.constant dense<0.000000e+00> : vector<72x128xf32>
    %40 = tpu.matmul %38, %39, %cst_42 {dimension_numbers = #tpu.dot_dimension_numbers<[1], [0], [0], [1], [0, 0, 1, 1], [], []>} : vector<72x512xbf16>, vector<512x128xbf16>, vector<72x128xf32> -> vector<72x128xf32>
    %41 = arith.addf %36, %40 : vector<72x128xf32>
    %42 = arith.truncf %41 : vector<72x128xf32> to vector<72x128xbf16>
    %c1_43 = arith.constant 1 : index
    %c0_44 = arith.constant 0 : index
    %c0_45 = arith.constant 0 : index
    %43 = vector.load %arg5[%c1_43, %c0_44, %c0_45] : memref<2x72x128xbf16, #tpu.memory_space<vmem>>, vector<1x72x128xbf16>
    %44 = vector.shape_cast %43 : vector<1x72x128xbf16> to vector<72x128xbf16>
    %45 = vector.shape_cast %42 : vector<72x128xbf16> to vector<1x72x128xbf16>
    tpu.vector_store %arg5[%c1_43, %c0_44, %c0_45], %45 {strides = array<i32>} : memref<2x72x128xbf16, #tpu.memory_space<vmem>>, vector<1x72x128xbf16>,
    return
  }
  func.func @transform_0(%arg0: i32, %arg1: i32) -> (i32, i32) {
    %c0_i32 = arith.constant 0 : i32
    %c0_i32_0 = arith.constant 0 : i32
    %c0_i32_1 = arith.constant 0 : i32
    return %c0_i32, %c0_i32_0 : i32, i32
  }
  func.func @transform_1(%arg0: i32, %arg1: i32) -> (i32, i32, i32) {
    %c0_i32 = arith.constant 0 : i32
    %c0_i32_0 = arith.constant 0 : i32
    %c0_i32_1 = arith.constant 0 : i32
    return %arg1, %c0_i32, %c0_i32_0 : i32, i32, i32
  }
  func.func @transform_2(%arg0: i32, %arg1: i32) -> (i32, i32) {
    %c0_i32 = arith.constant 0 : i32
    %c0_i32_0 = arith.constant 0 : i32
    return %c0_i32, %arg0 : i32, i32
  }
  func.func @transform_3(%arg0: i32, %arg1: i32) -> (i32, i32, i32) {
    %c0_i32 = arith.constant 0 : i32
    %c0_i32_0 = arith.constant 0 : i32
    return %arg1, %c0_i32, %arg0 : i32, i32, i32
  }
}

</mosaic_0001>

<bundles_post_ra>
// kernel: tpu_custom_call.1
= control target key start
LH: loop header
LB: loop body
LE: loop exit
PB: predicated region body
PF: predicated region fallthrough
CT: control target
= control target key end

     0   :  { %9 = vsyncpa [#allocation4], 0  ;;  %s7547_s0 = inlined_call_operand.<no memory space> [shape: f32[1,1], index: 0, kind: input, shape index: {}]   ;;  %s7548_s1 = inlined_call_operand.vmem [shape: bf16[2,90,512], index: 1, kind: input, shape index: {}]   ;;  %s7549_s2 = inlined_call_operand.hbm [shape: bf16[2048,128], index: 2, kind: input, shape index: {}]   ;;  %s7550_s3 = inlined_call_operand.hbm [shape: bf16[2,72,128], index: 3, kind: output, shape index: {}]  }
   0x1   :  { %10 = vsyncpa [#allocation5], 0  ;;  %s6294_s12 = smov [#allocation3]  }
   0x2   :  { %s20_s13 = sshll.u32 %s6294_s12, 4  ;;  %s21_s13 = int_to_ptr.vmem [resolvable:$true] %s20_s13 }
   0x3   :  { %s6258_s14 = scalar_lea.vmem %s21_s13, 16384  ;;  %p6263_p1 = scmp.lt.s32.totalorder %s21_s13, %s21_s13 }
   0x4   :  { %p6259_p0 = scmp.ne.s32.totalorder %s21_s13, %s6258_s14  ;;  %p6264_p2 = scmp.lt.s32.totalorder %s6258_s14, %s6258_s14 }
   0x6   :  { %p6265_p3 = por %p6264_p2, %p6263_p1 }
   0x8   :  { %p6266_p4 = pnand %p6265_p3, %p6259_p0 }
   0xa   :  { %6269 = shalt.err (!%p6266_p4)
}
   0xb   :  { %s6295_s0 = smov 64   ;;  %s6296_s15 = smov 4  }
   0xc   :  { %26 = dma.hbm_to_vmem [thread:$0]  %s7549_s2, 16384, %s21_s13, [#allocation4], %s6295_s0, %s6295_s0, %s6296_s15  }
   0xd   :  { %6290 = dma.done.wait [#allocation4], 16384  }
   0xe   :  { %6291 = vsyncadd [#allocation4], 4294950912  ;;  %v5885_v0 = vld [vmem:[#allocation3 + $0x178] sm:$0xff]   ;;  %v5889_v4 = vld [vmem:[#allocation3 + $0x170] sm:$0xff]   ;;  %vm259_vm0 = vsmask.f32 7424 }
   0xf   :  { %v5886_v1 = vld [vmem:[#allocation3 + $0x1f8] sm:$0xff]   ;;  %5145 = vmatprep.subr.bf16.mxu0 %v5885_v0  ;;  %v5890_v5 = vld [vmem:[#allocation3 + $0x1f0] sm:$0xff]   ;;  %v5893_v8 = vld [vmem:[#allocation3 + $0x168] sm:$0xff]   ;;  %vm1893_vm1 = vcmask 1046528  }
  0x10   :  { %v5887_v2 = vld [vmem:[#allocation3 + $0x138] sm:$0xff]   ;;  %5191 = vmatprep.subr.bf16.mxu1 %v5886_v1  ;;  %v5891_v6 = vld [vmem:[#allocation3 + $0x130] sm:$0xff]   ;;  %v5894_v9 = vld [vmem:[#allocation3 + $0x1e8] sm:$0xff]  }
  0x11   :  { %v5888_v3 = vld [vmem:[#allocation3 + $0x1b8] sm:$0xff]   ;;  %5146 = vmatpush3.bf16.msra.mxu0 %v5887_v2  ;;  %v5892_v7 = vld [vmem:[#allocation3 + $0x1b0] sm:$0xff]   ;;  %v5895_v10 = vld [vmem:[#allocation3 + $0x128] sm:$0xff]  }
  0x12   :  { %5192 = vmatpush3.bf16.msra.mxu1 %v5888_v3  ;;  %5147 = vmatprep.subr.bf16.mxu0 %v5889_v4  ;;  %v5896_v11 = vld [vmem:[#allocation3 + $0x1a8] sm:$0xff]   ;;  %v5897_v12 = vld [vmem:[#allocation3 + $0x160] sm:$0xff]   ;;  %v5901_v16 = vld [vmem:[#allocation3 + $0x158] sm:$0xff]  }
  0x13   :  { %5193 = vmatprep.subr.bf16.mxu1 %v5890_v5  ;;  %v5898_v13 = vld [vmem:[#allocation3 + $0x1e0] sm:$0xff]   ;;  %v5902_v17 = vld [vmem:[#allocation3 + $0x1d8] sm:$0xff]   ;;  %v5905_v20 = vld [vmem:[#allocation3 + $0x150] sm:$0xff]  }
  0x14   :  { %v5899_v14 = vld [vmem:[#allocation3 + $0x120] sm:$0xff]   ;;  %v5903_v18 = vld [vmem:[#allocation3 + $0x118] sm:$0xff]   ;;  %v5906_v21 = vld [vmem:[#allocation3 + $0x1d0] sm:$0xff]  }
  0x15   :  { %5148 = vmatpush3.bf16.msra.mxu0 %v5891_v6  ;;  %v5900_v15 = vld [vmem:[#allocation3 + $0x1a0] sm:$0xff]   ;;  %v5904_v19 = vld [vmem:[#allocation3 + $0x198] sm:$0xff]   ;;  %v5907_v22 = vld [vmem:[#allocation3 + $0x110] sm:$0xff]  }
  0x16   :  { %5194 = vmatpush3.bf16.msra.mxu1 %v5892_v7  ;;  %5149 = vmatprep.subr.bf16.mxu0 %v5893_v8  ;;  %v5908_v23 = vld [vmem:[#allocation3 + $0x190] sm:$0xff]   ;;  %v5909_v24 = vld [vmem:[#allocation3 + $0x148] sm:$0xff]   ;;  %v5913_v28 = vld [vmem:[#allocation3 + $0x140] sm:$0xff]  }
  0x17   :  { %5195 = vmatprep.subr.bf16.mxu1 %v5894_v9  ;;  %v5910_v25 = vld [vmem:[#allocation3 + $0x1c8] sm:$0xff]   ;;  %v5914_v29 = vld [vmem:[#allocation3 + $0x1c0] sm:$0xff]   ;;  %v6330_v33 = vld [vmem:[%s7548_s1 + $0x10] sm:$0xff] }
  0x18   :  { %v5911_v26 = vld [vmem:[#allocation3 + $0x108] sm:$0xff]   ;;  %v5915_v30 = vld [vmem:[#allocation3 + $0x100] sm:$0xff]   ;;  %v6340_v35 = vld [vmem:[%s7548_s1 + $0x30] sm:$0xff] }
  0x19   :  { %5150 = vmatpush3.bf16.msra.mxu0 %v5895_v10  ;;  %v5912_v27 = vld [vmem:[#allocation3 + $0x188] sm:$0xff]   ;;  %v5916_v31 = vld [vmem:[#allocation3 + $0x180] sm:$0xff]   ;;  %v6351_v38 = vld [vmem:[%s7548_s1 + $0x18] sm:$0xff] }
  0x1a   :  { %5196 = vmatpush3.bf16.msra.mxu1 %v5896_v11  ;;  %5151 = vmatprep.subr.bf16.mxu0 %v5897_v12  ;;  %v31_v32 = vld [vmem:[%s7548_s1] sm:$0xff]  ;;  %v32_v37 = vld [vmem:[%s7548_s1 + $0x8] sm:$0xff]  ;;  %v6368_v42 = vld [vmem:[%s7548_s1 + $0x38] sm:$0xff] }
  0x1b   :  { %5197 = vmatprep.subr.bf16.mxu1 %v5898_v13  ;;  %v6335_v34 = vld [vmem:[%s7548_s1 + $0x20] sm:$0xff]  ;;  %v6343_v36 = vcombine.high %v31_v32, %v6330_v33  ;;  %v6354_v39 = vcombine.low %v31_v32, %v6330_v33  ;;  %v6363_v41 = vld [vmem:[%s7548_s1 + $0x28] sm:$0xff]  ;;  %v6371_v43 = vcombine.high %v32_v37, %v6351_v38  ;;  %v6378_v45 = vcombine.low %v32_v37, %v6351_v38  ;;  %v5925_v50 = vld [vmem:[#allocation3 + $0x78] sm:$0xff]  }
  0x1c   :  { %v6358_v40 = vcombine.high %v6335_v34, %v6340_v35  ;;  %v6375_v44 = vcombine.low %v6335_v34, %v6340_v35  ;;  %v6384_v48 = vcombine.high %v6363_v41, %v6368_v42  ;;  %v6395_v58 = vcombine.low %v6363_v41, %v6368_v42  ;;  %v5926_v59 = vld [vmem:[#allocation3 + $0xf8] sm:$0xff]   ;;  %v5929_v10 = vld [vmem:[#allocation3 + $0x70] sm:$0xff]  }
  0x1d   :  { %5152 = vmatpush3.bf16.msra.mxu0 %v5899_v14  ;;  %v273_v46 = vshrl.u32 %v6343_v36, 16  ;;  %v275_v47 = vshll.u32 %v6343_v36, 16  ;;  %v261_v49 = vshrl.u32 %v6354_v39, 16  ;;  %v297_v52 = vshrl.u32 %v6371_v43, 16  ;;  %v5927_v7 = vld [vmem:[#allocation3 + $0x38] sm:$0xff]  }
  0x1e   :  { %5198 = vmatpush3.bf16.msra.mxu1 %v5900_v15  ;;  %5153 = vmatprep.subr.bf16.mxu0 %v5901_v16  ;;  %v280_v51 = vshll.u32 %v6358_v40, 16  ;;  %v299_v53 = vshll.u32 %v6371_v43, 16  ;;  %v263_v54 = vshll.u32 %v6354_v39, 16  ;;  %v304_v56 = vshll.u32 %v6384_v48, 16  ;;  %v5928_v14 = vld [vmem:[#allocation3 + $0xb8] sm:$0xff]   ;;  %v5930_v16 = vld [vmem:[#allocation3 + $0xf0] sm:$0xff]  }
  0x1f   :  { %5199 = vmatprep.subr.bf16.mxu1 %v5902_v17  ;;  %v277_v55 = vrot.slane %v275_v47, 1  ;;  %v268_v57 = vshll.u32 %v6375_v44, 16  ;;  %v285_v63 = vshrl.u32 %v6378_v45, 16  ;;  %v287_v3 = vshll.u32 %v6378_v45, 16 }
  0x20   :  { %v282_v60 = vrot.slane %v280_v51, 1  ;;  %v301_v61 = vrot.slane %v299_v53, 1  ;;  %v265_v62 = vrot.slane %v263_v54, 1  ;;  %v306_v1 = vrot.slane %v304_v56, 1  ;;  %v5939_v53 = vld [vmem:[#allocation3 + $0x28] sm:$0xff]  }
  0x21   :  { %5154 = vmatpush3.bf16.msra.mxu0 %v5903_v18  ;;  %v278_v0 = vor.u32 %v277_v55, %v273_v46  ;;  %v270_v2 = vrot.slane %v268_v57, 1  ;;  %v292_v6 = vshll.u32 %v6395_v58, 16  ;;  %v289_v9 = vrot.slane %v287_v3, 1  ;;  %v5931_v18 = vld [vmem:[#allocation3 + $0x30] sm:$0xff]  }
  0x22   :  { %5200 = vmatpush3.bf16.msra.mxu1 %v5904_v19  ;;  %5155 = vmatprep.subr.bf16.mxu0 %v5905_v20  ;;  %v302_v4 = vor.u32 %v301_v61, %v297_v52  ;;  %v266_v5 = vor.u32 %v265_v62, %v261_v49  ;;  %v316_v17 = vshrl.u32 %v6358_v40, 16  ;;  %v332_v19 = vshrl.u32 %v6384_v48, 16  ;;  %v5937_v49 = vld [vmem:[#allocation3 + $0x68] sm:$0xff]  }
  0x23   :  { %5201 = vmatprep.subr.bf16.mxu1 %v5906_v21  ;;  %v283_v8 = vsel %vm259_vm0, %v278_v0, %v282_v60  ;;  %v294_v13 = vrot.slane %v292_v6, 1  ;;  %v290_v15 = vor.u32 %v289_v9, %v285_v63  ;;  %v5932_v21 = vld [vmem:[#allocation3 + $0xb0] sm:$0xff]   ;;  %v5938_v52 = vld [vmem:[#allocation3 + $0xe8] sm:$0xff]  }
  0x24   :  { %660 = vmatprep.mubr.bf16.mxu0 %v283_v8  ;;  %v307_v11 = vsel %vm259_vm0, %v302_v4, %v306_v1  ;;  %v271_v12 = vsel %vm259_vm0, %v266_v5, %v270_v2  ;;  %v334_v37 = vor.u32 %v332_v19, %v306_v1  ;;  %v5940_v63 = vld [vmem:[#allocation3 + $0xa8] sm:$0xff]   ;;  %v6467_v4 = vld [vmem:[%s7548_s1 + $0x78] sm:$0xff] }
  0x25   :  { %5156 = vmatpush3.bf16.msra.mxu0 %v5907_v22  ;;  %732 = vmatprep.mubr.bf16.mxu1 %v307_v11  ;;  %v295_v20 = vsel %vm259_vm0, %v290_v15, %v294_v13  ;;  %v39_v22 = vld [vmem:[%s7548_s1 + $0x40] sm:$0xff] }
  0x26   :  { %5202 = vmatpush3.bf16.msra.mxu1 %v5908_v23  ;;  %5157 = vmatprep.subr.bf16.mxu0 %v5909_v24  ;;  %v6412_v23 = vld [vmem:[%s7548_s1 + $0x50] sm:$0xff]  ;;  %v40_v24 = vld [vmem:[%s7548_s1 + $0x48] sm:$0xff]  ;;  %v6442_v54 = vcombine.high %v6340_v35, %v39_v22  ;;  %v5944_v15 = vld [vmem:[#allocation3 + $0xe0] sm:$0xff]  }
  0x27   :  { %5203 = vmatprep.subr.bf16.mxu1 %v5910_v25  ;;  %v308_v25 = vshrl.u32 %v6375_v44, 16  ;;  %v6445_v55 = vcombine.low %v6368_v42, %v40_v24 }
  0x29   :  { %5158 = vmatpush3.bf16.msra.mxu0 %v5911_v26  ;;  %v324_v26 = vshrl.u32 %v6395_v58, 16  ;;  %v310_v46 = vor.u32 %v308_v25, %v270_v2  ;;  %v6458_v2 = vld [vmem:[%s7548_s1 + $0x70] sm:$0xff]  ;;  %v5948_v25 = vld [vmem:[#allocation3 + $0xa0] sm:$0xff]  }
  0x2a   :  { %5204 = vmatpush3.bf16.msra.mxu1 %v5912_v27  ;;  %5159 = vmatprep.subr.bf16.mxu0 %v5913_v28  ;;  %v6420_v27 = vcombine.high %v39_v22, %v6412_v23  ;;  %v318_v28 = vor.u32 %v316_v17, %v282_v60  ;;  %v6450_v60 = vcombine.high %v6368_v42, %v40_v24  ;;  %v44_v42 = vld [vmem:[%s7548_s1 + $0x68] sm:$0xff] }
  0x2b   :  { %5205 = vmatprep.subr.bf16.mxu1 %v5914_v29  ;;  %v6425_v29 = vld [vmem:[%s7548_s1 + $0x58] sm:$0xff]  ;;  %v326_v57 = vor.u32 %v324_v26, %v294_v13 }
  0x2c   :  { %v6434_v32 = vcombine.high %v40_v24, %v6425_v29  ;;  %v6437_v47 = vcombine.low %v40_v24, %v6425_v29  ;;  %v348_v3 = vshrl.u32 %v6420_v27, 16  ;;  %v5947_v24 = vld [vmem:[#allocation3 + $0x20] sm:$0xff]   ;;  %v6494_v26 = vcombine.high %v6425_v29, %v44_v42 }
  0x2d   :  { %5160 = vmatpush3.bf16.msra.mxu0 %v5915_v30  ;;  %v6428_v30 = vcombine.low %v39_v22, %v6412_v23 }
  0x2e   :  { %5206 = vmatpush3.bf16.msra.mxu1 %v5916_v31  ;;  %5237 = vmatprep.subr.bf16.mxu0 %v5925_v50  ;;  %v6431_v31 = vcombine.low %v6340_v35, %v39_v22  ;;  %v320_v50 = vshll.u32 %v6420_v27, 16  ;;  %v336_v56 = vshll.u32 %v6434_v32, 16  ;;  %v43_v35 = vld [vmem:[%s7548_s1 + $0x60] sm:$0xff]  ;;  %v364_v9 = vshrl.u32 %v6434_v32, 16 }
  0x2f   :  { %5283 = vmatprep.subr.bf16.mxu1 %v5926_v59  ;;  %v312_v51 = vshll.u32 %v6428_v30, 16  ;;  %v328_v59 = vshll.u32 %v6437_v47, 16  ;;  %v6470_v5 = vcombine.high %v6412_v23, %v43_v35  ;;  %v6475_v8 = vcombine.high %v43_v35, %v6458_v2 }
  0x30   :  { %661 = vmatmul.mubr.bf16.vlgmr.msra.gmra.mxu0 %v271_v12  ;;  %v322_v61 = vrot.slane %v320_v50, 1  ;;  %v338_v0 = vrot.slane %v336_v56, 1  ;;  %v340_v19 = vshrl.u32 %v6428_v30, 16  ;;  %v356_v22 = vshrl.u32 %v6437_v47, 16  ;;  %v5950_v56 = vld [vmem:[#allocation3 + $0xd8] sm:$0xff]  }
  0x31   :  { %5238 = vmatpush3.bf16.msra.mxu0 %v5927_v7  ;;  %733 = vmatmul.mubr.bf16.vlgmr.msra.gmra.mxu1 %v295_v20  ;;  %v314_v62 = vrot.slane %v312_v51, 1  ;;  %v330_v1 = vrot.slane %v328_v59, 1 }
  0x32   :  { %5239 = vmatprep.subr.bf16.mxu0 %v5929_v10  ;;  %5284 = vmatpush3.bf16.msra.mxu1 %v5928_v14  ;;  %v323_v6 = vsel %vm259_vm0, %v318_v28, %v322_v61  ;;  %v5943_v10 = vld [vmem:[#allocation3 + $0x60] sm:$0xff]   ;;  %v339_v11 = vsel %vm259_vm0, %v334_v37, %v338_v0  ;;  %v350_v13 = vor.u32 %v348_v3, %v322_v61 }
  0x33   :  { %5285 = vmatprep.subr.bf16.mxu1 %v5930_v16  ;;  %v315_v7 = vsel %vm259_vm0, %v310_v46, %v314_v62  ;;  %668 = vmatprep.mubr.bf16.mxu0 %v323_v6  ;;  %v331_v12 = vsel %vm259_vm0, %v326_v57, %v330_v1  ;;  %v6481_v14 = vcombine.high %v44_v42, %v6467_v4  ;;  %v352_v16 = vshll.u32 %v6475_v8, 16  ;;  %v6520_v6 = vld [vmem:[%s7548_s1 + $0x88] sm:$0xff] }
  0x34   :  { %740 = vmatprep.mubr.bf16.mxu1 %v339_v11  ;;  %v366_v17 = vor.u32 %v364_v9, %v338_v0  ;;  %v342_v37 = vor.u32 %v340_v19, %v314_v62  ;;  %v358_v51 = vor.u32 %v356_v22, %v330_v1  ;;  %v6502_v57 = vcombine.low %v6425_v29, %v44_v42  ;;  %v5951_v62 = vld [vmem:[#allocation3 + $0x18] sm:$0xff]   ;;  %v6510_v1 = vld [vmem:[%s7548_s1 + $0x80] sm:$0xff] }
  0x35   :  { %5240 = vmatpush3.bf16.msra.mxu0 %v5931_v18  ;;  %v6485_v18 = vcombine.low %v43_v35, %v6458_v2  ;;  %v368_v20 = vshll.u32 %v6481_v14, 16  ;;  %v354_v28 = vrot.slane %v352_v16, 1  ;;  %v380_v29 = vshrl.u32 %v6475_v8, 16 }
  0x36   :  { %5241 = vmatprep.subr.bf16.mxu0 %v5937_v49  ;;  %5286 = vmatpush3.bf16.msra.mxu1 %v5932_v21  ;;  %v6490_v21 = vcombine.low %v44_v42, %v6467_v4  ;;  %v6498_v49 = vcombine.low %v6412_v23, %v43_v35  ;;  %v5952_v35 = vld [vmem:[#allocation3 + $0x98] sm:$0xff]   ;;  %v113_v42 = vld [vmem:[%s7548_s1 + $0x90] sm:$0x11]  ;;  %v396_v9 = vshrl.u32 %v6481_v14, 16 }
  0x37   :  { %5287 = vmatprep.subr.bf16.mxu1 %v5938_v52  ;;  %v344_v46 = vshll.u32 %v6485_v18, 16  ;;  %v370_v50 = vrot.slane %v368_v20, 1  ;;  %v355_v59 = vsel %vm259_vm0, %v350_v13, %v354_v28  ;;  %v5957_v13 = vld [vmem:[#allocation3 + $0x50] sm:$0xff]   ;;  %v372_v16 = vshrl.u32 %v6485_v18, 16 }
  0x38   :  { %669 = vmatmul.mubr.bf16.gmra.mxu0 %v315_v7  ;;  %v360_v52 = vshll.u32 %v6490_v21, 16  ;;  %v114_v7 = vld [vmem:[%s7548_s1 + $0x98] sm:$0x11]  ;;  %v388_v19 = vshrl.u32 %v6490_v21, 16 }
  0x39   :  { %5242 = vmatpush3.bf16.msra.mxu0 %v5939_v53  ;;  %741 = vmatmul.mubr.bf16.gmra.mxu1 %v331_v12  ;;  %v5949_v53 = vld [vmem:[#allocation3 + $0x58] sm:$0xff]   ;;  %v346_v61 = vrot.slane %v344_v46, 1  ;;  %v4687_v11 = vcombine.high %v6520_v6, %v114_v7  ;;  %v4684_v12 = vcombine.low %v6510_v1, %v113_v42  ;;  %v398_v22 = vor.u32 %v396_v9, %v370_v50 }
  0x3a   :  { %5243 = vmatprep.subr.bf16.mxu0 %v5943_v10  ;;  %5288 = vmatpush3.bf16.msra.mxu1 %v5940_v63  ;;  %v371_v63 = vsel %vm259_vm0, %v366_v17, %v370_v50  ;;  %v362_v23 = vrot.slane %v360_v52, 1  ;;  %v4685_v10 = vcombine.high %v6510_v1, %v113_v42  ;;  %v4686_v17 = vcombine.low %v6520_v6, %v114_v7  ;;  %v5961_v50 = vld [vmem:[#allocation3 + $0x48] sm:$0xff]  }
  0x3b   :  { %5289 = vmatprep.subr.bf16.mxu1 %v5944_v15  ;;  %676 = vmatprep.mubr.bf16.mxu0 %v355_v59  ;;  %v347_v0 = vsel %vm259_vm0, %v342_v37, %v346_v61  ;;  %v382_v15 = vor.u32 %v380_v29, %v354_v28  ;;  %v5958_v37 = vld [vmem:[#allocation3 + $0xd0] sm:$0xff]   ;;  %v374_v46 = vor.u32 %v372_v16, %v346_v61  ;;  %v5962_v7 = vld [vmem:[#allocation3 + $0xc8] sm:$0xff]   ;;  %v413_v16 = vshrl.u32 %v4687_v11, 16 }
  0x3c   :  { %748 = vmatprep.mubr.bf16.mxu1 %v371_v63  ;;  %v363_v3 = vsel %vm259_vm0, %v358_v51, %v362_v23  ;;  %v384_v20 = vshll.u32 %v4685_v10, 16  ;;  %v390_v51 = vor.u32 %v388_v19, %v362_v23  ;;  %v392_v52 = vshll.u32 %v4686_v17, 16 }
  0x3d   :  { %5244 = vmatpush3.bf16.msra.mxu0 %v5947_v24  ;;  %v400_v24 = vshll.u32 %v4687_v11, 16  ;;  %v6534_v63 = vcombine.high %v6458_v2, %v6510_v1  ;;  %v6542_v61 = vcombine.low %v6458_v2, %v6510_v1  ;;  %v6546_v23 = vcombine.low %v6467_v4, %v6520_v6  ;;  %v5963_v2 = vld [vmem:[#allocation3 + $0x8] sm:$0xff]   ;;  %v5967_v11 = vld [vmem:[#allocation3] sm:$0xff]  }
  0x3e   :  { %5245 = vmatprep.subr.bf16.mxu0 %v5949_v53  ;;  %5290 = vmatpush3.bf16.msra.mxu1 %v5948_v25  ;;  %v376_v25 = vshll.u32 %v4684_v12, 16  ;;  %v5959_v53 = vld [vmem:[#allocation3 + $0x10] sm:$0xff]   ;;  %v407_v9 = vshrl.u32 %v4685_v10, 16  ;;  %v4757_v19 = vcombine.high %v6330_v33, %v6335_v34  ;;  %v5966_v10 = vld [vmem:[#allocation3 + $0xc0] sm:$0xff]  }
  0x3f   :  { %5291 = vmatprep.subr.bf16.mxu1 %v5950_v56  ;;  %v386_v56 = vrot.slane %v384_v20, 1  ;;  %v402_v59 = vrot.slane %v400_v24, 1  ;;  %v404_v20 = vshrl.u32 %v4684_v12, 16  ;;  %v410_v24 = vshrl.u32 %v4686_v17, 16  ;;  %v5969_v17 = vld [vmem:[#allocation3 + $0x278] sm:$0xff]  }
  0x40   :  { %677 = vmatmul.mubr.bf16.gmra.mxu0 %v347_v0  ;;  %v378_v28 = vrot.slane %v376_v25, 1  ;;  %v6538_v0 = vcombine.high %v6467_v4, %v6520_v6  ;;  %v5965_v25 = vld [vmem:[#allocation3 + $0x40] sm:$0xff]   ;;  %v4759_v12 = vcombine.high %v6351_v38, %v6363_v41 }
  0x41   :  { %5246 = vmatpush3.bf16.msra.mxu0 %v5951_v62  ;;  %749 = vmatmul.mubr.bf16.gmra.mxu1 %v363_v3  ;;  %v5960_v62 = vld [vmem:[#allocation3 + $0x90] sm:$0xff]   ;;  %v387_v29 = vsel %vm259_vm0, %v382_v15, %v386_v56  ;;  %v403_v3 = vsel %vm259_vm0, %v398_v22, %v402_v59  ;;  %v409_v4 = vor.u32 %v407_v9, %v386_v56  ;;  %v5964_v15 = vld [vmem:[#allocation3 + $0x88] sm:$0xff]  }
  0x42   :  { %5292 = vmatpush3.bf16.msra.mxu1 %v5952_v35  ;;  %5247 = vmatprep.subr.bf16.mxu0 %v5957_v13  ;;  %v394_v35 = vrot.slane %v392_v52, 1  ;;  %v379_v42 = vsel %vm259_vm0, %v374_v46, %v378_v28  ;;  %v415_v22 = vor.u32 %v413_v16, %v402_v59  ;;  %v1311_v46 = vshll.u32 %v4757_v19, 16  ;;  %v5968_v52 = vld [vmem:[#allocation3 + $0x80] sm:$0xff]  }
  0x43   :  { %5293 = vmatprep.subr.bf16.mxu1 %v5958_v37  ;;  %684 = vmatprep.mubr.bf16.mxu0 %v387_v29  ;;  %v1309_v37 = vshrl.u32 %v4757_v19, 16  ;;  %v5973_v19 = vld [vmem:[#allocation3 + $0x270] sm:$0xff]  }
  0x44   :  { %756 = vmatprep.mubr.bf16.mxu1 %v403_v3  ;;  %v395_v13 = vsel %vm259_vm0, %v390_v51, %v394_v35  ;;  %v406_v51 = vor.u32 %v404_v20, %v378_v28  ;;  %v412_v56 = vor.u32 %v410_v24, %v394_v35  ;;  %v1313_v59 = vrot.slane %v1311_v46, 1  ;;  %v5975_v24 = vld [vmem:[#allocation3 + $0x230] sm:$0xff]  }
  0x45   :  { %5248 = vmatpush3.bf16.msra.mxu0 %v5959_v53  ;;  %v1316_v53 = vshll.u32 %v6442_v54, 16  ;;  %v1333_v28 = vshrl.u32 %v4759_v12, 16  ;;  %v1335_v3 = vshll.u32 %v4759_v12, 16 }
  0x46   :  { %5294 = vmatpush3.bf16.msra.mxu1 %v5960_v62  ;;  %5249 = vmatprep.subr.bf16.mxu0 %v5961_v50  ;;  %v5970_v62 = vld [vmem:[#allocation3 + $0x2f8] sm:$0xff]   ;;  %v1314_v29 = vor.u32 %v1313_v59, %v1309_v37  ;;  %v5977_v37 = vld [vmem:[#allocation3 + $0x268] sm:$0xff]   ;;  %v1352_v59 = vshrl.u32 %v6442_v54, 16 }
  0x47   :  { %5295 = vmatprep.subr.bf16.mxu1 %v5962_v7  ;;  %v1318_v50 = vrot.slane %v1316_v53, 1  ;;  %v1340_v7 = vshll.u32 %v6450_v60, 16  ;;  %v1337_v9 = vrot.slane %v1335_v3, 1  ;;  %v5980_v53 = vld [vmem:[#allocation3 + $0x2a8] sm:$0xff]   ;;  %v1368_v3 = vshrl.u32 %v6450_v60, 16 }
  0x48   :  { %685 = vmatmul.mubr.bf16.gmra.mxu0 %v379_v42  ;;  %v4756_v42 = vcombine.low %v6330_v33, %v6335_v34  ;;  %v1304_v34 = vshll.u32 %v6431_v31, 16 }
  0x49   :  { %757 = vmatmul.mubr.bf16.gmra.mxu1 %v395_v13  ;;  %692 = vmatprep.mubr.bf16.mxu0 %v409_v4  ;;  %v6561_v35 = vsel %vm259_vm0, %v1314_v29, %v1318_v50  ;;  %v5971_v13 = vld [vmem:[#allocation3 + $0x238] sm:$0xff]   ;;  %v1342_v16 = vrot.slane %v1340_v7, 1  ;;  %v1338_v4 = vor.u32 %v1337_v9, %v1333_v28  ;;  %v5983_v29 = vld [vmem:[#allocation3 + $0x220] sm:$0xff]   ;;  %v1354_v28 = vor.u32 %v1352_v59, %v1318_v50 }
  0x4a   :  { %5250 = vmatpush3.bf16.msra.mxu0 %v5963_v2  ;;  %764 = vmatprep.mubr.bf16.mxu1 %v415_v22  ;;  %v5972_v2 = vld [vmem:[#allocation3 + $0x2b8] sm:$0xff]   ;;  %v1299_v20 = vshll.u32 %v4756_v42, 16  ;;  %v5974_v22 = vld [vmem:[#allocation3 + $0x2f0] sm:$0xff]   ;;  %v6001_v59 = vld [vmem:[#allocation3 + $0x240] sm:$0xff]  }
  0x4b   :  { %5296 = vmatpush3.bf16.msra.mxu1 %v5964_v15  ;;  %5251 = vmatprep.subr.bf16.mxu0 %v5965_v25  ;;  %v1297_v15 = vshrl.u32 %v4756_v42, 16  ;;  %v6568_v33 = vsel %vm259_vm0, %v1338_v4, %v1342_v16  ;;  %v5984_v42 = vld [vmem:[#allocation3 + $0x2a0] sm:$0xff]   ;;  %v5985_v9 = vld [vmem:[#allocation3 + $0x258] sm:$0xff]  }
  0x4c   :  { %5297 = vmatprep.subr.bf16.mxu1 %v5966_v10  ;;  %v1301_v25 = vrot.slane %v1299_v20, 1  ;;  %v1306_v10 = vrot.slane %v1304_v34, 1 }
  0x4e   :  { %5252 = vmatpush3.bf16.msra.mxu0 %v5967_v11  ;;  %v1302_v11 = vor.u32 %v1301_v25, %v1297_v15  ;;  %v5988_v15 = vld [vmem:[#allocation3 + $0x298] sm:$0xff]  }
  0x4f   :  { %5298 = vmatpush3.bf16.msra.mxu1 %v5968_v52  ;;  %5329 = vmatprep.subr.bf16.mxu0 %v5969_v17  ;;  %v5979_v52 = vld [vmem:[#allocation3 + $0x228] sm:$0xff]  }
  0x50   :  { %693 = vmatmul.mubr.bf16.gmra.mxu0 %v406_v51  ;;  %5375 = vmatprep.subr.bf16.mxu1 %v5970_v62  ;;  %v6575_v51 = vsel %vm259_vm0, %v1302_v11, %v1306_v10  ;;  %v1356_v62 = vshll.u32 %v6470_v5, 16  ;;  %v1384_v11 = vshrl.u32 %v6470_v5, 16 }
  0x51   :  { %765 = vmatmul.mubr.bf16.gmra.mxu1 %v412_v56  ;;  %1020 = vmatprep.mubr.bf16.mxu0 %v6343_v36  ;;  %v4758_v36 = vcombine.low %v6351_v38, %v6363_v41  ;;  %v5978_v41 = vld [vmem:[#allocation3 + $0x2e8] sm:$0xff]   ;;  %v5981_v56 = vld [vmem:[#allocation3 + $0x260] sm:$0xff]  }
  0x52   :  { %1092 = vmatprep.mubr.bf16.mxu1 %v6371_v43  ;;  %v5976_v43 = vld [vmem:[#allocation3 + $0x2b0] sm:$0xff]   ;;  %v1358_v7 = vrot.slane %v1356_v62, 1  ;;  %v1376_v62 = vshrl.u32 %v6498_v49, 16 }
  0x53   :  { %v1321_v46 = vshrl.u32 %v4758_v36, 16  ;;  %v1323_v38 = vshll.u32 %v4758_v36, 16  ;;  %v5990_v36 = vld [vmem:[#allocation3 + $0x2d0] sm:$0xff]  }
  0x54   :  { %v6591_v50 = vsel %vm259_vm0, %v1354_v28, %v1358_v7 }
  0x58   :  { %1021 = vmatmul.mubr.bf16.vlgmr.msra.gmra.mxu0 %v6354_v39  ;;  %v1328_v39 = vshll.u32 %v6445_v55, 16 }
  0x59   :  { %1093 = vmatmul.mubr.bf16.vlgmr.msra.gmra.mxu1 %v6378_v45  ;;  %5330 = vmatpush3.bf16.msra.mxu0 %v5971_v13  ;;  %v1325_v45 = vrot.slane %v1323_v38, 1  ;;  %v1370_v13 = vor.u32 %v1368_v3, %v1342_v16  ;;  %v5989_v16 = vld [vmem:[#allocation3 + $0x250] sm:$0xff]   ;;  %v6003_v3 = vld [vmem:[#allocation3 + $0x200] sm:$0xff]  }
  0x5a   :  { %5376 = vmatpush3.bf16.msra.mxu1 %v5972_v2  ;;  %5331 = vmatprep.subr.bf16.mxu0 %v5973_v19  ;;  %v1330_v12 = vrot.slane %v1328_v39, 1  ;;  %v1372_v2 = vshll.u32 %v6494_v26, 16  ;;  %v1344_v19 = vshrl.u32 %v6431_v31, 16  ;;  %v1388_v39 = vshll.u32 %v6534_v63, 16 }
  0x5b   :  { %5377 = vmatprep.subr.bf16.mxu1 %v5974_v22  ;;  %1028 = vmatprep.mubr.bf16.mxu0 %v6358_v40  ;;  %v1326_v17 = vor.u32 %v1325_v45, %v1321_v46  ;;  %v5982_v40 = vld [vmem:[#allocation3 + $0x2e0] sm:$0xff]   ;;  %v1360_v22 = vshrl.u32 %v6445_v55, 16  ;;  %v5993_v46 = vld [vmem:[#allocation3 + $0x248] sm:$0xff]   ;;  %v4721_v45 = vcombine.high %v6510_v1, %v6510_v1 }
  0x5c   :  { %1100 = vmatprep.mubr.bf16.mxu1 %v6384_v48  ;;  %v1374_v4 = vrot.slane %v1372_v2, 1  ;;  %v1346_v20 = vor.u32 %v1344_v19, %v1306_v10  ;;  %v5992_v10 = vld [vmem:[#allocation3 + $0x290] sm:$0xff]   ;;  %v1392_v2 = vshrl.u32 %v6502_v57, 16  ;;  %v6014_v19 = vld [vmem:[#allocation3 + $0x3f8] sm:$0xff]  }
  0x5d   :  { %5332 = vmatpush3.bf16.msra.mxu0 %v5975_v24  ;;  %v6583_v48 = vsel %vm259_vm0, %v1326_v17, %v1330_v12  ;;  %v5991_v24 = vld [vmem:[#allocation3 + $0x210] sm:$0xff]   ;;  %v1362_v25 = vor.u32 %v1360_v22, %v1330_v12  ;;  %v5998_v12 = vld [vmem:[#allocation3 + $0x288] sm:$0xff]   ;;  %v1404_v17 = vshll.u32 %v6538_v0, 16 }
  0x5e   :  { %5378 = vmatpush3.bf16.msra.mxu1 %v5976_v43  ;;  %5333 = vmatprep.subr.bf16.mxu0 %v5977_v37  ;;  %v1364_v43 = vshll.u32 %v6502_v57, 16  ;;  %v6017_v22 = vld [vmem:[#allocation3 + $0x370] sm:$0xff]  }
  0x5f   :  { %5379 = vmatprep.subr.bf16.mxu1 %v5978_v41  ;;  %v1386_v41 = vor.u32 %v1384_v11, %v1358_v7  ;;  %v6626_v28 = vrot.slane %v1404_v17, 1  ;;  %v1380_v7 = vshll.u32 %v6542_v61, 16  ;;  %v6020_v11 = vld [vmem:[#allocation3 + $0x3b0] sm:$0xff]   ;;  %v1408_v17 = vshrl.u32 %v6542_v61, 16 }
  0x60   :  { %1029 = vmatmul.mubr.bf16.gmra.mxu0 %v6375_v44  ;;  %v5986_v44 = vld [vmem:[#allocation3 + $0x2d8] sm:$0xff]   ;;  %v1366_v38 = vrot.slane %v1364_v43, 1  ;;  %v1904_v43 = vrot.slane %v6450_v60, 1 }
  0x61   :  { %1101 = vmatmul.mubr.bf16.gmra.mxu1 %v6395_v58  ;;  %5334 = vmatpush3.bf16.msra.mxu0 %v5979_v52  ;;  %v5987_v58 = vld [vmem:[#allocation3 + $0x218] sm:$0xff]   ;;  %v1400_v52 = vshrl.u32 %v6494_v26, 16 }
  0x62   :  { %5380 = vmatpush3.bf16.msra.mxu1 %v5980_v53  ;;  %1036 = vmatprep.mubr.bf16.mxu0 %v6420_v27  ;;  %v1348_v27 = vshll.u32 %v6498_v49, 16  ;;  %v6615_v53 = vrot.slane %v1388_v39, 1  ;;  %v6027_v39 = vld [vmem:[#allocation3 + $0x328] sm:$0xff]  }
  0x63   :  { %1108 = vmatprep.mubr.bf16.mxu1 %v6434_v32  ;;  %5335 = vmatprep.subr.bf16.mxu0 %v5981_v56  ;;  %v6596_v32 = vsel %vm259_vm0, %v1370_v13, %v1374_v4  ;;  %v1402_v56 = vor.u32 %v1400_v52, %v1374_v4  ;;  %v1396_v4 = vshll.u32 %v6546_v23, 16  ;;  %v6688_v52 = vld [vmem:[%s7548_s1 + $0x94] ss:$16 sps:$4 sm:$0x1f]  }
  0x64   :  { %5381 = vmatprep.subr.bf16.mxu1 %v5982_v40  ;;  %v1350_v34 = vrot.slane %v1348_v27, 1  ;;  %v6622_v40 = vsel %vm259_vm0, %v1386_v41, %v6615_v53  ;;  %v1416_v41 = vshrl.u32 %v6534_v63, 16 }
  0x65   :  { %5336 = vmatpush3.bf16.msra.mxu0 %v5983_v29  ;;  %v6002_v29 = vld [vmem:[#allocation3 + $0x2c0] sm:$0xff]   ;;  %v6632_v13 = vsel %vm259_vm0, %v1402_v56, %v6626_v28  ;;  %v6646_v27 = vrot.slane %v1396_v4, 1 }
  0x66   :  { %5382 = vmatpush3.bf16.msra.mxu1 %v5984_v42  ;;  %5337 = vmatprep.subr.bf16.mxu0 %v5985_v9  ;;  %v6603_v37 = vsel %vm259_vm0, %v1346_v20, %v1350_v34  ;;  %v1378_v42 = vor.u32 %v1376_v62, %v1350_v34  ;;  %v6004_v9 = vld [vmem:[#allocation3 + $0x280] sm:$0xff]   ;;  %v1898_v34 = vrot.slane %v6442_v54, 1  ;;  %v1420_v62 = vshll.u32 %v6688_v52, 16 }
  0x67   :  { %5383 = vmatprep.subr.bf16.mxu1 %v5986_v44  ;;  %v6635_v44 = vrot.slane %v1380_v7, 1  ;;  %v6032_v56 = vld [vmem:[#allocation3 + $0x3e0] sm:$0xff]   ;;  %v1424_v7 = vshrl.u32 %v6546_v23, 16 }
  0x68   :  { %1037 = vmatmul.mubr.bf16.gmra.mxu0 %v6428_v30  ;;  %v5994_v30 = vld [vmem:[#allocation3 + $0x2c8] sm:$0xff]  }
  0x69   :  { %1109 = vmatmul.mubr.bf16.gmra.mxu1 %v6437_v47  ;;  %5338 = vmatpush3.bf16.msra.mxu0 %v5987_v58  ;;  %v6610_v47 = vsel %vm259_vm0, %v1362_v25, %v1366_v38  ;;  %v1394_v58 = vor.u32 %v1392_v2, %v1366_v38  ;;  %v6644_v20 = vsel %vm259_vm0, %v1378_v42, %v6635_v44  ;;  %v6019_v25 = vld [vmem:[#allocation3 + $0x330] sm:$0xff]   ;;  %v6025_v38 = vld [vmem:[#allocation3 + $0x368] sm:$0xff]   ;;  %v6037_v42 = vld [vmem:[#allocation3 + $0x358] sm:$0xff]   ;;  %v1901_v2 = vrot.slane %v6445_v55, 1 }
  0x6a   :  { %5384 = vmatpush3.bf16.msra.mxu1 %v5988_v15  ;;  %1044 = vmatprep.mubr.bf16.mxu0 %v6475_v8  ;;  %v5997_v8 = vld [vmem:[#allocation3 + $0x208] sm:$0xff]   ;;  %v4722_v15 = vcombine.low %v6520_v6, %v6520_v6  ;;  %v6075_v55 = vld [vmem:[#allocation3 + $0x160] sm:$0xff]  }
  0x6b   :  { %1116 = vmatprep.mubr.bf16.mxu1 %v6481_v14  ;;  %5339 = vmatprep.subr.bf16.mxu0 %v5989_v16  ;;  %v4723_v14 = vcombine.high %v6520_v6, %v6520_v6  ;;  %v6015_v6 = vld [vmem:[#allocation3 + $0x338] sm:$0xff]  }
  0x6c   :  { %5385 = vmatprep.subr.bf16.mxu1 %v5990_v36  ;;  %v6016_v16 = vld [vmem:[#allocation3 + $0x3b8] sm:$0xff]   ;;  %v6018_v36 = vld [vmem:[#allocation3 + $0x3f0] sm:$0xff]  }
  0x6d   :  { %5340 = vmatpush3.bf16.msra.mxu0 %v5991_v24  ;;  %v1908_v24 = vrot.slane %v6470_v5, 1  ;;  %v1426_v5 = vor.u32 %v1424_v7, %v6646_v27  ;;  %v6246_v7 = vld [vmem:[%s7548_s1 + $0x28] sm:$0xff] }
  0x6e   :  { %5386 = vmatpush3.bf16.msra.mxu1 %v5992_v10  ;;  %5341 = vmatprep.subr.bf16.mxu0 %v5993_v46  ;;  %v1912_v10 = vrot.slane %v6494_v26, 1  ;;  %v1906_v46 = vrot.slane %v6498_v49, 1  ;;  %v6052_v26 = vld [vmem:[#allocation3 + $0x3c8] sm:$0xff]  }
  0x6f   :  { %5387 = vmatprep.subr.bf16.mxu1 %v5994_v30  ;;  %v6026_v30 = vld [vmem:[#allocation3 + $0x3e8] sm:$0xff]  }
  0x70   :  { %1045 = vmatmul.mubr.bf16.gmra.mxu0 %v6485_v18  ;;  %v6013_v18 = vld [vmem:[#allocation3 + $0x378] sm:$0xff]  }
  0x71   :  { %1117 = vmatmul.mubr.bf16.gmra.mxu1 %v6490_v21  ;;  %1052 = vmatprep.mubr.bf16.mxu0 %v4721_v45  ;;  %v4720_v21 = vcombine.low %v6510_v1, %v6510_v1  ;;  %v6650_v1 = vsel %vm259_vm0, %v1394_v58, %v6646_v27  ;;  %v1432_v45 = vshrl.u32 %v6538_v0, 16  ;;  %v1818_v27 = vld [vmem:[%s7548_s1 + $0x18] sm:$0xee] }
  0x72   :  { %1124 = vmatprep.mubr.bf16.mxu1 %v4723_v14  ;;  %5342 = vmatpush3.bf16.msra.mxu0 %v5997_v8  ;;  %v6028_v8 = vld [vmem:[#allocation3 + $0x3a8] sm:$0xff]  }
  0x73   :  { %5388 = vmatpush3.bf16.msra.mxu1 %v5998_v12  ;;  %5343 = vmatprep.subr.bf16.mxu0 %v6001_v59  ;;  %v6695_v14 = vld [vmem:[%s7548_s1 + $0x9c] ss:$16 sps:$4 sm:$0x1f]   ;;  %v6031_v12 = vld [vmem:[#allocation3 + $0x360] sm:$0xff]   ;;  %v1434_v58 = vor.u32 %v1432_v45, %v6626_v28  ;;  %v1443_v45 = vshrl.u32 %v6688_v52, 16 }
  0x74   :  { %5389 = vmatprep.subr.bf16.mxu1 %v6002_v29  ;;  %v6035_v59 = vld [vmem:[#allocation3 + $0x320] sm:$0xff]  }
  0x75   :  { %v6036_v29 = vld [vmem:[#allocation3 + $0x3a0] sm:$0xff]  }
  0x76   :  { %5344 = vmatpush3.bf16.msra.mxu0 %v6003_v3  ;;  %v1436_v3 = vshll.u32 %v6695_v14, 16 }
  0x77   :  { %5390 = vmatpush3.bf16.msra.mxu1 %v6004_v9  ;;  %5421 = vmatprep.subr.bf16.mxu0 %v6013_v18  ;;  %v6038_v9 = vld [vmem:[#allocation3 + $0x3d8] sm:$0xff]  }
  0x78   :  { %1053 = vmatmul.mubr.bf16.gmra.mxu0 %v4720_v21  ;;  %5467 = vmatprep.subr.bf16.mxu1 %v6014_v19  ;;  %v6039_v18 = vld [vmem:[#allocation3 + $0x318] sm:$0xff]   ;;  %v1422_v21 = vrot.slane %v1420_v62, 1  ;;  %v1438_v4 = vrot.slane %v1436_v3, 1  ;;  %v6054_v62 = vld [vmem:[#allocation3 + $0x388] sm:$0xff]  }
  0x79   :  { %1125 = vmatmul.mubr.bf16.gmra.mxu1 %v4722_v15  ;;  %1696 = vmatprep.mubr.bf16.mxu0 %v6561_v35  ;;  %v1895_v35 = vrot.slane %v6431_v31, 1  ;;  %v6073_v31 = vld [vmem:[#allocation3 + $0x128] sm:$0xff]  }
  0x7a   :  { %1768 = vmatprep.mubr.bf16.mxu1 %v6568_v33  ;;  %v6665_v33 = vsel %vm1893_vm1, %v1898_v34, %v1908_v24 }
  0x80   :  { %1697 = vmatmul.mubr.bf16.vlgmr.msra.gmra.mxu0 %v6575_v51  ;;  %v6674_v51 = vsel %vm1893_vm1, %v1904_v43, %v1912_v10 }
  0x81   :  { %1769 = vmatmul.mubr.bf16.vlgmr.msra.gmra.mxu1 %v6583_v48  ;;  %5422 = vmatpush3.bf16.msra.mxu0 %v6015_v6  ;;  %v6682_v48 = vsel %vm1893_vm1, %v1895_v35, %v1906_v46  ;;  %v1910_v6 = vrot.slane %v6502_v57, 1  ;;  %v1439_v57 = vsel %vm259_vm0, %v1434_v58, %v1438_v4 }
  0x82   :  { %5468 = vmatpush3.bf16.msra.mxu1 %v6016_v16  ;;  %5423 = vmatprep.subr.bf16.mxu0 %v6017_v22  ;;  %v1916_v16 = vrot.slane %v6534_v63, 1 }
  0x83   :  { %5469 = vmatprep.subr.bf16.mxu1 %v6018_v36  ;;  %1704 = vmatprep.mubr.bf16.mxu0 %v6591_v50  ;;  %v6700_v50 = vld [vmem:[%s7548_s1 + $0x90] ss:$16 sps:$4 sm:$0x1f]   ;;  %v6726_v28 = vsel %vm1893_vm1, %v1901_v2, %v1910_v6  ;;  %v1920_v36 = vrot.slane %v6538_v0, 1  ;;  %v6087_v0 = vld [vmem:[#allocation3 + $0x148] sm:$0xff]  }
  0x84   :  { %1776 = vmatprep.mubr.bf16.mxu1 %v6596_v32  ;;  %v6706_v32 = vld [vmem:[%s7548_s1 + $0x98] ss:$16 sps:$4 sm:$0x1f]   ;;  %v1412_v19 = vshll.u32 %v6700_v50, 16  ;;  %v1922_v63 = vrot.slane %v6700_v50, 1 }
  0x85   :  { %5424 = vmatpush3.bf16.msra.mxu0 %v6019_v25  ;;  %v1428_v15 = vshll.u32 %v6706_v32, 16 }
  0x86   :  { %5470 = vmatpush3.bf16.msra.mxu1 %v6020_v11  ;;  %5425 = vmatprep.subr.bf16.mxu0 %v6025_v38  ;;  %v1414_v22 = vrot.slane %v1412_v19, 1  ;;  %v6049_v11 = vld [vmem:[#allocation3 + $0x310] sm:$0xff]   ;;  %v6057_v19 = vld [vmem:[#allocation3 + $0x300] sm:$0xff]  }
  0x87   :  { %5471 = vmatprep.subr.bf16.mxu1 %v6026_v30  ;;  %v1430_v25 = vrot.slane %v1428_v15, 1  ;;  %v6050_v38 = vld [vmem:[#allocation3 + $0x390] sm:$0xff]   ;;  %v6736_v30 = vsel %vm1893_vm1, %v1908_v24, %v1916_v16  ;;  %v1449_v24 = vshrl.u32 %v6695_v14, 16  ;;  %v6063_v15 = vld [vmem:[#allocation3 + $0x178] sm:$0xff]  }
  0x88   :  { %1705 = vmatmul.mubr.bf16.gmra.mxu0 %v6603_v37  ;;  %v1418_v37 = vor.u32 %v1416_v41, %v6615_v53  ;;  %v1914_v41 = vrot.slane %v6542_v61, 1 }
  0x89   :  { %1777 = vmatmul.mubr.bf16.gmra.mxu1 %v6610_v47  ;;  %5426 = vmatpush3.bf16.msra.mxu0 %v6027_v39  ;;  %v6040_v47 = vld [vmem:[#allocation3 + $0x398] sm:$0xff]   ;;  %v1410_v39 = vor.u32 %v1408_v17, %v6635_v44  ;;  %v1431_v17 = vsel %vm259_vm0, %v1426_v5, %v1430_v25  ;;  %v6070_v5 = vld [vmem:[#allocation3 + $0x1b0] sm:$0xff]  }
  0x8a   :  { %5472 = vmatpush3.bf16.msra.mxu1 %v6028_v8  ;;  %1712 = vmatprep.mubr.bf16.mxu0 %v6622_v40  ;;  %v6047_v40 = vld [vmem:[#allocation3 + $0x350] sm:$0xff]   ;;  %v1423_v53 = vsel %vm259_vm0, %v1418_v37, %v1422_v21  ;;  %v6747_v8 = vsel %vm1893_vm1, %v1912_v10, %v1920_v36  ;;  %v6756_v44 = vsel %vm1893_vm1, %v1906_v46, %v1914_v41  ;;  %v6056_v37 = vld [vmem:[#allocation3 + $0x3c0] sm:$0xff]  }
  0x8b   :  { %1784 = vmatprep.mubr.bf16.mxu1 %v6632_v13  ;;  %5427 = vmatprep.subr.bf16.mxu0 %v6031_v12  ;;  %v6048_v13 = vld [vmem:[#allocation3 + $0x3d0] sm:$0xff]   ;;  %v1415_v46 = vsel %vm259_vm0, %v1410_v39, %v1414_v22  ;;  %v1445_v12 = vor.u32 %v1443_v45, %v1422_v21  ;;  %v1446_v21 = vshrl.u32 %v6706_v32, 16 }
  0x8c   :  { %5473 = vmatprep.subr.bf16.mxu1 %v6032_v56  ;;  %v1817_v10 = vld [vmem:[%s7548_s1 + $0x10] sm:$0xee]  ;;  %v6053_v56 = vld [vmem:[#allocation3 + $0x308] sm:$0xff]  }
  0x8d   :  { %5428 = vmatpush3.bf16.msra.mxu0 %v6035_v59  ;;  %v1451_v59 = vor.u32 %v1449_v24, %v1438_v4  ;;  %v6069_v45 = vld [vmem:[#allocation3 + $0x130] sm:$0xff]   ;;  %v6071_v24 = vld [vmem:[#allocation3 + $0x168] sm:$0xff]  }
  0x8e   :  { %5474 = vmatpush3.bf16.msra.mxu1 %v6036_v29  ;;  %5429 = vmatprep.subr.bf16.mxu0 %v6037_v42  ;;  %v6245_v29 = vld [vmem:[%s7548_s1 + $0x20] sm:$0xff] }
  0x8f   :  { %5475 = vmatprep.subr.bf16.mxu1 %v6038_v9  ;;  %v4809_v3 = vcombine.high %v1817_v10, %v6245_v29  ;;  %v6055_v42 = vld [vmem:[#allocation3 + $0x340] sm:$0xff]   ;;  %v4811_v9 = vcombine.high %v1818_v27, %v6246_v7 }
  0x90   :  { %1713 = vmatmul.mubr.bf16.gmra.mxu0 %v6644_v20  ;;  %v6051_v20 = vld [vmem:[#allocation3 + $0x348] sm:$0xff]  }
  0x91   :  { %1785 = vmatmul.mubr.bf16.gmra.mxu1 %v6650_v1  ;;  %5430 = vmatpush3.bf16.msra.mxu0 %v6039_v18  ;;  %v1918_v1 = vrot.slane %v6546_v23, 1  ;;  %v1440_v18 = vshrl.u32 %v6700_v50, 16  ;;  %v1897_v58 = vrot.slane %v4809_v3, 1  ;;  %v1903_v4 = vrot.slane %v4811_v9, 1  ;;  %v6834_v3 = vld [vmem:[%s7548_s1 + $0xc0] ss:$16 sps:$4 sm:$0xff]  }
  0x92   :  { %5476 = vmatpush3.bf16.msra.mxu1 %v6040_v47  ;;  %1720 = vmatprep.mubr.bf16.mxu0 %v1423_v53  ;;  %v6058_v47 = vld [vmem:[#allocation3 + $0x380] sm:$0xff]   ;;  %v4808_v53 = vcombine.low %v1817_v10, %v6245_v29  ;;  %v6086_v29 = vld [vmem:[#allocation3 + $0x190] sm:$0xff]   ;;  %v6089_v9 = vld [vmem:[#allocation3 + $0x108] sm:$0xff]  }
  0x93   :  { %1792 = vmatprep.mubr.bf16.mxu1 %v1439_v57  ;;  %5431 = vmatprep.subr.bf16.mxu0 %v6047_v40  ;;  %v6768_v49 = vsel %vm1893_vm1, %v1910_v6, %v1918_v1  ;;  %v1442_v40 = vor.u32 %v1440_v18, %v1414_v22  ;;  %v6064_v6 = vld [vmem:[#allocation3 + $0x1f8] sm:$0xff]   ;;  %v1899_v57 = vsel %vm1893_vm1, %v1897_v58, %v1898_v34  ;;  %v6067_v34 = vld [vmem:[#allocation3 + $0x170] sm:$0xff]   ;;  %v6077_v10 = vld [vmem:[#allocation3 + $0x120] sm:$0xff]  }
  0x94   :  { %5477 = vmatprep.subr.bf16.mxu1 %v6048_v13  ;;  %v1448_v13 = vor.u32 %v1446_v21, %v1430_v25  ;;  %v1894_v22 = vrot.slane %v4808_v53, 1  ;;  %v6065_v25 = vld [vmem:[#allocation3 + $0x138] sm:$0xff]   ;;  %v6091_v58 = vld [vmem:[#allocation3 + $0x140] sm:$0xff]  }
  0x95   :  { %5432 = vmatpush3.bf16.msra.mxu0 %v6049_v11  ;;  %v4810_v11 = vcombine.low %v1818_v27, %v6246_v7  ;;  %v6078_v27 = vld [vmem:[#allocation3 + $0x1a0] sm:$0xff]   ;;  %v6847_v21 = vld [vmem:[%s7548_s1 + $0xc8] ss:$16 sps:$4 sm:$0xff]  }
  0x96   :  { %5478 = vmatpush3.bf16.msra.mxu1 %v6050_v38  ;;  %5433 = vmatprep.subr.bf16.mxu0 %v6051_v20  ;;  %v1905_v38 = vsel %vm1893_vm1, %v1903_v4, %v1904_v43  ;;  %v6066_v20 = vld [vmem:[#allocation3 + $0x1b8] sm:$0xff]   ;;  %v1896_v54 = vsel %vm1893_vm1, %v1894_v22, %v1895_v35  ;;  %v6068_v43 = vld [vmem:[#allocation3 + $0x1f0] sm:$0xff]   ;;  %v6074_v35 = vld [vmem:[#allocation3 + $0x1a8] sm:$0xff]  }
  0x97   :  { %5479 = vmatprep.subr.bf16.mxu1 %v6052_v26  ;;  %v1900_v39 = vrot.slane %v4810_v11, 1  ;;  %v6072_v26 = vld [vmem:[#allocation3 + $0x1e8] sm:$0xff]   ;;  %v6094_v53 = vld [vmem:[#allocation3 + $0x180] sm:$0xff]  }
  0x98   :  { %1721 = vmatmul.mubr.bf16.gmra.mxu0 %v1415_v46  ;;  %v6079_v46 = vld [vmem:[#allocation3 + $0x158] sm:$0xff]   ;;  %v6871_v11 = vld [vmem:[%s7548_s1 + $0x100] sm:$0xff] }
  0x99   :  { %1793 = vmatmul.mubr.bf16.gmra.mxu1 %v1431_v17  ;;  %1728 = vmatprep.mubr.bf16.mxu0 %v1445_v12  ;;  %v1902_v60 = vsel %vm1893_vm1, %v1900_v39, %v1901_v2  ;;  %v6076_v2 = vld [vmem:[#allocation3 + $0x1e0] sm:$0xff]   ;;  %v1928_v12 = vrot.slane %v6695_v14, 1  ;;  %v6084_v17 = vld [vmem:[#allocation3 + $0x1d0] sm:$0xff]   ;;  %v6864_v23 = vld [vmem:[%s7548_s1 + $0xe8] ss:$16 sps:$4 sm:$0xff]  }
  0x9a   :  { %1800 = vmatprep.mubr.bf16.mxu1 %v1451_v59  ;;  %5434 = vmatpush3.bf16.msra.mxu0 %v6053_v56  ;;  %v6081_v56 = vld [vmem:[#allocation3 + $0x118] sm:$0xff]   ;;  %v6820_v59 = vld [vmem:[%s7548_s1 + $0xe4] ss:$16 sps:$4 sm:$0xff]  }
  0x9b   :  { %5480 = vmatpush3.bf16.msra.mxu1 %v6054_v62  ;;  %5435 = vmatprep.subr.bf16.mxu0 %v6055_v42  ;;  %v1929_v14 = vsel %vm1893_vm1, %v1920_v36, %v1928_v12  ;;  %v6085_v62 = vld [vmem:[#allocation3 + $0x110] sm:$0xff]  }
  0x9c   :  { %5481 = vmatprep.subr.bf16.mxu1 %v6056_v37  ;;  %v6839_v42 = vld [vmem:[%s7548_s1 + $0xe0] ss:$16 sps:$4 sm:$0xff]   ;;  %v2590_v37 = vshll.u32 %v6820_v59, 16 }
  0x9e   :  { %5436 = vmatpush3.bf16.msra.mxu0 %v6057_v19  ;;  %v1923_v19 = vsel %vm1893_vm1, %v1914_v41, %v1922_v63  ;;  %v6093_v41 = vld [vmem:[#allocation3 + $0x100] sm:$0xff]   ;;  %v2592_v39 = vrot.slane %v2590_v37, 1 }
  0x9f   :  { %5482 = vmatpush3.bf16.msra.mxu1 %v6058_v47  ;;  %5513 = vmatprep.subr.bf16.mxu0 %v6063_v15  ;;  %v6090_v47 = vld [vmem:[#allocation3 + $0x188] sm:$0xff]   ;;  %v6092_v15 = vld [vmem:[#allocation3 + $0x1c0] sm:$0xff]  }
  0xa0   :  { %1729 = vmatmul.mubr.bf16.gmra.mxu0 %v1442_v40  ;;  %5559 = vmatprep.subr.bf16.mxu1 %v6064_v6 }
  0xa1   :  { %1801 = vmatmul.mubr.bf16.gmra.mxu1 %v1448_v13  ;;  %2174 = vmatprep.mubr.bf16.mxu0 %v1899_v57  ;;  %v2578_v57 = vshll.u32 %v6839_v42, 16 }
  0xa2   :  { %2246 = vmatprep.mubr.bf16.mxu1 %v1905_v38  ;;  %v4863_v38 = vld [vmem:[%s7548_s1 + $0x110] sm:$0xff] }
  0xa8   :  { %2175 = vmatmul.mubr.bf16.vlgmr.msra.gmra.mxu0 %v1896_v54  ;;  %v4864_v54 = vld [vmem:[%s7548_s1 + $0x118] sm:$0xff] }
  0xa9   :  { %2247 = vmatmul.mubr.bf16.vlgmr.msra.gmra.mxu1 %v1902_v60  ;;  %5514 = vmatpush3.bf16.msra.mxu0 %v6065_v25  ;;  %v2597_v25 = vshll.u32 %v6847_v21, 16 }
  0xaa   :  { %5560 = vmatpush3.bf16.msra.mxu1 %v6066_v20  ;;  %5515 = vmatprep.subr.bf16.mxu0 %v6067_v34  ;;  %v6880_v20 = vld [vmem:[%s7548_s1 + $0x108] sm:$0xff] }
  0xab   :  { %5561 = vmatprep.subr.bf16.mxu1 %v6068_v43  ;;  %2182 = vmatprep.mubr.bf16.mxu0 %v6665_v33  ;;  %v6080_v33 = vld [vmem:[#allocation3 + $0x1d8] sm:$0xff]  }
  0xac   :  { %2254 = vmatprep.mubr.bf16.mxu1 %v6674_v51  ;;  %v1924_v51 = vrot.slane %v6688_v52, 1  ;;  %v6811_v52 = vld [vmem:[%s7548_s1 + $0xcc] ss:$16 sps:$4 sm:$0xff]  }
  0xad   :  { %5516 = vmatpush3.bf16.msra.mxu0 %v6069_v45  ;;  %v2609_v7 = vshll.u32 %v6811_v52, 16  ;;  %v2607_v6 = vshrl.u32 %v6811_v52, 16  ;;  %v6107_v43 = vld [vmem:[#allocation3 + $0x78] sm:$0xff]   ;;  %v2571_v45 = vshrl.u32 %v6834_v3, 16 }
  0xae   :  { %5562 = vmatpush3.bf16.msra.mxu1 %v6070_v5  ;;  %5517 = vmatprep.subr.bf16.mxu0 %v6071_v24  ;;  %v6108_v5 = vld [vmem:[#allocation3 + $0xf8] sm:$0xff]   ;;  %v6887_v24 = vcombine.high %v6871_v11, %v4863_v38 }
  0xaf   :  { %5563 = vmatprep.subr.bf16.mxu1 %v6072_v26  ;;  %v2611_v13 = vrot.slane %v2609_v7, 1 }
  0xb0   :  { %2183 = vmatmul.mubr.bf16.gmra.mxu0 %v6682_v48  ;;  %v6082_v48 = vld [vmem:[#allocation3 + $0x198] sm:$0xff]  }
  0xb1   :  { %2255 = vmatmul.mubr.bf16.gmra.mxu1 %v6726_v28  ;;  %5518 = vmatpush3.bf16.msra.mxu0 %v6073_v31  ;;  %v6803_v28 = vld [vmem:[%s7548_s1 + $0xc4] ss:$16 sps:$4 sm:$0xff]   ;;  %v2612_v34 = vor.u32 %v2611_v13, %v2607_v6  ;;  %v2595_v31 = vshrl.u32 %v6847_v21, 16  ;;  %v2634_v6 = vshrl.u32 %v6864_v23, 16 }
  0xb2   :  { %5564 = vmatpush3.bf16.msra.mxu1 %v6074_v35  ;;  %2190 = vmatprep.mubr.bf16.mxu0 %v6736_v30  ;;  %v1925_v30 = vsel %vm1893_vm1, %v1916_v16, %v1924_v51  ;;  %v1926_v16 = vrot.slane %v6706_v32, 1  ;;  %v2585_v36 = vshll.u32 %v6803_v28, 16  ;;  %v2583_v18 = vshrl.u32 %v6803_v28, 16  ;;  %v6110_v32 = vld [vmem:[#allocation3 + $0xb8] sm:$0xff]  }
  0xb3   :  { %2262 = vmatprep.mubr.bf16.mxu1 %v6747_v8  ;;  %5519 = vmatprep.subr.bf16.mxu0 %v6075_v55  ;;  %v6083_v8 = vld [vmem:[#allocation3 + $0x150] sm:$0xff]   ;;  %v6891_v35 = vcombine.high %v6880_v20, %v4864_v54 }
  0xb4   :  { %5565 = vmatprep.subr.bf16.mxu1 %v6076_v2  ;;  %v1927_v4 = vsel %vm1893_vm1, %v1918_v1, %v1926_v16  ;;  %v2587_v40 = vrot.slane %v2585_v36, 1  ;;  %v2573_v1 = vshll.u32 %v6834_v3, 16  ;;  %v2599_v2 = vrot.slane %v2597_v25, 1 }
  0xb5   :  { %5520 = vmatpush3.bf16.msra.mxu0 %v6077_v10  ;;  %v2602_v10 = vshll.u32 %v6864_v23, 16 }
  0xb6   :  { %5566 = vmatpush3.bf16.msra.mxu1 %v6078_v27  ;;  %5521 = vmatprep.subr.bf16.mxu0 %v6079_v46  ;;  %v2588_v22 = vor.u32 %v2587_v40, %v2583_v18  ;;  %v2575_v26 = vrot.slane %v2573_v1, 1  ;;  %v2580_v46 = vrot.slane %v2578_v57, 1  ;;  %v6112_v40 = vld [vmem:[#allocation3 + $0xf0] sm:$0xff]  }
  0xb7   :  { %5567 = vmatprep.subr.bf16.mxu1 %v6080_v33  ;;  %v2626_v33 = vshrl.u32 %v6820_v59, 16  ;;  %v6114_v1 = vld [vmem:[#allocation3 + $0xb0] sm:$0xff]  }
  0xb8   :  { %2191 = vmatmul.mubr.bf16.gmra.mxu0 %v6756_v44  ;;  %v6829_v44 = vld [vmem:[%s7548_s1 + $0xec] ss:$16 sps:$4 sm:$0xff]   ;;  %v2593_v55 = vsel %vm259_vm0, %v2588_v22, %v2592_v39  ;;  %v2576_v50 = vor.u32 %v2575_v26, %v2571_v45  ;;  %v6953_v45 = vld [vmem:[%s7548_s1 + $0x140] sm:$0xff] }
  0xb9   :  { %2263 = vmatmul.mubr.bf16.gmra.mxu1 %v6768_v49  ;;  %5522 = vmatpush3.bf16.msra.mxu0 %v6081_v56  ;;  %v6088_v49 = vld [vmem:[#allocation3 + $0x1c8] sm:$0xff]   ;;  %v2614_v61 = vshll.u32 %v6829_v44, 16  ;;  %v2642_v56 = vshrl.u32 %v6829_v44, 16  ;;  %v2628_v36 = vor.u32 %v2626_v33, %v2592_v39 }
  0xba   :  { %5568 = vmatpush3.bf16.msra.mxu1 %v6082_v48  ;;  %2198 = vmatprep.mubr.bf16.mxu0 %v1925_v30  ;;  %v6907_v48 = vcombine.low %v6871_v11, %v4863_v38  ;;  %v4867_v30 = vld [vmem:[%s7548_s1 + $0x130] sm:$0xff]  ;;  %v2674_v38 = vshrl.u32 %v6891_v35, 16 }
  0xbb   :  { %2270 = vmatprep.mubr.bf16.mxu1 %v1929_v14  ;;  %5523 = vmatprep.subr.bf16.mxu0 %v6083_v8  ;;  %v2616_v60 = vrot.slane %v2614_v61, 1  ;;  %v6915_v8 = vld [vmem:[%s7548_s1 + $0x128] sm:$0xff]  ;;  %v2646_v14 = vshll.u32 %v6891_v35, 16  ;;  %v6113_v61 = vld [vmem:[#allocation3 + $0x30] sm:$0xff]  }
  0xbc   :  { %5569 = vmatprep.subr.bf16.mxu1 %v6084_v17  ;;  %v6921_v17 = vcombine.low %v6880_v20, %v4864_v54  ;;  %v2622_v18 = vshll.u32 %v6907_v48, 16 }
  0xbd   :  { %5524 = vmatpush3.bf16.msra.mxu0 %v6085_v62  ;;  %v2617_v27 = vsel %vm259_vm0, %v2612_v34, %v2616_v60  ;;  %v2600_v62 = vor.u32 %v2599_v2, %v2595_v31  ;;  %v4872_v2 = vld [vmem:[%s7548_s1 + $0x158] sm:$0x11] }
  0xbe   :  { %5570 = vmatpush3.bf16.msra.mxu1 %v6086_v29  ;;  %5525 = vmatprep.subr.bf16.mxu0 %v6087_v0  ;;  %v2604_v29 = vrot.slane %v2602_v10, 1  ;;  %v6109_v0 = vld [vmem:[#allocation3 + $0x38] sm:$0xff]   ;;  %v2624_v34 = vrot.slane %v2622_v18, 1  ;;  %v6120_v10 = vld [vmem:[#allocation3 + $0xe8] sm:$0xff]  }
  0xbf   :  { %5571 = vmatprep.subr.bf16.mxu1 %v6088_v49 }
  0xc0   :  { %2199 = vmatmul.mubr.bf16.gmra.mxu0 %v1923_v19  ;;  %v2581_v19 = vsel %vm259_vm0, %v2576_v50, %v2580_v46  ;;  %v2636_v26 = vor.u32 %v2634_v6, %v2604_v29  ;;  %v6130_v6 = vld [vmem:[#allocation3 + $0xa0] sm:$0xff]  }
  0xc1   :  { %2271 = vmatmul.mubr.bf16.gmra.mxu1 %v1927_v4  ;;  %2206 = vmatprep.mubr.bf16.mxu0 %v1924_v51  ;;  %v6900_v51 = vld [vmem:[%s7548_s1 + $0x120] sm:$0xff]  ;;  %v2638_v4 = vshll.u32 %v6921_v17, 16 }
  0xc2   :  { %2278 = vmatprep.mubr.bf16.mxu1 %v1928_v12  ;;  %5526 = vmatpush3.bf16.msra.mxu0 %v6089_v9  ;;  %v2630_v12 = vshll.u32 %v6887_v24, 16  ;;  %v6927_v49 = vcombine.high %v6900_v51, %v4867_v30  ;;  %v2618_v9 = vshrl.u32 %v6839_v42, 16  ;;  %v6939_v13 = vcombine.low %v6900_v51, %v4867_v30  ;;  %v6122_v30 = vld [vmem:[#allocation3 + $0xa8] sm:$0xff]  }
  0xc3   :  { %5572 = vmatpush3.bf16.msra.mxu1 %v6090_v47  ;;  %5527 = vmatprep.subr.bf16.mxu0 %v6091_v58  ;;  %v2644_v47 = vor.u32 %v2642_v56, %v2616_v60  ;;  %v2648_v58 = vrot.slane %v2646_v14, 1  ;;  %v2640_v60 = vrot.slane %v2638_v4, 1  ;;  %v6121_v56 = vld [vmem:[#allocation3 + $0x28] sm:$0xff]  }
  0xc4   :  { %5573 = vmatprep.subr.bf16.mxu1 %v6092_v15  ;;  %v2632_v7 = vrot.slane %v2630_v12, 1  ;;  %v2605_v15 = vsel %vm259_vm0, %v2600_v62, %v2604_v29  ;;  %v2620_v54 = vor.u32 %v2618_v9, %v2580_v46  ;;  %v2654_v31 = vshll.u32 %v6939_v13, 16  ;;  %v6125_v29 = vld [vmem:[#allocation3 + $0x60] sm:$0xff]  }
  0xc5   :  { %v2649_v25 = vsel %vm259_vm0, %v2644_v47, %v2648_v58  ;;  %v2676_v50 = vor.u32 %v2674_v38, %v2648_v58  ;;  %v2690_v9 = vshrl.u32 %v6927_v49, 16 }
  0xc6   :  { %5528 = vmatpush3.bf16.msra.mxu0 %v6093_v41  ;;  %v2658_v41 = vshrl.u32 %v6887_v24, 16  ;;  %v2633_v57 = vsel %vm259_vm0, %v2628_v36, %v2632_v7  ;;  %v2625_v62 = vsel %vm259_vm0, %v2620_v54, %v2624_v34  ;;  %v2641_v36 = vsel %vm259_vm0, %v2636_v26, %v2640_v60 }
  0xc7   :  { %5574 = vmatpush3.bf16.msra.mxu1 %v6094_v53  ;;  %5605 = vmatprep.subr.bf16.mxu0 %v6107_v43  ;;  %v2662_v53 = vshll.u32 %v6927_v49, 16  ;;  %v6119_v43 = vld [vmem:[#allocation3 + $0x68] sm:$0xff]  }
  0xc8   :  { %2207 = vmatmul.mubr.bf16.gmra.mxu0 %v1922_v63  ;;  %5651 = vmatprep.subr.bf16.mxu1 %v6108_v5  ;;  %v4868_v63 = vld [vmem:[%s7548_s1 + $0x138] sm:$0xff]  ;;  %v4871_v5 = vld [vmem:[%s7548_s1 + $0x150] sm:$0x11] }
  0xc9   :  { %2279 = vmatmul.mubr.bf16.gmra.mxu1 %v1926_v16  ;;  %2970 = vmatprep.mubr.bf16.mxu0 %v2593_v55  ;;  %v6111_v16 = vld [vmem:[#allocation3 + $0x70] sm:$0xff]   ;;  %v6932_v37 = vcombine.high %v6915_v8, %v4868_v63  ;;  %v6947_v39 = vcombine.low %v6915_v8, %v4868_v63  ;;  %v6962_v55 = vld [vmem:[%s7548_s1 + $0x148] sm:$0xff]  ;;  %v2664_v46 = vrot.slane %v2662_v53, 1  ;;  %v6968_v33 = vcombine.high %v6953_v45, %v4871_v5 }
  0xca   :  { %3042 = vmatprep.mubr.bf16.mxu1 %v2617_v27  ;;  %v2660_v27 = vor.u32 %v2658_v41, %v2632_v7  ;;  %v6971_v12 = vcombine.high %v6962_v55, %v4872_v2  ;;  %v2666_v7 = vshrl.u32 %v6921_v17, 16  ;;  %v6983_v4 = vcombine.low %v6953_v45, %v4871_v5 }
  0xcb   :  { %v2678_v22 = vshll.u32 %v6932_v37, 16  ;;  %v2670_v63 = vshll.u32 %v6947_v39, 16  ;;  %v2694_v47 = vshll.u32 %v6968_v33, 16  ;;  %v2706_v41 = vshrl.u32 %v6932_v37, 16 }
  0xcc   :  { %v2665_v18 = vsel %vm259_vm0, %v2660_v27, %v2664_v46  ;;  %v2710_v58 = vshll.u32 %v6971_v12, 16  ;;  %v2668_v38 = vor.u32 %v2666_v7, %v2640_v60  ;;  %v2692_v54 = vor.u32 %v2690_v9, %v2664_v46  ;;  %v6139_v60 = vld [vmem:[#allocation3 + $0x50] sm:$0xff]  }
  0xcd   :  { %v2680_v14 = vrot.slane %v2678_v22, 1  ;;  %v6989_v22 = vcombine.low %v6962_v55, %v4872_v2  ;;  %v2686_v26 = vshll.u32 %v6983_v4, 16  ;;  %v2698_v27 = vshrl.u32 %v6947_v39, 16  ;;  %v6140_v46 = vld [vmem:[#allocation3 + $0xd0] sm:$0xff]  }
  0xce   :  { %v2712_v5 = vrot.slane %v2710_v58, 1  ;;  %v2723_v9 = vshrl.u32 %v6971_v12, 16  ;;  %v6145_v58 = vld [vmem:[#allocation3 + $0x8] sm:$0xff]   ;;  %v2714_v12 = vshrl.u32 %v6983_v4, 16 }
  0xd0   :  { %2971 = vmatmul.mubr.bf16.vlgmr.msra.gmra.mxu0 %v2581_v19  ;;  %v6129_v19 = vld [vmem:[#allocation3 + $0x20] sm:$0xff]  }
  0xd1   :  { %3043 = vmatmul.mubr.bf16.vlgmr.msra.gmra.mxu1 %v2605_v15  ;;  %5606 = vmatpush3.bf16.msra.mxu0 %v6109_v0  ;;  %v2650_v0 = vshrl.u32 %v6907_v48, 16  ;;  %v2681_v15 = vsel %vm259_vm0, %v2676_v50, %v2680_v14  ;;  %v6141_v50 = vld [vmem:[#allocation3 + $0x10] sm:$0xff]  }
  0xd2   :  { %5652 = vmatpush3.bf16.msra.mxu1 %v6110_v32  ;;  %5607 = vmatprep.subr.bf16.mxu0 %v6111_v16  ;;  %v6126_v32 = vld [vmem:[#allocation3 + $0xe0] sm:$0xff]   ;;  %v2656_v16 = vrot.slane %v2654_v31, 1  ;;  %v6134_v31 = vld [vmem:[#allocation3 + $0x98] sm:$0xff]  }
  0xd3   :  { %5653 = vmatprep.subr.bf16.mxu1 %v6112_v40  ;;  %2978 = vmatprep.mubr.bf16.mxu0 %v2633_v57  ;;  %v2672_v40 = vrot.slane %v2670_v63, 1  ;;  %v2652_v53 = vor.u32 %v2650_v0, %v2624_v34  ;;  %v2682_v57 = vshrl.u32 %v6939_v13, 16  ;;  %v2708_v34 = vor.u32 %v2706_v41, %v2680_v14  ;;  %v6143_v0 = vld [vmem:[#allocation3 + $0x48] sm:$0xff]   ;;  %v6149_v41 = vld [vmem:[#allocation3] sm:$0xff]  }
  0xd4   :  { %3050 = vmatprep.mubr.bf16.mxu1 %v2649_v25  ;;  %v6133_v25 = vld [vmem:[#allocation3 + $0x18] sm:$0xff]   ;;  %v2688_v63 = vrot.slane %v2686_v26, 1 }
  0xd5   :  { %5608 = vmatpush3.bf16.msra.mxu0 %v6113_v61  ;;  %v6131_v61 = vld [vmem:[#allocation3 + $0x58] sm:$0xff]   ;;  %v2673_v2 = vsel %vm259_vm0, %v2668_v38, %v2672_v40  ;;  %v2713_v14 = vsel %vm259_vm0, %v2708_v34, %v2712_v5 }
  0xd6   :  { %5654 = vmatpush3.bf16.msra.mxu1 %v6114_v1  ;;  %5609 = vmatprep.subr.bf16.mxu0 %v6119_v43  ;;  %v6132_v1 = vld [vmem:[#allocation3 + $0xd8] sm:$0xff]   ;;  %v2696_v43 = vrot.slane %v2694_v47, 1 }
  0xd7   :  { %5655 = vmatprep.subr.bf16.mxu1 %v6120_v10  ;;  %v2657_v10 = vsel %vm259_vm0, %v2652_v53, %v2656_v16  ;;  %v6150_v53 = vld [vmem:[#allocation3 + $0x80] sm:$0xff]   ;;  %v6152_v38 = vld [vmem:[#allocation3 + $0x2f8] sm:$0xff]  }
  0xd8   :  { %2979 = vmatmul.mubr.bf16.gmra.mxu0 %v2625_v62  ;;  %v6142_v62 = vld [vmem:[#allocation3 + $0x90] sm:$0xff]  }
  0xd9   :  { %3051 = vmatmul.mubr.bf16.gmra.mxu1 %v2641_v36  ;;  %5610 = vmatpush3.bf16.msra.mxu0 %v6121_v56  ;;  %v2702_v56 = vshll.u32 %v6989_v22, 16  ;;  %v2717_v36 = vshrl.u32 %v6968_v33, 16  ;;  %v2725_v33 = vor.u32 %v2723_v9, %v2712_v5  ;;  %v6160_v9 = vld [vmem:[#allocation3 + $0x2e8] sm:$0xff]  }
  0xda   :  { %5656 = vmatpush3.bf16.msra.mxu1 %v6122_v30  ;;  %2986 = vmatprep.mubr.bf16.mxu0 %v2665_v18  ;;  %v2697_v30 = vsel %vm259_vm0, %v2692_v54, %v2696_v43  ;;  %v6144_v18 = vld [vmem:[#allocation3 + $0xc8] sm:$0xff]  }
  0xdb   :  { %3058 = vmatprep.mubr.bf16.mxu1 %v2681_v15  ;;  %5611 = vmatprep.subr.bf16.mxu0 %v6125_v29  ;;  %v2684_v29 = vor.u32 %v2682_v57, %v2656_v16  ;;  %v2704_v7 = vrot.slane %v2702_v56, 1  ;;  %v2719_v47 = vor.u32 %v2717_v36, %v2696_v43  ;;  %v6146_v15 = vld [vmem:[#allocation3 + $0x88] sm:$0xff]   ;;  %v2716_v57 = vor.u32 %v2714_v12, %v2688_v63  ;;  %v6154_v56 = vld [vmem:[#allocation3 + $0x2b8] sm:$0xff]  }
  0xdc   :  { %5657 = vmatprep.subr.bf16.mxu1 %v6126_v32  ;;  %v2700_v32 = vor.u32 %v2698_v27, %v2672_v40  ;;  %v6147_v40 = vld [vmem:[#allocation3 + $0x40] sm:$0xff]   ;;  %v6159_v36 = vld [vmem:[#allocation3 + $0x268] sm:$0xff]  }
  0xdd   :  { %5612 = vmatpush3.bf16.msra.mxu0 %v6129_v19  ;;  %v2689_v19 = vsel %vm259_vm0, %v2684_v29, %v2688_v63 }
  0xde   :  { %5658 = vmatpush3.bf16.msra.mxu1 %v6130_v6  ;;  %5613 = vmatprep.subr.bf16.mxu0 %v6131_v61  ;;  %v2705_v16 = vsel %vm259_vm0, %v2700_v32, %v2704_v7  ;;  %v6148_v6 = vld [vmem:[#allocation3 + $0xc0] sm:$0xff]   ;;  %v2720_v61 = vshrl.u32 %v6989_v22, 16 }
  0xdf   :  { %5659 = vmatprep.subr.bf16.mxu1 %v6132_v1  ;;  %v6151_v1 = vld [vmem:[#allocation3 + $0x278] sm:$0xff]  }
  0xe0   :  { %2987 = vmatmul.mubr.bf16.gmra.mxu0 %v2657_v10  ;;  %v2722_v54 = vor.u32 %v2720_v61, %v2704_v7  ;;  %v6165_v61 = vld [vmem:[#allocation3 + $0x220] sm:$0xff]  }
  0xe1   :  { %3059 = vmatmul.mubr.bf16.gmra.mxu1 %v2673_v2  ;;  %5614 = vmatpush3.bf16.msra.mxu0 %v6133_v25 }
  0xe2   :  { %5660 = vmatpush3.bf16.msra.mxu1 %v6134_v31  ;;  %2994 = vmatprep.mubr.bf16.mxu0 %v2697_v30  ;;  %v6155_v30 = vld [vmem:[#allocation3 + $0x270] sm:$0xff]  }
  0xe3   :  { %3066 = vmatprep.mubr.bf16.mxu1 %v2713_v14  ;;  %5615 = vmatprep.subr.bf16.mxu0 %v6139_v60  ;;  %v6153_v60 = vld [vmem:[#allocation3 + $0x238] sm:$0xff]   ;;  %v6156_v14 = vld [vmem:[#allocation3 + $0x2f0] sm:$0xff]  }
  0xe4   :  { %5661 = vmatprep.subr.bf16.mxu1 %v6140_v46 }
  0xe5   :  { %5616 = vmatpush3.bf16.msra.mxu0 %v6141_v50 }
  0xe6   :  { %5662 = vmatpush3.bf16.msra.mxu1 %v6142_v62  ;;  %5617 = vmatprep.subr.bf16.mxu0 %v6143_v0  ;;  %v6157_v62 = vld [vmem:[#allocation3 + $0x230] sm:$0xff]  }
  0xe7   :  { %5663 = vmatprep.subr.bf16.mxu1 %v6144_v18 }
  0xe8   :  { %2995 = vmatmul.mubr.bf16.gmra.mxu0 %v2689_v19 }
  0xe9   :  { %3067 = vmatmul.mubr.bf16.gmra.mxu1 %v2705_v16  ;;  %3002 = vmatprep.mubr.bf16.mxu0 %v2719_v47  ;;  %v6161_v47 = vld [vmem:[#allocation3 + $0x228] sm:$0xff]  }
  0xea   :  { %3074 = vmatprep.mubr.bf16.mxu1 %v2725_v33  ;;  %5618 = vmatpush3.bf16.msra.mxu0 %v6145_v58  ;;  %v6162_v16 = vld [vmem:[#allocation3 + $0x2a8] sm:$0xff]  }
  0xeb   :  { %5664 = vmatpush3.bf16.msra.mxu1 %v6146_v15  ;;  %5619 = vmatprep.subr.bf16.mxu0 %v6147_v40  ;;  %v6163_v40 = vld [vmem:[#allocation3 + $0x260] sm:$0xff]  }
  0xec   :  { %5665 = vmatprep.subr.bf16.mxu1 %v6148_v6  ;;  %v6164_v6 = vld [vmem:[#allocation3 + $0x2e0] sm:$0xff]  }
  0xee   :  { %5620 = vmatpush3.bf16.msra.mxu0 %v6149_v41 }
  0xef   :  { %5666 = vmatpush3.bf16.msra.mxu1 %v6150_v53  ;;  %5697 = vmatprep.subr.bf16.mxu0 %v6151_v1  ;;  %v6167_v53 = vld [vmem:[#allocation3 + $0x258] sm:$0xff]  }
  0xf0   :  { %v5161_v25 = vpop.f32.mrf.mxu0  ;;  %3003 = vmatmul.mubr.bf16.gmra.mxu0 %v2716_v57  ;;  %5743 = vmatprep.subr.bf16.mxu1 %v6152_v38  ;;  %v4961_v38 = vld [vmem:[%s7548_s1 + $0xd0] sm:$0xff] }
  0xf1   :  { %v5207_v4 = vpop.f32.mrf.mxu1  ;;  %3075 = vmatmul.mubr.bf16.gmra.mxu1 %v2722_v54  ;;  %3330 = vmatprep.mubr.bf16.mxu0 %v6803_v28 }
  0xf2   :  { %v5162_v43 = vpop.f32.mrf.mxu0  ;;  %3402 = vmatprep.mubr.bf16.mxu1 %v6811_v52  ;;  %v6158_v52 = vld [vmem:[#allocation3 + $0x2b0] sm:$0xff]  }
  0xf3   :  { %v5163_v5 = vadd.f32 %v5162_v43, %v5161_v25  ;;  %v5208_v26 = vpop.f32.mrf.mxu1  ;;  %v4962_v43 = vld [vmem:[%s7548_s1 + $0xd8] sm:$0xff] }
  0xf4   :  { %v5164_v22 = vpop.f32.mrf.mxu0  ;;  %v5209_v31 = vadd.f32 %v5208_v26, %v5207_v4  ;;  %v6169_v26 = vld [vmem:[#allocation3 + $0x218] sm:$0xff]  }
  0xf5   :  { %v5210_v10 = vpop.f32.mrf.mxu1 }
  0xf6   :  { %v5165_v34 = vpop.f32.mrf.mxu0  ;;  %v7006_v2 = vadd.f32 %v5209_v31, %v5163_v5  ;;  %v7036_v5 = vld [vmem:[%s7548_s1 + $0xe8] sm:$0xff]  ;;  %v6170_v31 = vld [vmem:[#allocation3 + $0x298] sm:$0xff]  }
  0xf7   :  { %v5166_v27 = vadd.f32 %v5165_v34, %v5164_v22  ;;  %v5211_v46 = vpop.f32.mrf.mxu1 }
  0xf8   :  { %v5212_v50 = vadd.f32 %v5211_v46, %v5210_v10  ;;  %v5167_v63 = vpop.f32.mrf.mxu0  ;;  %3331 = vmatmul.mubr.bf16.vlgmr.msra.gmra.mxu0 %v6834_v3 }
  0xf9   :  { %v5213_v29 = vpop.f32.mrf.mxu1  ;;  %3403 = vmatmul.mubr.bf16.vlgmr.msra.gmra.mxu1 %v6847_v21  ;;  %5698 = vmatpush3.bf16.msra.mxu0 %v6153_v60  ;;  %v4965_v60 = vld [vmem:[%s7548_s1 + $0xf0] sm:$0xff] }
  0xfa   :  { %v7009_v28 = vadd.f32 %v5212_v50, %v5166_v27  ;;  %5744 = vmatpush3.bf16.msra.mxu1 %v6154_v56  ;;  %v5168_v0 = vpop.f32.mrf.mxu0  ;;  %5699 = vmatprep.subr.bf16.mxu0 %v6155_v30  ;;  %v6171_v27 = vld [vmem:[#allocation3 + $0x250] sm:$0xff]   ;;  %v7049_v30 = vld [vmem:[%s7548_s1 + $0xf8] sm:$0xff]  ;;  %v7052_v50 = vcombine.high %v4962_v43, %v7036_v5 }
  0xfb   :  { %v5169_v32 = vadd.f32 %v5168_v0, %v5167_v63  ;;  %v5214_v7 = vpop.f32.mrf.mxu1  ;;  %5745 = vmatprep.subr.bf16.mxu1 %v6156_v14  ;;  %3338 = vmatprep.mubr.bf16.mxu0 %v6820_v59  ;;  %v6174_v0 = vld [vmem:[#allocation3 + $0x290] sm:$0xff]  }
  0xfc   :  { %v5215_v18 = vadd.f32 %v5214_v7, %v5213_v29  ;;  %v5170_v3 = vpop.f32.mrf.mxu0  ;;  %3410 = vmatprep.mubr.bf16.mxu1 %v6829_v44  ;;  %v6166_v44 = vld [vmem:[#allocation3 + $0x2a0] sm:$0xff]   ;;  %v6173_v29 = vld [vmem:[#allocation3 + $0x210] sm:$0xff]  }
  0xfd   :  { %v5216_v19 = vpop.f32.mrf.mxu1  ;;  %5700 = vmatpush3.bf16.msra.mxu0 %v6157_v62  ;;  %v6172_v62 = vld [vmem:[#allocation3 + $0x2d0] sm:$0xff]  }
  0xfe   :  { %v7014_v21 = vadd.f32 %v5215_v18, %v5169_v32  ;;  %v5171_v58 = vpop.f32.mrf.mxu0  ;;  %5746 = vmatpush3.bf16.msra.mxu1 %v6158_v52  ;;  %5701 = vmatprep.subr.bf16.mxu0 %v6159_v36  ;;  %v7060_v32 = vcombine.high %v4965_v60, %v6871_v11 }
  0xff   :  { %v5172_v33 = vadd.f32 %v5171_v58, %v5170_v3  ;;  %v5217_v15 = vpop.f32.mrf.mxu1  ;;  %5747 = vmatprep.subr.bf16.mxu1 %v6160_v9  ;;  %v3645_v58 = vshll.u32 %v7052_v50, 16 }
 0x100   :  { %v5218_v12 = vadd.f32 %v5217_v15, %v5216_v19  ;;  %v5173_v59 = vpop.f32.mrf.mxu0  ;;  %3339 = vmatmul.mubr.bf16.gmra.mxu0 %v6839_v42  ;;  %v7027_v42 = vld [vmem:[%s7548_s1 + $0xe0] sm:$0xff]  ;;  %v4926_v15 = vcombine.high %v6953_v45, %v6953_v45 }
 0x101   :  { %v5219_v41 = vpop.f32.mrf.mxu1  ;;  %3411 = vmatmul.mubr.bf16.gmra.mxu1 %v6864_v23  ;;  %5702 = vmatpush3.bf16.msra.mxu0 %v6161_v47  ;;  %v6168_v23 = vld [vmem:[#allocation3 + $0x2d8] sm:$0xff]   ;;  %v7057_v36 = vcombine.low %v4961_v38, %v7027_v42  ;;  %v6176_v47 = vld [vmem:[#allocation3 + $0x2c8] sm:$0xff]  }
 0x102   :  { %v7018_v1 = vadd.f32 %v5218_v12, %v5172_v33  ;;  %v5174_v57 = vpop.f32.mrf.mxu0  ;;  %5748 = vmatpush3.bf16.msra.mxu1 %v6162_v16  ;;  %3346 = vmatprep.mubr.bf16.mxu0 %v6887_v24 }
 0x103   :  { %v5175_v25 = vadd.f32 %v5174_v57, %v5173_v59  ;;  %v5220_v54 = vpop.f32.mrf.mxu1  ;;  %3418 = vmatprep.mubr.bf16.mxu1 %v6891_v35  ;;  %5703 = vmatprep.subr.bf16.mxu0 %v6163_v40  ;;  %v7039_v35 = vcombine.high %v4961_v38, %v7027_v42  ;;  %v7075_v40 = vcombine.low %v4962_v43, %v7036_v5  ;;  %v6180_v59 = vld [vmem:[#allocation3 + $0x288] sm:$0xff]  }
 0x104   :  { %v5221_v24 = vadd.f32 %v5220_v54, %v5219_v41  ;;  %v5176_v4 = vpop.f32.mrf.mxu0  ;;  %5749 = vmatprep.subr.bf16.mxu1 %v6164_v6  ;;  %v6183_v6 = vld [vmem:[#allocation3 + $0x240] sm:$0xff]   ;;  %v3626_v41 = vshll.u32 %v7060_v32, 16  ;;  %v4928_v38 = vcombine.high %v6962_v55, %v6962_v55 }
 0x105   :  { %v5222_v22 = vpop.f32.mrf.mxu1  ;;  %5704 = vmatpush3.bf16.msra.mxu0 %v6165_v61  ;;  %v3621_v7 = vshll.u32 %v7039_v35, 16  ;;  %v3619_v61 = vshrl.u32 %v7039_v35, 16  ;;  %v6184_v35 = vld [vmem:[#allocation3 + $0x2c0] sm:$0xff]  }
 0x106   :  { %v7041_v34 = vadd.f32 %v5221_v24, %v5175_v25  ;;  %v5177_v10 = vpop.f32.mrf.mxu0  ;;  %5750 = vmatpush3.bf16.msra.mxu1 %v6166_v44  ;;  %5705 = vmatprep.subr.bf16.mxu0 %v6167_v53  ;;  %v3643_v25 = vshrl.u32 %v7052_v50, 16  ;;  %v7087_v24 = vcombine.low %v4965_v60, %v6871_v11  ;;  %v7097_v60 = vcombine.low %v7049_v30, %v6880_v20 }
 0x107   :  { %v5178_v56 = vadd.f32 %v5177_v10, %v5176_v4  ;;  %v5223_v46 = vpop.f32.mrf.mxu1  ;;  %5751 = vmatprep.subr.bf16.mxu1 %v6168_v23  ;;  %v3623_v44 = vrot.slane %v3621_v7, 1  ;;  %v3647_v4 = vrot.slane %v3645_v58, 1  ;;  %v6185_v10 = vld [vmem:[#allocation3 + $0x200] sm:$0xff]   ;;  %v3633_v50 = vshll.u32 %v7075_v40, 16 }
 0x108   :  { %v5224_v14 = vadd.f32 %v5223_v46, %v5222_v22  ;;  %v5179_v63 = vpop.f32.mrf.mxu0  ;;  %3347 = vmatmul.mubr.bf16.gmra.mxu0 %v6907_v48  ;;  %v6175_v48 = vld [vmem:[#allocation3 + $0x248] sm:$0xff]   ;;  %v4969_v22 = vld [vmem:[%s7548_s1 + $0x110] sm:$0xff]  ;;  %v3607_v46 = vshrl.u32 %v7057_v36, 16  ;;  %v3614_v7 = vshll.u32 %v7087_v24, 16 }
 0x109   :  { %v5225_v52 = vpop.f32.mrf.mxu1  ;;  %3419 = vmatmul.mubr.bf16.gmra.mxu1 %v6921_v17  ;;  %5706 = vmatpush3.bf16.msra.mxu0 %v6169_v26  ;;  %v7068_v17 = vcombine.high %v7049_v30, %v6880_v20  ;;  %v3648_v30 = vor.u32 %v3647_v4, %v3643_v25 }
 0x10a   :  { %v7063_v9 = vadd.f32 %v5224_v14, %v5178_v56  ;;  %v5180_v18 = vpop.f32.mrf.mxu0  ;;  %5752 = vmatpush3.bf16.msra.mxu1 %v6170_v31  ;;  %3354 = vmatprep.mubr.bf16.mxu0 %v6927_v49  ;;  %v6179_v49 = vld [vmem:[#allocation3 + $0x208] sm:$0xff]   ;;  %v6186_v56 = vld [vmem:[#allocation3 + $0x280] sm:$0xff]  }
 0x10b   :  { %v5181_v3 = vadd.f32 %v5180_v18, %v5179_v63  ;;  %v5226_v19 = vpop.f32.mrf.mxu1  ;;  %3426 = vmatprep.mubr.bf16.mxu1 %v6932_v37  ;;  %5707 = vmatprep.subr.bf16.mxu0 %v6171_v27  ;;  %v3609_v37 = vshll.u32 %v7057_v36, 16  ;;  %v3650_v54 = vshll.u32 %v7068_v17, 16 }
 0x10c   :  { %v5227_v16 = vadd.f32 %v5226_v19, %v5225_v52  ;;  %v5182_v33 = vpop.f32.mrf.mxu0  ;;  %5753 = vmatprep.subr.bf16.mxu1 %v6172_v62  ;;  %v3628_v62 = vrot.slane %v3626_v41, 1  ;;  %v7106_v52 = vcombine.high %v4969_v22, %v6900_v51  ;;  %v4927_v19 = vcombine.low %v6962_v55, %v6962_v55 }
 0x10d   :  { %v5228_v12 = vpop.f32.mrf.mxu1  ;;  %5708 = vmatpush3.bf16.msra.mxu0 %v6173_v29  ;;  %v3611_v11 = vrot.slane %v3609_v37, 1  ;;  %v6195_v29 = vld [vmem:[#allocation3 + $0x378] sm:$0xff]   ;;  %v3652_v36 = vrot.slane %v3650_v54, 1  ;;  %v3616_v41 = vrot.slane %v3614_v7, 1  ;;  %v3678_v54 = vshrl.u32 %v7068_v17, 16 }
 0x10e   :  { %v7080_v53 = vadd.f32 %v5227_v16, %v5181_v3  ;;  %v5183_v57 = vpop.f32.mrf.mxu0  ;;  %5754 = vmatpush3.bf16.msra.mxu1 %v6174_v0  ;;  %5709 = vmatprep.subr.bf16.mxu0 %v6175_v48  ;;  %v4925_v3 = vcombine.low %v6953_v45, %v6953_v45  ;;  %v3631_v16 = vshrl.u32 %v7075_v40, 16  ;;  %v3666_v37 = vshll.u32 %v7106_v52, 16 }
 0x10f   :  { %v5184_v23 = vadd.f32 %v5183_v57, %v5182_v33  ;;  %v5229_v43 = vpop.f32.mrf.mxu1  ;;  %5755 = vmatprep.subr.bf16.mxu1 %v6176_v47  ;;  %v6196_v47 = vld [vmem:[#allocation3 + $0x3f8] sm:$0xff]   ;;  %v3635_v33 = vrot.slane %v3633_v50, 1  ;;  %v3653_v40 = vsel %vm259_vm0, %v3648_v30, %v3652_v36  ;;  %v6247_v57 = vld [vmem:[%s7548_s1 + $0x120] sm:$0xff] }
 0x110   :  { %v5230_v26 = vadd.f32 %v5229_v43, %v5228_v12  ;;  %v5185_v31 = vpop.f32.mrf.mxu0  ;;  %3355 = vmatmul.mubr.bf16.gmra.mxu0 %v6939_v13  ;;  %v4970_v13 = vld [vmem:[%s7548_s1 + $0x118] sm:$0xff] }
 0x111   :  { %v5231_v27 = vpop.f32.mrf.mxu1  ;;  %3427 = vmatmul.mubr.bf16.gmra.mxu1 %v6947_v39  ;;  %3362 = vmatprep.mubr.bf16.mxu0 %v4926_v15  ;;  %v3624_v39 = vor.u32 %v3623_v44, %v3619_v61  ;;  %v7114_v51 = vcombine.high %v4970_v13, %v6915_v8  ;;  %v3638_v15 = vshll.u32 %v7097_v60, 16  ;;  %v4973_v8 = vld [vmem:[%s7548_s1 + $0x130] sm:$0xff]  ;;  %v3612_v44 = vor.u32 %v3611_v11, %v3607_v46 }
 0x112   :  { %v7103_v14 = vadd.f32 %v5230_v26, %v5184_v23  ;;  %v5186_v63 = vpop.f32.mrf.mxu0  ;;  %3434 = vmatprep.mubr.bf16.mxu1 %v4928_v38  ;;  %5710 = vmatpush3.bf16.msra.mxu0 %v6179_v49  ;;  %v3662_v49 = vshrl.u32 %v7060_v32, 16  ;;  %v7130_v38 = vcombine.low %v4969_v22, %v6247_v57  ;;  %v6248_v26 = vld [vmem:[%s7548_s1 + $0x128] sm:$0xff]  ;;  %v7140_v22 = vcombine.high %v4973_v8, %v6953_v45 }
 0x113   :  { %v5187_v0 = vadd.f32 %v5186_v63, %v5185_v31  ;;  %v5232_v20 = vpop.f32.mrf.mxu1  ;;  %5756 = vmatpush3.bf16.msra.mxu1 %v6180_v59  ;;  %5711 = vmatprep.subr.bf16.mxu0 %v6183_v6  ;;  %v3629_v6 = vsel %vm259_vm0, %v3624_v39, %v3628_v62  ;;  %v3682_v23 = vshll.u32 %v7114_v51, 16  ;;  %v3640_v4 = vrot.slane %v3638_v15, 1  ;;  %v6199_v15 = vld [vmem:[#allocation3 + $0x370] sm:$0xff]  }
 0x114   :  { %v5233_v18 = vadd.f32 %v5232_v20, %v5231_v27  ;;  %v5188_v48 = vpop.f32.mrf.mxu0  ;;  %5757 = vmatprep.subr.bf16.mxu1 %v6184_v35  ;;  %v7137_v31 = vcombine.low %v4970_v13, %v6248_v26  ;;  %v4974_v35 = vld [vmem:[%s7548_s1 + $0x138] sm:$0xff]  ;;  %v3636_v27 = vor.u32 %v3635_v33, %v3631_v16  ;;  %v3668_v46 = vrot.slane %v3666_v37, 1 }
 0x115   :  { %v5234_v58 = vpop.f32.mrf.mxu1  ;;  %v3654_v11 = vshrl.u32 %v7087_v24, 16  ;;  %v3617_v39 = vsel %vm259_vm0, %v3612_v44, %v3616_v41  ;;  %v3658_v13 = vshll.u32 %v7130_v38, 16  ;;  %v3680_v20 = vor.u32 %v3678_v54, %v3652_v36  ;;  %v6200_v36 = vld [vmem:[#allocation3 + $0x3f0] sm:$0xff]  }
 0x116   :  { %v7119_v12 = vadd.f32 %v5233_v18, %v5187_v0  ;;  %v5189_v59 = vpop.f32.mrf.mxu0  ;;  %5712 = vmatpush3.bf16.msra.mxu0 %v6185_v10  ;;  %v3684_v30 = vrot.slane %v3682_v23, 1  ;;  %v7149_v7 = vcombine.high %v4974_v35, %v6962_v55  ;;  %v3698_v58 = vshll.u32 %v7140_v22, 16  ;;  %v6202_v54 = vld [vmem:[#allocation3 + $0x3b0] sm:$0xff]  }
 0x117   :  { %v5235_v61 = vpop.f32.mrf.mxu1  ;;  %5758 = vmatpush3.bf16.msra.mxu1 %v6186_v56  ;;  %5789 = vmatprep.subr.bf16.mxu0 %v6195_v29  ;;  %v3664_v56 = vor.u32 %v3662_v49, %v3628_v62  ;;  %v6197_v62 = vld [vmem:[#allocation3 + $0x338] sm:$0xff]   ;;  %v3641_v33 = vsel %vm259_vm0, %v3636_v27, %v3640_v4  ;;  %v3656_v55 = vor.u32 %v3654_v11, %v3616_v41  ;;  %v3694_v59 = vshrl.u32 %v7106_v52, 16  ;;  %v6208_v11 = vld [vmem:[#allocation3 + $0x3e8] sm:$0xff]  }
 0x118   :  { %v5253_v25 = vpop.f32.mrf.mxu0  ;;  %3363 = vmatmul.mubr.bf16.gmra.mxu0 %v4925_v3  ;;  %5835 = vmatprep.subr.bf16.mxu1 %v6196_v47  ;;  %v6198_v3 = vld [vmem:[#allocation3 + $0x3b8] sm:$0xff]   ;;  %v3674_v47 = vshll.u32 %v7137_v31, 16  ;;  %v6201_v61 = vld [vmem:[#allocation3 + $0x330] sm:$0xff]   ;;  %v7163_v44 = vcombine.low %v4973_v8, %v6953_v45  ;;  %v3685_v23 = vsel %vm259_vm0, %v3680_v20, %v3684_v30  ;;  %v3710_v41 = vshrl.u32 %v7114_v51, 16 }
 0x119   :  { %v5299_v43 = vpop.f32.mrf.mxu1  ;;  %3435 = vmatmul.mubr.bf16.gmra.mxu1 %v4927_v19  ;;  %4006 = vmatprep.mubr.bf16.mxu0 %v3629_v6  ;;  %v3670_v19 = vshrl.u32 %v7097_v60, 16  ;;  %v3669_v49 = vsel %vm259_vm0, %v3664_v56, %v3668_v46  ;;  %v3714_v26 = vshll.u32 %v7149_v7, 16 }
 0x11a   :  { %v5254_v10 = vpop.f32.mrf.mxu0  ;;  %4078 = vmatprep.mubr.bf16.mxu1 %v3653_v40  ;;  %v7160_v40 = vrot.slane %v3658_v13, 1  ;;  %v3676_v56 = vrot.slane %v3674_v47, 1  ;;  %v6249_v13 = vld [vmem:[%s7548_s1 + $0x148] sm:$0xff] }
 0x11b   :  { %v5255_v50 = vadd.f32 %v5254_v10, %v5253_v25  ;;  %v5300_v63 = vpop.f32.mrf.mxu1  ;;  %v7171_v10 = vld [vmem:[%s7548_s1 + $0x154] ss:$16 sps:$4 sm:$0x1f]   ;;  %v3672_v8 = vor.u32 %v3670_v19, %v3640_v4  ;;  %v6209_v4 = vld [vmem:[#allocation3 + $0x328] sm:$0xff]   ;;  %v3712_v19 = vor.u32 %v3710_v41, %v3684_v30  ;;  %v3716_v47 = vrot.slane %v3714_v26, 1 }
 0x11c   :  { %v5301_v29 = vadd.f32 %v5300_v63, %v5299_v43  ;;  %v5256_v0 = vpop.f32.mrf.mxu0  ;;  %v6207_v43 = vld [vmem:[#allocation3 + $0x368] sm:$0xff]   ;;  %v6214_v30 = vld [vmem:[#allocation3 + $0x3e0] sm:$0xff]   ;;  %v3742_v26 = vshrl.u32 %v7149_v7, 16 }
 0x11d   :  { %v1023_v18 = vadd.f32 %v5255_v50, %v7006_v2  ;;  %v5302_v48 = vpop.f32.mrf.mxu1  ;;  %v7174_v50 = vrot.slane %v3698_v58, 1  ;;  %v3717_v41 = vsel %vm259_vm0, %v3712_v19, %v3716_v47  ;;  %v7215_v19 = vld [vmem:[%s7548_s1 + $0x158] ss:$16 sps:$4 sm:$0x1f]  }
 0x11e   :  { %v5257_v16 = vpop.f32.mrf.mxu0 }
 0x11f   :  { %v7158_v2 = vadd.f32 %v5301_v29, %v1023_v18  ;;  %v5258_v6 = vadd.f32 %v5257_v16, %v5256_v0  ;;  %v5303_v37 = vpop.f32.mrf.mxu1  ;;  %v7179_v29 = vcombine.low %v4974_v35, %v6249_v13  ;;  %v3686_v18 = vshrl.u32 %v7130_v38, 16  ;;  %v7188_v35 = vld [vmem:[%s7548_s1 + $0x15c] ss:$16 sps:$4 sm:$0x1f]  }
 0x120   :  { %v5304_v57 = vadd.f32 %v5303_v37, %v5302_v48  ;;  %v5259_v25 = vpop.f32.mrf.mxu0  ;;  %4007 = vmatmul.mubr.bf16.vlgmr.msra.gmra.mxu0 %v3617_v39  ;;  %v3696_v39 = vor.u32 %v3694_v59, %v3668_v46  ;;  %v3690_v48 = vshll.u32 %v7163_v44, 16  ;;  %v6210_v46 = vld [vmem:[#allocation3 + $0x3a8] sm:$0xff]   ;;  %v3702_v59 = vshrl.u32 %v7137_v31, 16 }
 0x121   :  { %v1026_v27 = vadd.f32 %v5258_v6, %v7009_v28  ;;  %v5305_v45 = vpop.f32.mrf.mxu1  ;;  %4079 = vmatmul.mubr.bf16.vlgmr.msra.gmra.mxu1 %v3641_v33  ;;  %5790 = vmatpush3.bf16.msra.mxu0 %v6197_v62  ;;  %v3661_v33 = vsel %vm259_vm0, %v3656_v55, %v7160_v40  ;;  %v3706_v6 = vshll.u32 %v7179_v29, 16  ;;  %v3726_v37 = vshrl.u32 %v7140_v22, 16 }
 0x122   :  { %5836 = vmatpush3.bf16.msra.mxu1 %v6198_v3  ;;  %v5260_v63 = vpop.f32.mrf.mxu0  ;;  %5791 = vmatprep.subr.bf16.mxu0 %v6199_v15  ;;  %v3677_v15 = vsel %vm259_vm0, %v3672_v8, %v3676_v56  ;;  %v3701_v55 = vsel %vm259_vm0, %v3696_v39, %v7174_v50  ;;  %v6217_v39 = vld [vmem:[#allocation3 + $0x320] sm:$0xff]  }
 0x123   :  { %v7181_v0 = vadd.f32 %v5304_v57, %v1026_v27  ;;  %v5261_v28 = vadd.f32 %v5260_v63, %v5259_v25  ;;  %v5306_v20 = vpop.f32.mrf.mxu1  ;;  %5837 = vmatprep.subr.bf16.mxu1 %v6200_v36  ;;  %4014 = vmatprep.mubr.bf16.mxu0 %v3669_v49  ;;  %v6213_v36 = vld [vmem:[#allocation3 + $0x360] sm:$0xff]   ;;  %v3746_v27 = vshll.u32 %v7188_v35, 16  ;;  %v3692_v63 = vrot.slane %v3690_v48, 1 }
 0x124   :  { %v5307_v62 = vadd.f32 %v5306_v20, %v5305_v45  ;;  %v5262_v3 = vpop.f32.mrf.mxu0  ;;  %4086 = vmatprep.mubr.bf16.mxu1 %v3685_v23  ;;  %v3708_v20 = vrot.slane %v3706_v6, 1  ;;  %v6221_v6 = vld [vmem:[#allocation3 + $0x318] sm:$0xff]  }
 0x125   :  { %v1031_v58 = vadd.f32 %v5261_v28, %v7014_v21  ;;  %v5308_v16 = vpop.f32.mrf.mxu1  ;;  %5792 = vmatpush3.bf16.msra.mxu0 %v6201_v61  ;;  %v3730_v21 = vshll.u32 %v7171_v10, 16  ;;  %v3704_v28 = vor.u32 %v3702_v59, %v3676_v56 }
 0x126   :  { %v5263_v49 = vpop.f32.mrf.mxu0  ;;  %5838 = vmatpush3.bf16.msra.mxu1 %v6202_v54  ;;  %5793 = vmatprep.subr.bf16.mxu0 %v6207_v43  ;;  %v7205_v54 = vld [vmem:[%s7548_s1 + $0x150] ss:$16 sps:$4 sm:$0x1f]  }
 0x127   :  { %v7198_v57 = vadd.f32 %v5307_v62, %v1031_v58  ;;  %v5264_v61 = vadd.f32 %v5263_v49, %v5262_v3  ;;  %v5309_v25 = vpop.f32.mrf.mxu1  ;;  %5839 = vmatprep.subr.bf16.mxu1 %v6208_v11  ;;  %v3688_v11 = vor.u32 %v3686_v18, %v7160_v40  ;;  %v6218_v62 = vld [vmem:[#allocation3 + $0x3a0] sm:$0xff]   ;;  %v6219_v3 = vld [vmem:[#allocation3 + $0x358] sm:$0xff]   ;;  %v3728_v18 = vor.u32 %v3726_v37, %v7174_v50 }
 0x128   :  { %v5310_v23 = vadd.f32 %v5309_v25, %v5308_v16  ;;  %v5265_v43 = vpop.f32.mrf.mxu0  ;;  %4015 = vmatmul.mubr.bf16.gmra.mxu0 %v3661_v33  ;;  %v6220_v40 = vld [vmem:[#allocation3 + $0x3d8] sm:$0xff]   ;;  %v3732_v48 = vrot.slane %v3730_v21, 1  ;;  %v3744_v16 = vor.u32 %v3742_v26, %v3716_v47  ;;  %v3748_v33 = vrot.slane %v3746_v27, 1 }
 0x129   :  { %v1034_v45 = vadd.f32 %v5264_v61, %v7018_v1  ;;  %v5311_v8 = vpop.f32.mrf.mxu1  ;;  %4087 = vmatmul.mubr.bf16.gmra.mxu1 %v3677_v15  ;;  %5794 = vmatpush3.bf16.msra.mxu0 %v6209_v4  ;;  %v3693_v59 = vsel %vm259_vm0, %v3688_v11, %v3692_v63  ;;  %v3718_v61 = vshrl.u32 %v7163_v44, 16  ;;  %v3709_v50 = vsel %vm259_vm0, %v3704_v28, %v3708_v20  ;;  %v6222_v37 = vld [vmem:[#allocation3 + $0x398] sm:$0xff]   ;;  %v6231_v28 = vld [vmem:[#allocation3 + $0x310] sm:$0xff]  }
 0x12a   :  { %v5266_v13 = vpop.f32.mrf.mxu0  ;;  %5840 = vmatpush3.bf16.msra.mxu1 %v6210_v46  ;;  %4022 = vmatprep.mubr.bf16.mxu0 %v3701_v55  ;;  %v3734_v47 = vshrl.u32 %v7179_v29, 16  ;;  %v3749_v27 = vsel %vm259_vm0, %v3744_v16, %v3748_v33 }
 0x12b   :  { %v7217_v1 = vadd.f32 %v5310_v23, %v1034_v45  ;;  %v5267_v58 = vadd.f32 %v5266_v13, %v5265_v43  ;;  %v5312_v4 = vpop.f32.mrf.mxu1  ;;  %4094 = vmatprep.mubr.bf16.mxu1 %v3717_v41  ;;  %5795 = vmatprep.subr.bf16.mxu0 %v6213_v36  ;;  %v3722_v36 = vshll.u32 %v7205_v54, 16  ;;  %v3733_v23 = vsel %vm259_vm0, %v3728_v18, %v3732_v48  ;;  %v6229_v43 = vld [vmem:[#allocation3 + $0x350] sm:$0xff]   ;;  %v6233_v18 = vld [vmem:[#allocation3 + $0x348] sm:$0xff]  }
 0x12c   :  { %v5313_v46 = vadd.f32 %v5312_v4, %v5311_v8  ;;  %v5268_v56 = vpop.f32.mrf.mxu0  ;;  %5841 = vmatprep.subr.bf16.mxu1 %v6214_v30  ;;  %v3738_v30 = vshll.u32 %v7215_v19, 16  ;;  %v6230_v45 = vld [vmem:[#allocation3 + $0x3d0] sm:$0xff]  }
 0x12d   :  { %v1039_v15 = vadd.f32 %v5267_v58, %v7041_v34  ;;  %v5314_v49 = vpop.f32.mrf.mxu1  ;;  %5796 = vmatpush3.bf16.msra.mxu0 %v6217_v39  ;;  %v3720_v39 = vor.u32 %v3718_v61, %v3692_v63  ;;  %v7232_v13 = vrot.slane %v3722_v36, 1  ;;  %v3736_v58 = vor.u32 %v3734_v47, %v3708_v20  ;;  %v6234_v63 = vld [vmem:[#allocation3 + $0x3c8] sm:$0xff]  }
 0x12e   :  { %v5269_v25 = vpop.f32.mrf.mxu0  ;;  %5842 = vmatpush3.bf16.msra.mxu1 %v6218_v62  ;;  %5797 = vmatprep.subr.bf16.mxu0 %v6219_v3  ;;  %v3753_v62 = vshrl.u32 %v7171_v10, 16  ;;  %v7235_v4 = vrot.slane %v3738_v30, 1  ;;  %v6235_v30 = vld [vmem:[#allocation3 + $0x308] sm:$0xff]  }
 0x12f   :  { %v7227_v34 = vadd.f32 %v5313_v46, %v1039_v15  ;;  %v5270_v21 = vadd.f32 %v5269_v25, %v5268_v56  ;;  %v5315_v55 = vpop.f32.mrf.mxu1  ;;  %5843 = vmatprep.subr.bf16.mxu1 %v6220_v40  ;;  %v6232_v40 = vld [vmem:[#allocation3 + $0x390] sm:$0xff]   ;;  %v3759_v46 = vshrl.u32 %v7188_v35, 16  ;;  %v3725_v36 = vsel %vm259_vm0, %v3720_v39, %v7232_v13 }
 0x130   :  { %v5316_v41 = vadd.f32 %v5315_v55, %v5314_v49  ;;  %v5271_v26 = vpop.f32.mrf.mxu0  ;;  %4023 = vmatmul.mubr.bf16.gmra.mxu0 %v3693_v59  ;;  %v7243_v15 = vld [vmem:[%s7548_s1 + $0xd0] sm:$0xee]  ;;  %v7248_v59 = vld [vmem:[%s7548_s1 + $0xd8] sm:$0xee]  ;;  %v3755_v25 = vor.u32 %v3753_v62, %v3732_v48  ;;  %v3756_v39 = vshrl.u32 %v7215_v19, 16  ;;  %v6239_v62 = vld [vmem:[#allocation3 + $0x300] sm:$0xff]  }
 0x131   :  { %v1042_v8 = vadd.f32 %v5270_v21, %v7063_v9  ;;  %v5317_v11 = vpop.f32.mrf.mxu1  ;;  %4095 = vmatmul.mubr.bf16.gmra.mxu1 %v3709_v50  ;;  %5798 = vmatpush3.bf16.msra.mxu0 %v6221_v6  ;;  %v3761_v47 = vor.u32 %v3759_v46, %v3748_v33  ;;  %v5036_v21 = vcombine.high %v7243_v15, %v7027_v42  ;;  %v6238_v33 = vld [vmem:[#allocation3 + $0x3c0] sm:$0xff]   ;;  %s6297_s1 = smov [#allocation6]  }
 0x132   :  { %v5272_v3 = vpop.f32.mrf.mxu0  ;;  %5844 = vmatpush3.bf16.msra.mxu1 %v6222_v37  ;;  %4030 = vmatprep.mubr.bf16.mxu0 %v3733_v23  ;;  %v3741_v37 = vsel %vm259_vm0, %v3736_v58, %v7235_v4  ;;  %v5038_v48 = vcombine.high %v7248_v59, %v7036_v5  ;;  %v4207_v58 = vrot.slane %v7060_v32, 1  ;;  %v3758_v32 = vor.u32 %v3756_v39, %v7235_v4  ;;  %s4656_s17 = sshll.u32 %s6297_s1, 4  ;;  %s4657_s17 = int_to_ptr.vmem [resolvable:$true] %s4656_s17 }
 0x133   :  { %v7238_v9 = vadd.f32 %v5316_v41, %v1042_v8  ;;  %v5273_v56 = vadd.f32 %v5272_v3, %v5271_v26  ;;  %v5318_v16 = vpop.f32.mrf.mxu1  ;;  %4102 = vmatprep.mubr.bf16.mxu1 %v3749_v27  ;;  %5799 = vmatprep.subr.bf16.mxu0 %v6229_v43  ;;  %v6236_v43 = vld [vmem:[#allocation3 + $0x388] sm:$0xff]   ;;  %v6237_v41 = vld [vmem:[#allocation3 + $0x340] sm:$0xff]   ;;  %v4206_v3 = vrot.slane %v5036_v21, 1  ;;  %v4225_v39 = vrot.slane %v7140_v22, 1  ;;  %s6270_s2 = scalar_lea.vmem %s4657_s17, 1152  ;;  %p6275_p6 = scmp.lt.s32.totalorder %s4657_s17, %s4657_s17 }
 0x134   :  { %v5319_v49 = vadd.f32 %v5318_v16, %v5317_v11  ;;  %v5274_v20 = vpop.f32.mrf.mxu0  ;;  %5845 = vmatprep.subr.bf16.mxu1 %v6230_v45  ;;  %v3750_v45 = vshrl.u32 %v7205_v54, 16  ;;  %v4213_v16 = vrot.slane %v7068_v17, 1  ;;  %v5037_v17 = vcombine.low %v7248_v59, %v7036_v5  ;;  %p6271_p5 = scmp.ne.s32.totalorder %s4657_s17, %s6270_s2  ;;  %p6276_p7 = scmp.lt.s32.totalorder %s6270_s2, %s6270_s2 }
 0x135   :  { %v1047_v6 = vadd.f32 %v5273_v56, %v7080_v53  ;;  %v5320_v61 = vpop.f32.mrf.mxu1  ;;  %5800 = vmatpush3.bf16.msra.mxu0 %v6231_v28  ;;  %v6240_v56 = vld [vmem:[#allocation3 + $0x380] sm:$0xff]   ;;  %v4210_v5 = vrot.slane %v7097_v60, 1  ;;  %v4217_v59 = vrot.slane %v7106_v52, 1 }
 0x136   :  { %v5275_v50 = vpop.f32.mrf.mxu0  ;;  %5846 = vmatpush3.bf16.msra.mxu1 %v6232_v40  ;;  %5801 = vmatprep.subr.bf16.mxu0 %v6233_v18  ;;  %v4209_v21 = vrot.slane %v5037_v17, 1  ;;  %p6277_p8 = por %p6276_p7, %p6275_p6 }
 0x137   :  { %v7257_v55 = vadd.f32 %v5319_v49, %v1047_v6  ;;  %v5276_v53 = vadd.f32 %v5275_v50, %v5274_v20  ;;  %v5321_v23 = vpop.f32.mrf.mxu1  ;;  %5847 = vmatprep.subr.bf16.mxu1 %v6234_v63  ;;  %v3752_v20 = vor.u32 %v3750_v45, %v7232_v13  ;;  %v4208_v50 = vsel %vm1893_vm1, %v4206_v3, %v4207_v58 }
 0x138   :  { %v5322_v26 = vadd.f32 %v5321_v23, %v5320_v61  ;;  %v5277_v27 = vpop.f32.mrf.mxu0  ;;  %4031 = vmatmul.mubr.bf16.gmra.mxu0 %v3725_v36  ;;  %v5035_v36 = vcombine.low %v7243_v15, %v7027_v42  ;;  %v4204_v15 = vrot.slane %v7087_v24, 1  ;;  %v4221_v23 = vrot.slane %v7114_v51, 1  ;;  %p6278_p9 = pnand %p6277_p8, %p6271_p5 }
 0x139   :  { %v1050_v8 = vadd.f32 %v5276_v53, %v7103_v14  ;;  %v5323_v11 = vpop.f32.mrf.mxu1  ;;  %4103 = vmatmul.mubr.bf16.gmra.mxu1 %v3741_v37  ;;  %4038 = vmatprep.mubr.bf16.mxu0 %v3755_v25  ;;  %v4212_v14 = vrot.slane %v5038_v48, 1  ;;  %v4211_v24 = vsel %vm1893_vm1, %v4209_v21, %v4210_v5 }
 0x13a   :  { %v5278_v28 = vpop.f32.mrf.mxu0  ;;  %4110 = vmatprep.mubr.bf16.mxu1 %v3761_v47  ;;  %5802 = vmatpush3.bf16.msra.mxu0 %v6235_v30  ;;  %v4203_v42 = vrot.slane %v5035_v36, 1  ;;  %v4222_v60 = vsel %vm1893_vm1, %v4213_v16, %v4221_v23 }
 0x13b   :  { %v7265_v40 = vadd.f32 %v5322_v26, %v1050_v8  ;;  %v5279_v18 = vadd.f32 %v5278_v28, %v5277_v27  ;;  %v5324_v46 = vpop.f32.mrf.mxu1  ;;  %5848 = vmatpush3.bf16.msra.mxu1 %v6236_v43  ;;  %5803 = vmatprep.subr.bf16.mxu0 %v6237_v41  ;;  %v4214_v13 = vsel %vm1893_vm1, %v4212_v14, %v4213_v16  ;;  %v4223_v16 = vrot.slane %v7163_v44, 1 }
 0x13c   :  { %v5325_v63 = vadd.f32 %v5324_v46, %v5323_v11  ;;  %v5280_v49 = vpop.f32.mrf.mxu0  ;;  %5849 = vmatprep.subr.bf16.mxu1 %v6238_v33  ;;  %v4205_v48 = vsel %vm1893_vm1, %v4203_v42, %v4204_v15  ;;  %v4218_v27 = vsel %vm1893_vm1, %v4207_v58, %v4217_v59  ;;  %v4215_v33 = vrot.slane %v7130_v38, 1 }
 0x13d   :  { %v1055_v6 = vadd.f32 %v5279_v18, %v7119_v12  ;;  %v5326_v61 = vpop.f32.mrf.mxu1  ;;  %v4219_v11 = vrot.slane %v7137_v31, 1  ;;  %v4227_v49 = vrot.slane %v7179_v29, 1 }
 0x13e   :  { %v5281_v25 = vpop.f32.mrf.mxu0  ;;  %5804 = vmatpush3.bf16.msra.mxu0 %v6239_v62  ;;  %v4229_v62 = vrot.slane %v7149_v7, 1  ;;  %v4216_v18 = vsel %vm1893_vm1, %v4204_v15, %v4215_v33  ;;  %v4237_v61 = vrot.slane %v7188_v35, 1  ;;  %v4235_v15 = vrot.slane %v7215_v19, 1 }
 0x13f   :  { %v7276_v37 = vadd.f32 %v5325_v63, %v1055_v6  ;;  %v5327_v47 = vpop.f32.mrf.mxu1  ;;  %5850 = vmatpush3.bf16.msra.mxu1 %v6240_v56  ;;  %v4220_v38 = vsel %vm1893_vm1, %v4210_v5, %v4219_v11  ;;  %v4226_v56 = vsel %vm1893_vm1, %v4217_v59, %v4225_v39  ;;  %v4224_v25 = vsel %vm1893_vm1, %v4215_v33, %v4223_v16 }
 0x140   :  { %v7279_v12 = vpop.f32.mrf.mxu0  ;;  %4039 = vmatmul.mubr.bf16.gmra.mxu0 %v3752_v20  ;;  %v4230_v31 = vsel %vm1893_vm1, %v4221_v23, %v4229_v62  ;;  %v4233_v20 = vrot.slane %v7171_v10, 1  ;;  %v4228_v44 = vsel %vm1893_vm1, %v4219_v11, %v4227_v49  ;;  %v4238_v10 = vsel %vm1893_vm1, %v4229_v62, %v4237_v61 }
 0x141   :  { %v7281_v4 = vpop.f32.mrf.mxu1  ;;  %4111 = vmatmul.mubr.bf16.gmra.mxu1 %v3758_v32  ;;  %4483 = vmatprep.mubr.bf16.mxu0 %v4208_v50 }
 0x142   :  { %v7284_v30 = vpop.f32.mrf.mxu0  ;;  %4555 = vmatprep.mubr.bf16.mxu1 %v4214_v13  ;;  %v4234_v17 = vsel %vm1893_vm1, %v4225_v39, %v4233_v20  ;;  %v4231_v13 = vrot.slane %v7205_v54, 1 }
 0x143   :  { %v7288_v53 = vpop.f32.mrf.mxu1 }
 0x144   :  { %v7291_v43 = vpop.f32.mrf.mxu0  ;;  %v4232_v23 = vsel %vm1893_vm1, %v4223_v16, %v4231_v13 }
 0x145   :  { %v7293_v41 = vpop.f32.mrf.mxu1 }
 0x146   :  { %v7296_v26 = vpop.f32.mrf.mxu0 }
 0x147   :  { %v7300_v45 = vpop.f32.mrf.mxu1 }
 0x148   :  { %v7303_v52 = vpop.f32.mrf.mxu0  ;;  %4484 = vmatmul.mubr.bf16.vlgmr.msra.gmra.mxu0 %v4205_v48 }
 0x149   :  { %v7305_v51 = vpop.f32.mrf.mxu1  ;;  %4556 = vmatmul.mubr.bf16.vlgmr.msra.gmra.mxu1 %v4211_v24  ;;  %4491 = vmatprep.mubr.bf16.mxu0 %v4218_v27  ;;  %v4236_v24 = vsel %vm1893_vm1, %v4227_v49, %v4235_v15  ;;  %v5350_v49 = vadd.f32 %v7296_v26, %v7291_v43 }
 0x14a   :  { %v7308_v8 = vpop.f32.mrf.mxu0  ;;  %4563 = vmatprep.mubr.bf16.mxu1 %v4222_v60 }
 0x14b   :  { %v7312_v28 = vpop.f32.mrf.mxu1  ;;  %v5353_v43 = vadd.f32 %v7308_v8, %v7303_v52 }
 0x14c   :  { %v7315_v3 = vpop.f32.mrf.mxu0 }
 0x14d   :  { %v7317_v58 = vpop.f32.mrf.mxu1 }
 0x14e   :  { %v7320_v46 = vpop.f32.mrf.mxu0 }
 0x14f   :  { %v7324_v14 = vpop.f32.mrf.mxu1 }
 0x150   :  { %v7327_v22 = vpop.f32.mrf.mxu0  ;;  %4492 = vmatmul.mubr.bf16.gmra.mxu0 %v4216_v18 }
 0x151   :  { %v7329_v7 = vpop.f32.mrf.mxu1  ;;  %4564 = vmatmul.mubr.bf16.gmra.mxu1 %v4220_v38  ;;  %4499 = vmatprep.mubr.bf16.mxu0 %v4226_v56  ;;  %v5347_v56 = vadd.f32 %v7284_v30, %v7279_v12 }
 0x152   :  { %v7332_v63 = vpop.f32.mrf.mxu0  ;;  %4571 = vmatprep.mubr.bf16.mxu1 %v4230_v31  ;;  %v5393_v31 = vadd.f32 %v7288_v53, %v7281_v4 }
 0x153   :  { %v7336_v6 = vpop.f32.mrf.mxu1 }
 0x154   :  { %v7339_v32 = vpop.f32.mrf.mxu0 }
 0x155   :  { %v7341_v36 = vpop.f32.mrf.mxu1 }
 0x156   :  { %v7344_v50 = vpop.f32.mrf.mxu0 }
 0x157   :  { %v7348_v47 = vpop.f32.mrf.mxu1 }
 0x158   :  { %v7351_v29 = vpop.f32.mrf.mxu0  ;;  %4500 = vmatmul.mubr.bf16.gmra.mxu0 %v4224_v25 }
 0x159   :  { %v7353_v35 = vpop.f32.mrf.mxu1  ;;  %4572 = vmatmul.mubr.bf16.gmra.mxu1 %v4228_v44  ;;  %4507 = vmatprep.mubr.bf16.mxu0 %v4234_v17 }
 0x15a   :  { %v7356_v42 = vpop.f32.mrf.mxu0  ;;  %4579 = vmatprep.mubr.bf16.mxu1 %v4238_v10 }
 0x15b   :  { %v7359_v21 = vpop.f32.mrf.mxu1 }
 0x15c   :  { %v7361_v5 = vpop.f32.mrf.mxu0 }
 0x15d   :  { %v7363_v59 = vpop.f32.mrf.mxu1 }
 0x15e   :  { %v7366_v48 = vpop.f32.mrf.mxu0 }
 0x15f   :  { %v7369_v27 = vpop.f32.mrf.mxu1 }
 0x160   :  { %v7371_v54 = vpop.f32.mrf.mxu0  ;;  %4508 = vmatmul.mubr.bf16.gmra.mxu0 %v4232_v23 }
 0x161   :  { %v7373_v60 = vpop.f32.mrf.mxu1  ;;  %4580 = vmatmul.mubr.bf16.gmra.mxu1 %v4236_v24  ;;  %4515 = vmatprep.mubr.bf16.mxu0 %v4233_v20  ;;  %v5396_v20 = vadd.f32 %v7300_v45, %v7293_v41  ;;  %v5399_v41 = vadd.f32 %v7312_v28, %v7305_v51 }
 0x162   :  { %v7375_v19 = vpop.f32.mrf.mxu0  ;;  %4587 = vmatprep.mubr.bf16.mxu1 %v4237_v61 }
 0x163   :  { %v7377_v33 = vpop.f32.mrf.mxu1  ;;  %v1774_v24 = vadd.f32 %v5396_v20, %v5350_v49  ;;  %v1779_v8 = vadd.f32 %v5399_v41, %v5353_v43 }
 0x164   :  { %v5372_v11 = vpop.f32.mrf.mxu0 }
 0x165   :  { %v5418_v39 = vpop.f32.mrf.mxu1  ;;  %v1809_v45 = vadd.f32 %v1774_v24, %v7181_v0  ;;  %v5362_v24 = vadd.f32 %v7344_v50, %v7339_v32 }
 0x166   :  { %v5373_v62 = vpop.f32.mrf.mxu0 }
 0x167   :  { %v5419_v18 = vpop.f32.mrf.mxu1  ;;  %v5356_v62 = vadd.f32 %v7320_v46, %v7315_v3 }
 0x168   :  { %v5437_v38 = vpop.f32.mrf.mxu0  ;;  %4516 = vmatmul.mubr.bf16.gmra.mxu0 %v4231_v13  ;;  %v1771_v13 = vadd.f32 %v5393_v31, %v5347_v56  ;;  %v5402_v18 = vadd.f32 %v7324_v14, %v7317_v58  ;;  %v1810_v58 = vadd.f32 %v1779_v8, %v7198_v57  ;;  %v5359_v14 = vadd.f32 %v7332_v63, %v7327_v22 }
 0x169   :  { %v5483_v16 = vpop.f32.mrf.mxu1  ;;  %4588 = vmatmul.mubr.bf16.gmra.mxu1 %v4235_v15 }
 0x16a   :  { %v5438_v61 = vpop.f32.mrf.mxu0  ;;  %v1808_v39 = vadd.f32 %v1771_v13, %v7158_v2  ;;  %v1782_v51 = vadd.f32 %v5402_v18, %v5356_v62  ;;  %v5411_v62 = vadd.f32 %v7359_v21, %v7353_v35  ;;  %v5417_v21 = vadd.f32 %v7377_v33, %v7373_v60 }
 0x16b   :  { %v5484_v25 = vpop.f32.mrf.mxu1  ;;  %v5439_v44 = vadd.f32 %v5438_v61, %v5437_v38 }
 0x16c   :  { %v5485_v17 = vadd.f32 %v5484_v25, %v5483_v16  ;;  %v5440_v10 = vpop.f32.mrf.mxu0 }
 0x16d   :  { %v5486_v23 = vpop.f32.mrf.mxu1 }
 0x16e   :  { %v5441_v12 = vpop.f32.mrf.mxu0  ;;  %v2249_v4 = vadd.f32 %v5485_v17, %v5439_v44 }
 0x16f   :  { %v5442_v30 = vadd.f32 %v5441_v12, %v5440_v10  ;;  %v5487_v11 = vpop.f32.mrf.mxu1  ;;  %v5405_v10 = vadd.f32 %v7336_v6, %v7329_v7  ;;  %v5408_v12 = vadd.f32 %v7348_v47, %v7341_v36  ;;  %v5365_v47 = vadd.f32 %v7356_v42, %v7351_v29 }
 0x170   :  { %v5488_v53 = vadd.f32 %v5487_v11, %v5486_v23  ;;  %v5443_v15 = vpop.f32.mrf.mxu0  ;;  %v2286_v16 = vadd.f32 %v2249_v4, %v1808_v39  ;;  %v1811_v23 = vadd.f32 %v1782_v51, %v7217_v1 }
 0x171   :  { %v5489_v26 = vpop.f32.mrf.mxu1  ;;  %v1787_v63 = vadd.f32 %v5405_v10, %v5359_v14  ;;  %v1790_v7 = vadd.f32 %v5408_v12, %v5362_v24  ;;  %v1795_v42 = vadd.f32 %v5411_v62, %v5365_v47 }
 0x172   :  { %v2252_v38 = vadd.f32 %v5488_v53, %v5442_v30  ;;  %v5444_v56 = vpop.f32.mrf.mxu0 }
 0x173   :  { %v5490_v31 = vpop.f32.mrf.mxu1  ;;  %v5445_v49 = vadd.f32 %v5444_v56, %v5443_v15  ;;  %v1812_v36 = vadd.f32 %v1787_v63, %v7227_v34  ;;  %v5368_v56 = vadd.f32 %v7366_v48, %v7361_v5 }
 0x174   :  { %v2287_v2 = vadd.f32 %v2252_v38, %v1809_v45  ;;  %v5491_v20 = vadd.f32 %v5490_v31, %v5489_v26  ;;  %v5446_v52 = vpop.f32.mrf.mxu0  ;;  %v1813_v38 = vadd.f32 %v1790_v7, %v7238_v9  ;;  %v5414_v31 = vadd.f32 %v7369_v27, %v7363_v59 }
 0x175   :  { %v5492_v61 = vpop.f32.mrf.mxu1  ;;  %v5371_v9 = vadd.f32 %v7375_v19, %v7371_v54 }
 0x176   :  { %v5101_v28 = vpack.c.bf16 %v2287_v2, %v2286_v16  ;;  %v5447_v25 = vpop.f32.mrf.mxu0  ;;  %v2257_v3 = vadd.f32 %v5491_v20, %v5445_v49  ;;  %v1798_v35 = vadd.f32 %v5414_v31, %v5368_v56 }
 0x177   :  { %v5448_v0 = vadd.f32 %v5447_v25, %v5446_v52  ;;  %v5493_v44 = vpop.f32.mrf.mxu1 }
 0x178   :  { %5102 = vst [vmem:[#allocation6] sm:$0xff] %v5101_v28   ;;  %v5494_v46 = vadd.f32 %v5493_v44, %v5492_v61  ;;  %v5449_v17 = vpop.f32.mrf.mxu0  ;;  %v2288_v53 = vadd.f32 %v2257_v3, %v1810_v58  ;;  %v1814_v44 = vadd.f32 %v1795_v42, %v7257_v55  ;;  %v1815_v3 = vadd.f32 %v1798_v35, %v7265_v40 }
 0x179   :  { %v5495_v13 = vpop.f32.mrf.mxu1 }
 0x17a   :  { %v2260_v30 = vadd.f32 %v5494_v46, %v5448_v0  ;;  %v5450_v11 = vpop.f32.mrf.mxu0  ;;  %v1803_v46 = vadd.f32 %v5417_v21, %v5371_v9 }
 0x17b   :  { %v5496_v4 = vpop.f32.mrf.mxu1  ;;  %v5451_v15 = vadd.f32 %v5450_v11, %v5449_v17 }
 0x17c   :  { %v2289_v57 = vadd.f32 %v2260_v30, %v1811_v23  ;;  %v5497_v39 = vadd.f32 %v5496_v4, %v5495_v13  ;;  %v5452_v22 = vpop.f32.mrf.mxu0  ;;  %v1816_v23 = vadd.f32 %v1803_v46, %v7276_v37 }
 0x17d   :  { %v5498_v43 = vpop.f32.mrf.mxu1 }
 0x17e   :  { %v5106_v6 = vpack.c.bf16 %v2289_v57, %v2288_v53  ;;  %v5453_v41 = vpop.f32.mrf.mxu0  ;;  %v2265_v32 = vadd.f32 %v5497_v39, %v5451_v15 }
 0x17f   :  { %v5454_v1 = vadd.f32 %v5453_v41, %v5452_v22  ;;  %v5499_v26 = vpop.f32.mrf.mxu1 }
 0x180   :  { %5138 = vst [vmem:[#allocation6 + $0x8] sm:$0xff] %v5106_v6   ;;  %v5500_v50 = vadd.f32 %v5499_v26, %v5498_v43  ;;  %v5455_v45 = vpop.f32.mrf.mxu0  ;;  %v2290_v20 = vadd.f32 %v2265_v32, %v1812_v36 }
 0x181   :  { %v5501_v18 = vpop.f32.mrf.mxu1 }
 0x182   :  { %v2268_v16 = vadd.f32 %v5500_v50, %v5454_v1  ;;  %v5456_v2 = vpop.f32.mrf.mxu0 }
 0x183   :  { %v5502_v49 = vpop.f32.mrf.mxu1  ;;  %v5457_v52 = vadd.f32 %v5456_v2, %v5455_v45 }
 0x184   :  { %v2291_v34 = vadd.f32 %v2268_v16, %v1813_v38  ;;  %v5503_v8 = vadd.f32 %v5502_v49, %v5501_v18  ;;  %v5458_v29 = vpop.f32.mrf.mxu0 }
 0x185   :  { %v5504_v61 = vpop.f32.mrf.mxu1 }
 0x186   :  { %v5111_v5 = vpack.c.bf16 %v2291_v34, %v2290_v20  ;;  %v5459_v48 = vpop.f32.mrf.mxu0  ;;  %v2273_v51 = vadd.f32 %v5503_v8, %v5457_v52 }
 0x187   :  { %v5460_v59 = vadd.f32 %v5459_v48, %v5458_v29  ;;  %v5505_v27 = vpop.f32.mrf.mxu1 }
 0x188   :  { %5139 = vst [vmem:[#allocation6 + $0x10] sm:$0xff] %v5111_v5   ;;  %v5506_v28 = vadd.f32 %v5505_v27, %v5504_v61  ;;  %v5461_v25 = vpop.f32.mrf.mxu0  ;;  %v2292_v14 = vadd.f32 %v2273_v51, %v1814_v44 }
 0x189   :  { %v5507_v0 = vpop.f32.mrf.mxu1 }
 0x18a   :  { %v2276_v17 = vadd.f32 %v5506_v28, %v5460_v59  ;;  %v5462_v58 = vpop.f32.mrf.mxu0 }
 0x18b   :  { %v5463_v54 = vadd.f32 %v5462_v58, %v5461_v25  ;;  %v5508_v19 = vpop.f32.mrf.mxu1 }
 0x18c   :  { %v2293_v60 = vadd.f32 %v2276_v17, %v1815_v3  ;;  %v5509_v33 = vadd.f32 %v5508_v19, %v5507_v0  ;;  %v5464_v10 = vpop.f32.mrf.mxu0 }
 0x18d   :  { %v5510_v13 = vpop.f32.mrf.mxu1 }
 0x18e   :  { %v5116_v24 = vpack.c.bf16 %v2293_v60, %v2292_v14  ;;  %v2281_v12 = vadd.f32 %v5509_v33, %v5463_v54  ;;  %v5465_v30 = vpop.f32.mrf.mxu0 }
 0x18f   :  { %v5511_v11 = vpop.f32.mrf.mxu1 }
 0x190   :  { %5140 = vst [vmem:[#allocation6 + $0x18] sm:$0xff] %v5116_v24   ;;  %v2294_v55 = vadd.f32 %v2281_v12, %v1816_v23  ;;  %v5529_v4 = vpop.f32.mrf.mxu0 }
 0x191   :  { %v5575_v40 = vpop.f32.mrf.mxu1 }
 0x192   :  { %v5088_v53 = vpack.c.bf16 %v2294_v55, %v2294_v55  ;;  %v5530_v57 = vpop.f32.mrf.mxu0 }
 0x193   :  { %v5531_v15 = vadd.f32 %v5530_v57, %v5529_v4  ;;  %v5576_v39 = vpop.f32.mrf.mxu1 }
 0x194   :  { %2340 = vst [vmem:[#allocation6 + $0x20] sm:$0xf] %v5088_v53  ;;  %v5577_v22 = vadd.f32 %v5576_v39, %v5575_v40  ;;  %v5532_v63 = vpop.f32.mrf.mxu0 }
 0x195   :  { %v5578_v43 = vpop.f32.mrf.mxu1 }
 0x196   :  { %v7424_v7 = vadd.f32 %v5577_v22, %v5531_v15  ;;  %v5533_v6 = vpop.f32.mrf.mxu0 }
 0x197   :  { %v5534_v37 = vadd.f32 %v5533_v6, %v5532_v63  ;;  %v5579_v41 = vpop.f32.mrf.mxu1 }
 0x198   :  { %v5580_v1 = vadd.f32 %v5579_v41, %v5578_v43  ;;  %v5535_v26 = vpop.f32.mrf.mxu0 }
 0x199   :  { %v5581_v32 = vpop.f32.mrf.mxu1 }
 0x19a   :  { %v7426_v50 = vadd.f32 %v5580_v1, %v5534_v37  ;;  %v5536_v45 = vpop.f32.mrf.mxu0 }
 0x19b   :  { %v5537_v36 = vadd.f32 %v5536_v45, %v5535_v26  ;;  %v5582_v47 = vpop.f32.mrf.mxu1 }
 0x19c   :  { %v5583_v62 = vadd.f32 %v5582_v47, %v5581_v32  ;;  %v5538_v18 = vpop.f32.mrf.mxu0 }
 0x19d   :  { %v5584_v38 = vpop.f32.mrf.mxu1 }
 0x19e   :  { %v7428_v56 = vadd.f32 %v5583_v62, %v5537_v36  ;;  %v5539_v31 = vpop.f32.mrf.mxu0 }
 0x19f   :  { %v5540_v16 = vadd.f32 %v5539_v31, %v5538_v18  ;;  %v5585_v2 = vpop.f32.mrf.mxu1 }
 0x1a0   :  { %v5586_v49 = vadd.f32 %v5585_v2, %v5584_v38  ;;  %v5541_v20 = vpop.f32.mrf.mxu0 }
 0x1a1   :  { %v5587_v34 = vpop.f32.mrf.mxu1 }
 0x1a2   :  { %v7430_v52 = vadd.f32 %v5586_v49, %v5540_v16  ;;  %v5542_v8 = vpop.f32.mrf.mxu0 }
 0x1a3   :  { %v5543_v29 = vadd.f32 %v5542_v8, %v5541_v20  ;;  %v5588_v42 = vpop.f32.mrf.mxu1 }
 0x1a4   :  { %v5589_v61 = vadd.f32 %v5588_v42, %v5587_v34  ;;  %v5544_v35 = vpop.f32.mrf.mxu0 }
 0x1a5   :  { %v5590_v9 = vpop.f32.mrf.mxu1 }
 0x1a6   :  { %v7432_v21 = vadd.f32 %v5589_v61, %v5543_v29  ;;  %v5545_v5 = vpop.f32.mrf.mxu0 }
 0x1a7   :  { %v5546_v48 = vadd.f32 %v5545_v5, %v5544_v35  ;;  %v5591_v59 = vpop.f32.mrf.mxu1 }
 0x1a8   :  { %v5592_v27 = vadd.f32 %v5591_v59, %v5590_v9  ;;  %v5547_v51 = vpop.f32.mrf.mxu0 }
 0x1a9   :  { %v5593_v28 = vpop.f32.mrf.mxu1 }
 0x1aa   :  { %v7434_v25 = vadd.f32 %v5592_v27, %v5546_v48  ;;  %v5548_v0 = vpop.f32.mrf.mxu0 }
 0x1ab   :  { %v5549_v44 = vadd.f32 %v5548_v0, %v5547_v51  ;;  %v5594_v3 = vpop.f32.mrf.mxu1 }
 0x1ac   :  { %v5595_v46 = vadd.f32 %v5594_v3, %v5593_v28  ;;  %v5550_v17 = vpop.f32.mrf.mxu0 }
 0x1ad   :  { %v5596_v58 = vpop.f32.mrf.mxu1 }
 0x1ae   :  { %v7436_v54 = vadd.f32 %v5595_v46, %v5549_v44  ;;  %v5551_v19 = vpop.f32.mrf.mxu0 }
 0x1af   :  { %v5552_v14 = vadd.f32 %v5551_v19, %v5550_v17  ;;  %v5597_v60 = vpop.f32.mrf.mxu1 }
 0x1b0   :  { %v5598_v33 = vadd.f32 %v5597_v60, %v5596_v58  ;;  %v5553_v10 = vpop.f32.mrf.mxu0 }
 0x1b1   :  { %v5599_v13 = vpop.f32.mrf.mxu1 }
 0x1b2   :  { %v7438_v23 = vadd.f32 %v5598_v33, %v5552_v14  ;;  %v5554_v24 = vpop.f32.mrf.mxu0 }
 0x1b3   :  { %v5555_v12 = vadd.f32 %v5554_v24, %v5553_v10  ;;  %v5600_v30 = vpop.f32.mrf.mxu1 }
 0x1b4   :  { %v5601_v11 = vadd.f32 %v5600_v30, %v5599_v13  ;;  %v5556_v55 = vpop.f32.mrf.mxu0 }
 0x1b5   :  { %v5602_v4 = vpop.f32.mrf.mxu1 }
 0x1b6   :  { %v7440_v40 = vadd.f32 %v5601_v11, %v5555_v12  ;;  %v5557_v53 = vpop.f32.mrf.mxu0 }
 0x1b7   :  { %v5603_v57 = vpop.f32.mrf.mxu1 }
 0x1b8   :  { %v5621_v15 = vpop.f32.mrf.mxu0 }
 0x1b9   :  { %v5667_v39 = vpop.f32.mrf.mxu1 }
 0x1ba   :  { %v5622_v22 = vpop.f32.mrf.mxu0 }
 0x1bb   :  { %v5623_v63 = vadd.f32 %v5622_v22, %v5621_v15  ;;  %v5668_v43 = vpop.f32.mrf.mxu1 }
 0x1bc   :  { %v5669_v6 = vadd.f32 %v5668_v43, %v5667_v39  ;;  %v5624_v37 = vpop.f32.mrf.mxu0 }
 0x1bd   :  { %v3333_v41 = vadd.f32 %v5623_v63, %v7424_v7  ;;  %v5670_v1 = vpop.f32.mrf.mxu1 }
 0x1be   :  { %v5625_v26 = vpop.f32.mrf.mxu0 }
 0x1bf   :  { %v7443_v32 = vadd.f32 %v5669_v6, %v3333_v41  ;;  %v5626_v45 = vadd.f32 %v5625_v26, %v5624_v37  ;;  %v5671_v36 = vpop.f32.mrf.mxu1 }
 0x1c0   :  { %v5672_v47 = vadd.f32 %v5671_v36, %v5670_v1  ;;  %v5627_v62 = vpop.f32.mrf.mxu0 }
 0x1c1   :  { %v3336_v18 = vadd.f32 %v5626_v45, %v7426_v50  ;;  %v5673_v38 = vpop.f32.mrf.mxu1 }
 0x1c2   :  { %v5628_v31 = vpop.f32.mrf.mxu0 }
 0x1c3   :  { %v7446_v16 = vadd.f32 %v5672_v47, %v3336_v18  ;;  %v5629_v2 = vadd.f32 %v5628_v31, %v5627_v62  ;;  %v5674_v49 = vpop.f32.mrf.mxu1 }
 0x1c4   :  { %v5675_v20 = vadd.f32 %v5674_v49, %v5673_v38  ;;  %v5630_v34 = vpop.f32.mrf.mxu0 }
 0x1c5   :  { %v3341_v7 = vadd.f32 %v5629_v2, %v7428_v56  ;;  %v5676_v8 = vpop.f32.mrf.mxu1 }
 0x1c6   :  { %v5631_v29 = vpop.f32.mrf.mxu0 }
 0x1c7   :  { %v7449_v42 = vadd.f32 %v5675_v20, %v3341_v7  ;;  %v5632_v61 = vadd.f32 %v5631_v29, %v5630_v34  ;;  %v5677_v35 = vpop.f32.mrf.mxu1 }
 0x1c8   :  { %v5678_v9 = vadd.f32 %v5677_v35, %v5676_v8  ;;  %v5633_v5 = vpop.f32.mrf.mxu0 }
 0x1c9   :  { %v3344_v50 = vadd.f32 %v5632_v61, %v7430_v52  ;;  %v5679_v48 = vpop.f32.mrf.mxu1 }
 0x1ca   :  { %v5634_v59 = vpop.f32.mrf.mxu0 }
 0x1cb   :  { %v7452_v27 = vadd.f32 %v5678_v9, %v3344_v50  ;;  %v5635_v51 = vadd.f32 %v5634_v59, %v5633_v5  ;;  %v5680_v28 = vpop.f32.mrf.mxu1 }
 0x1cc   :  { %v5681_v0 = vadd.f32 %v5680_v28, %v5679_v48  ;;  %v5636_v44 = vpop.f32.mrf.mxu0 }
 0x1cd   :  { %v3349_v56 = vadd.f32 %v5635_v51, %v7432_v21  ;;  %v5682_v3 = vpop.f32.mrf.mxu1 }
 0x1ce   :  { %v5637_v46 = vpop.f32.mrf.mxu0 }
 0x1cf   :  { %v7455_v17 = vadd.f32 %v5681_v0, %v3349_v56  ;;  %v5638_v58 = vadd.f32 %v5637_v46, %v5636_v44  ;;  %v5683_v19 = vpop.f32.mrf.mxu1 }
 0x1d0   :  { %v5684_v14 = vadd.f32 %v5683_v19, %v5682_v3  ;;  %v5639_v60 = vpop.f32.mrf.mxu0 }
 0x1d1   :  { %v3352_v52 = vadd.f32 %v5638_v58, %v7434_v25  ;;  %v5685_v33 = vpop.f32.mrf.mxu1 }
 0x1d2   :  { %v5640_v10 = vpop.f32.mrf.mxu0 }
 0x1d3   :  { %v7458_v13 = vadd.f32 %v5684_v14, %v3352_v52  ;;  %v5641_v24 = vadd.f32 %v5640_v10, %v5639_v60  ;;  %v5686_v12 = vpop.f32.mrf.mxu1 }
 0x1d4   :  { %v5687_v30 = vadd.f32 %v5686_v12, %v5685_v33  ;;  %v5642_v11 = vpop.f32.mrf.mxu0 }
 0x1d5   :  { %v3357_v21 = vadd.f32 %v5641_v24, %v7436_v54  ;;  %v5688_v55 = vpop.f32.mrf.mxu1 }
 0x1d6   :  { %v5643_v4 = vpop.f32.mrf.mxu0 }
 0x1d7   :  { %v7461_v53 = vadd.f32 %v5687_v30, %v3357_v21  ;;  %v5644_v57 = vadd.f32 %v5643_v4, %v5642_v11  ;;  %v5689_v15 = vpop.f32.mrf.mxu1 }
 0x1d8   :  { %v5690_v39 = vadd.f32 %v5689_v15, %v5688_v55  ;;  %v5645_v22 = vpop.f32.mrf.mxu0 }
 0x1d9   :  { %v3360_v25 = vadd.f32 %v5644_v57, %v7438_v23  ;;  %v5691_v63 = vpop.f32.mrf.mxu1 }
 0x1da   :  { %v5646_v43 = vpop.f32.mrf.mxu0 }
 0x1db   :  { %v7464_v6 = vadd.f32 %v5690_v39, %v3360_v25  ;;  %v5647_v37 = vadd.f32 %v5646_v43, %v5645_v22  ;;  %v5692_v41 = vpop.f32.mrf.mxu1 }
 0x1dc   :  { %v5693_v1 = vadd.f32 %v5692_v41, %v5691_v63  ;;  %v5648_v26 = vpop.f32.mrf.mxu0 }
 0x1dd   :  { %v3365_v54 = vadd.f32 %v5647_v37, %v7440_v40  ;;  %v5694_v45 = vpop.f32.mrf.mxu1 }
 0x1de   :  { %v5649_v36 = vpop.f32.mrf.mxu0 }
 0x1df   :  { %v7467_v47 = vadd.f32 %v5693_v1, %v3365_v54  ;;  %v5695_v62 = vpop.f32.mrf.mxu1 }
 0x1e0   :  { %v5713_v18 = vpop.f32.mrf.mxu0 }
 0x1e1   :  { %v5759_v38 = vpop.f32.mrf.mxu1 }
 0x1e2   :  { %v5714_v31 = vpop.f32.mrf.mxu0 }
 0x1e3   :  { %v5760_v2 = vpop.f32.mrf.mxu1  ;;  %v5715_v55 = vadd.f32 %v5714_v31, %v5713_v18 }
 0x1e4   :  { %v5716_v23 = vpop.f32.mrf.mxu0  ;;  %v5761_v4 = vadd.f32 %v5760_v2, %v5759_v38 }
 0x1e5   :  { %v5762_v49 = vpop.f32.mrf.mxu1 }
 0x1e6   :  { %v5717_v20 = vpop.f32.mrf.mxu0  ;;  %v4081_v25 = vadd.f32 %v5761_v4, %v5715_v55 }
 0x1e7   :  { %v5763_v34 = vpop.f32.mrf.mxu1  ;;  %v5718_v26 = vadd.f32 %v5717_v20, %v5716_v23 }
 0x1e8   :  { %v5719_v7 = vpop.f32.mrf.mxu0  ;;  %v5764_v54 = vadd.f32 %v5763_v34, %v5762_v49 }
 0x1e9   :  { %v5765_v8 = vpop.f32.mrf.mxu1 }
 0x1ea   :  { %v5720_v29 = vpop.f32.mrf.mxu0  ;;  %v4084_v55 = vadd.f32 %v5764_v54, %v5718_v26 }
 0x1eb   :  { %v5766_v61 = vpop.f32.mrf.mxu1  ;;  %v5721_v45 = vadd.f32 %v5720_v29, %v5719_v7 }
 0x1ec   :  { %v7469_v35 = vpop.f32.mrf.mxu0  ;;  %v5767_v36 = vadd.f32 %v5766_v61, %v5765_v8 }
 0x1ed   :  { %v7471_v40 = vpop.f32.mrf.mxu1 }
 0x1ee   :  { %v5723_v9 = vpop.f32.mrf.mxu0  ;;  %v4089_v4 = vadd.f32 %v5767_v36, %v5721_v45 }
 0x1ef   :  { %v7473_v5 = vpop.f32.mrf.mxu1  ;;  %v5724_v8 = vadd.f32 %v5723_v9, %v7469_v35 }
 0x1f0   :  { %v7475_v50 = vpop.f32.mrf.mxu0  ;;  %v4120_v7 = vadd.f32 %v4089_v4, %v7449_v42  ;;  %v5770_v61 = vadd.f32 %v7473_v5, %v7471_v40 }
 0x1f1   :  { %v7477_v48 = vpop.f32.mrf.mxu1 }
 0x1f2   :  { %v5726_v59 = vpop.f32.mrf.mxu0  ;;  %v4092_v42 = vadd.f32 %v5770_v61, %v5724_v8 }
 0x1f3   :  { %v5772_v51 = vpop.f32.mrf.mxu1 }
 0x1f4   :  { %v7479_v28 = vpop.f32.mrf.mxu0 }
 0x1f5   :  { %v7481_v0 = vpop.f32.mrf.mxu1 }
 0x1f6   :  { %v7483_v44 = vpop.f32.mrf.mxu0 }
 0x1f7   :  { %v7485_v56 = vpop.f32.mrf.mxu1 }
 0x1f8   :  { %v7487_v3 = vpop.f32.mrf.mxu0 }
 0x1f9   :  { %v7489_v46 = vpop.f32.mrf.mxu1 }
 0x1fa   :  { %v7491_v58 = vpop.f32.mrf.mxu0 }
 0x1fb   :  { %v7493_v19 = vpop.f32.mrf.mxu1 }
 0x1fc   :  { %v7495_v14 = vpop.f32.mrf.mxu0 }
 0x1fd   :  { %v7497_v60 = vpop.f32.mrf.mxu1 }
 0x1fe   :  { %v7499_v52 = vpop.f32.mrf.mxu0 }
 0x1ff   :  { %v7501_v33 = vpop.f32.mrf.mxu1 }
 0x200   :  { %v7503_v10 = vpop.f32.mrf.mxu0  ;;  %v5782_v8 = vadd.f32 %v7501_v33, %v7497_v60 }
 0x201   :  { %v7505_v24 = vpop.f32.mrf.mxu1 }
 0x202   :  { %v7507_v12 = vpop.f32.mrf.mxu0 }
 0x203   :  { %v7509_v30 = vpop.f32.mrf.mxu1 }
 0x204   :  { %v5740_v11 = vpop.f32.mrf.mxu0  ;;  %v5785_v61 = vadd.f32 %v7509_v30, %v7505_v24 }
 0x205   :  { %v5786_v21 = vpop.f32.mrf.mxu1  ;;  %v4118_v11 = vadd.f32 %v4081_v25, %v7443_v32  ;;  %v4119_v32 = vadd.f32 %v4084_v55, %v7446_v16  ;;  %v5727_v25 = vadd.f32 %v5726_v59, %v7475_v50  ;;  %v5776_v59 = vadd.f32 %v7485_v56, %v7481_v0 }
 0x206   :  { %v5741_v57 = vpop.f32.mrf.mxu0 }
 0x207   :  { %v5787_v15 = vpop.f32.mrf.mxu1 }
 0x208   :  { %v5805_v39 = vpop.f32.mrf.mxu0 }
 0x209   :  { %v5851_v22 = vpop.f32.mrf.mxu1 }
 0x20a   :  { %v5806_v63 = vpop.f32.mrf.mxu0 }
 0x20b   :  { %v5807_v43 = vadd.f32 %v5806_v63, %v5805_v39  ;;  %v5852_v37 = vpop.f32.mrf.mxu1 }
 0x20c   :  { %v5853_v41 = vadd.f32 %v5852_v37, %v5851_v22  ;;  %v5808_v1 = vpop.f32.mrf.mxu0 }
 0x20d   :  { %v5854_v62 = vpop.f32.mrf.mxu1 }
 0x20e   :  { %v4558_v21 = vadd.f32 %v5853_v41, %v5807_v43  ;;  %v5809_v18 = vpop.f32.mrf.mxu0  ;;  %v5773_v43 = vadd.f32 %v5772_v51, %v7477_v48  ;;  %v5730_v48 = vadd.f32 %v7483_v44, %v7479_v28  ;;  %v5733_v51 = vadd.f32 %v7491_v58, %v7487_v3 }
 0x20f   :  { %v5855_v38 = vpop.f32.mrf.mxu1  ;;  %v5810_v2 = vadd.f32 %v5809_v18, %v5808_v1 }
 0x210   :  { %v4595_v31 = vadd.f32 %v4558_v21, %v4118_v11  ;;  %v5856_v57 = vadd.f32 %v5855_v38, %v5854_v62  ;;  %v5811_v15 = vpop.f32.mrf.mxu0  ;;  %v4097_v21 = vadd.f32 %v5773_v43, %v5727_v25  ;;  %v4100_v0 = vadd.f32 %v5776_v59, %v5730_v48 }
 0x211   :  { %v5857_v39 = vpop.f32.mrf.mxu1 }
 0x212   :  { %v5089_v63 = vpack.c.bf16 %v4595_v31, %v4595_v31  ;;  %v5812_v22 = vpop.f32.mrf.mxu0  ;;  %v4561_v49 = vadd.f32 %v5856_v57, %v5810_v2  ;;  %v5779_v31 = vadd.f32 %v7493_v19, %v7489_v46  ;;  %v4121_v57 = vadd.f32 %v4092_v42, %v7452_v27 }
 0x213   :  { %v5813_v37 = vadd.f32 %v5812_v22, %v5811_v15  ;;  %v5858_v23 = vpop.f32.mrf.mxu1  ;;  %v4122_v15 = vadd.f32 %v4097_v21, %v7455_v17  ;;  %v4123_v17 = vadd.f32 %v4100_v0, %v7458_v13 }
 0x214   :  { %4642 = vst [vmem:[#allocation6 + $0x24] sm:$0xf] %v5089_v63  ;;  %v5859_v20 = vadd.f32 %v5858_v23, %v5857_v39  ;;  %v5814_v34 = vpop.f32.mrf.mxu0  ;;  %v4596_v54 = vadd.f32 %v4561_v49, %v4119_v32  ;;  %v4105_v56 = vadd.f32 %v5779_v31, %v5733_v51  ;;  %v5736_v32 = vadd.f32 %v7499_v52, %v7495_v14 }
 0x215   :  { %v5860_v29 = vpop.f32.mrf.mxu1 }
 0x216   :  { %v4566_v41 = vadd.f32 %v5859_v20, %v5813_v37  ;;  %v5815_v1 = vpop.f32.mrf.mxu0  ;;  %v4108_v14 = vadd.f32 %v5782_v8, %v5736_v32 }
 0x217   :  { %v5861_v26 = vpop.f32.mrf.mxu1  ;;  %v5816_v36 = vadd.f32 %v5815_v1, %v5814_v34  ;;  %v4124_v34 = vadd.f32 %v4105_v56, %v7461_v53 }
 0x218   :  { %v4597_v45 = vadd.f32 %v4566_v41, %v4120_v7  ;;  %v5862_v62 = vadd.f32 %v5861_v26, %v5860_v29  ;;  %v5817_v16 = vpop.f32.mrf.mxu0  ;;  %v5739_v29 = vadd.f32 %v7507_v12, %v7503_v10  ;;  %v4125_v30 = vadd.f32 %v4108_v14, %v7464_v6 }
 0x219   :  { %v5863_v11 = vpop.f32.mrf.mxu1 }
 0x21a   :  { %v5121_v35 = vpack.c.bf16 %v4597_v45, %v4596_v54  ;;  %v5818_v9 = vpop.f32.mrf.mxu0  ;;  %v4569_v40 = vadd.f32 %v5862_v62, %v5816_v36  ;;  %v4113_v52 = vadd.f32 %v5785_v61, %v5739_v29 }
 0x21b   :  { %v5819_v18 = vadd.f32 %v5818_v9, %v5817_v16  ;;  %v5864_v38 = vpop.f32.mrf.mxu1 }
 0x21c   :  { %5141 = vst [vmem:[#allocation6 + $0x28] sm:$0xff] %v5121_v35   ;;  %v5865_v5 = vadd.f32 %v5864_v38, %v5863_v11  ;;  %v5820_v50 = vpop.f32.mrf.mxu0  ;;  %v4598_v63 = vadd.f32 %v4569_v40, %v4121_v57  ;;  %v4126_v11 = vadd.f32 %v4113_v52, %v7467_v47 }
 0x21d   :  { %v5866_v2 = vpop.f32.mrf.mxu1 }
 0x21e   :  { %v4574_v55 = vadd.f32 %v5865_v5, %v5819_v18  ;;  %v5821_v4 = vpop.f32.mrf.mxu0 }
 0x21f   :  { %v5867_v39 = vpop.f32.mrf.mxu1  ;;  %v5822_v28 = vadd.f32 %v5821_v4, %v5820_v50 }
 0x220   :  { %v4599_v22 = vadd.f32 %v4574_v55, %v4122_v15  ;;  %v5868_v44 = vadd.f32 %v5867_v39, %v5866_v2  ;;  %v5823_v37 = vpop.f32.mrf.mxu0 }
 0x221   :  { %v5869_v23 = vpop.f32.mrf.mxu1 }
 0x222   :  { %v5126_v3 = vpack.c.bf16 %v4599_v22, %v4598_v63  ;;  %v5824_v58 = vpop.f32.mrf.mxu0  ;;  %v4577_v19 = vadd.f32 %v5868_v44, %v5822_v28 }
 0x223   :  { %v5825_v49 = vadd.f32 %v5824_v58, %v5823_v37  ;;  %v5870_v46 = vpop.f32.mrf.mxu1 }
 0x224   :  { %5142 = vst [vmem:[#allocation6 + $0x30] sm:$0xff] %v5126_v3   ;;  %v5871_v27 = vadd.f32 %v5870_v46, %v5869_v23  ;;  %v5826_v20 = vpop.f32.mrf.mxu0  ;;  %v4600_v1 = vadd.f32 %v4577_v19, %v4123_v17 }
 0x225   :  { %v5872_v7 = vpop.f32.mrf.mxu1 }
 0x226   :  { %v4582_v25 = vadd.f32 %v5871_v27, %v5825_v49  ;;  %v5827_v43 = vpop.f32.mrf.mxu0 }
 0x227   :  { %v5873_v41 = vpop.f32.mrf.mxu1  ;;  %v5828_v26 = vadd.f32 %v5827_v43, %v5826_v20 }
 0x228   :  { %v4601_v13 = vadd.f32 %v4582_v25, %v4124_v34  ;;  %v5874_v53 = vadd.f32 %v5873_v41, %v5872_v7  ;;  %v5829_v54 = vpop.f32.mrf.mxu0 }
 0x229   :  { %v5875_v45 = vpop.f32.mrf.mxu1 }
 0x22a   :  { %v5131_v36 = vpack.c.bf16 %v4601_v13, %v4600_v1  ;;  %v5830_v62 = vpop.f32.mrf.mxu0  ;;  %v4585_v10 = vadd.f32 %v5874_v53, %v5828_v26 }
 0x22b   :  { %v5831_v60 = vadd.f32 %v5830_v62, %v5829_v54  ;;  %v5876_v33 = vpop.f32.mrf.mxu1 }
 0x22c   :  { %5143 = vst [vmem:[#allocation6 + $0x38] sm:$0xff] %v5131_v36   ;;  %v5877_v12 = vadd.f32 %v5876_v33, %v5875_v45  ;;  %v5832_v16 = vpop.f32.mrf.mxu0  ;;  %v4602_v9 = vadd.f32 %v4585_v10, %v4125_v30 }
 0x22d   :  { %v5878_v24 = vpop.f32.mrf.mxu1 }
 0x22e   :  { %v4590_v42 = vadd.f32 %v5877_v12, %v5831_v60  ;;  %v5833_v21 = vpop.f32.mrf.mxu0 }
 0x22f   :  { %v5879_v35 = vpop.f32.mrf.mxu1 }
 0x230   :  { %v4603_v18 = vadd.f32 %v4590_v42, %v4126_v11 }
 0x232   :  { %v5136_v38 = vpack.c.bf16 %v4603_v18, %v4602_v9 }
 0x234   :  { %5144 = vst [vmem:[#allocation6 + $0x40] sm:$0xff] %v5136_v38  }
 0x235   :  { %6281 = shalt.err (!%p6278_p9)
}
 0x236   :  { %4662 = dma.vmem_to_hbm [thread:$0]  %s4657_s17, 1152, %s7550_s3, [#allocation5], %s6295_s0, %s6295_s0, %s6296_s15  }
 0x237   :  { %6292 = dma.done.wait [#allocation5], 1152  }
 0x238   :  { %6293 = vsyncadd [#allocation5], 4294966144 }
 0x239   :  { %4666 = vsyncpa [#allocation4], 1 }
 0x23a   :  { %4667 = vsyncpa [#allocation5], 1 }

</bundles_post_ra>
